<compile_context>
chip_gen: v5e
topology: v5e:2x2
jax: 0.10.0
libtpu: 0.0.40
codegen_flags: <defaults>
</compile_context>

<pallas_src>
import functools
import math

import jax
import jax.numpy as jnp
from jax import lax
from jax.experimental import pallas as pl
from jax.experimental.pallas import tpu as pltpu

EPS = 1e-5  # PyTorch BatchNorm2d default eps


# ---------------------------------------------------------------------------
# Fused kernel: conv1(1x1)+bn1+relu -> conv2(3x3, grouped)+bn2+relu
#               -> conv3(1x1)+bn3 + residual + relu      (BN scales pre-folded)
# ---------------------------------------------------------------------------
def _fused_bottleneck_kernel(*refs, H, W, dilation, lead, h_chunk,
                             separate_residual):
    if separate_residual:
        (x_ref, res_ref, w1_ref, b1_ref, w2_ref, b2_ref,
         w3_ref, b3_ref, o_ref, mid_ref) = refs
    else:
        (x_ref, w1_ref, b1_ref, w2_ref, b2_ref,
         w3_ref, b3_ref, o_ref, mid_ref) = refs
        res_ref = x_ref     # residual == x: reuse the VMEM block, no extra HBM

    d = dilation
    HW = H * W
    cin = x_ref.shape[-1]
    cmid = w1_ref.shape[-1]
    cout = o_ref.shape[-1]
    rows = h_chunk * W                    # flat rows per chunk (multiple of W)
    n_chunks = H // h_chunk
    extra = lead - d * (W + 1)            # static >= 0 (lead rounded up)

    # ---- zero only the halo rows; the interior is overwritten just below ---
    halo = jnp.zeros((lead, cmid), jnp.bfloat16)
    mid_ref[pl.ds(0, lead), :] = halo
    mid_ref[pl.ds(lead + HW, lead), :] = halo

    # ---- stage 1: 1x1 conv (BN1 scale folded into w1) + bias + ReLU --------
    for c in range(n_chunks):
        r0 = c * rows
        xc = x_ref[0, pl.ds(c * h_chunk, h_chunk)].reshape(rows, cin)
        y1 = jnp.dot(xc, w1_ref[...], preferred_element_type=jnp.float32)
        y1 = jnp.maximum(y1 + b1_ref[...], 0.0)
        mid_ref[pl.ds(lead + r0, rows), :] = y1.astype(jnp.bfloat16)

    # ---- stages 2+3 per row chunk ------------------------------------------
    # Grouped 3x3 conv as 9 block-diagonal dense taps; each tap reads a
    # contiguous window of the flat, zero-haloed scratch at a static offset.
    # Left/right image borders are fixed with a column mask; top/bottom hit
    # the zeroed halo rows.  Accumulation is SSA (no VMEM RMW).
    col = lax.broadcasted_iota(jnp.int32, (rows, 1), 0) % W
    valid_l = col >= d            # kx == 0 reads input column w - d
    valid_r = col < (W - d)       # kx == 2 reads input column w + d

    for c in range(n_chunks):
        r0 = c * rows
        acc = None
        for ky in range(3):
            for kx in range(3):
                start = extra + ky * d * W + kx * d + r0     # static offset
                xk = mid_ref[pl.ds(start, rows), :]
                if kx == 0:
                    xk = jnp.where(valid_l, xk, jnp.zeros_like(xk))
                elif kx == 2:
                    xk = jnp.where(valid_r, xk, jnp.zeros_like(xk))
                p = jnp.dot(xk, w2_ref[ky * 3 + kx],
                            preferred_element_type=jnp.float32)
                acc = p if acc is None else acc + p
        y2 = jnp.maximum(acc + b2_ref[...], 0.0)

        # stage 3: 1x1 conv (BN3 scale folded) + bias + residual + ReLU
        y3 = jnp.dot(y2.astype(jnp.bfloat16), w3_ref[...],
                     preferred_element_type=jnp.float32)
        res = res_ref[0, pl.ds(c * h_chunk, h_chunk)].reshape(rows, cout)
        y3 = jnp.maximum(y3 + b3_ref[...] + res.astype(jnp.float32), 0.0)
        o_ref[0, pl.ds(c * h_chunk, h_chunk)] = (
            y3.astype(o_ref.dtype).reshape(h_chunk, W, cout))


# ---------------------------------------------------------------------------
# Host-side (one-time) parameter preparation: BN folding + grouped-conv
# densification, scales folded directly into the bf16 weights.
# ---------------------------------------------------------------------------
def fold_bn(gamma, beta, mean, var):
    scale = gamma / jnp.sqrt(var + EPS)
    bias = beta - mean * scale
    return (scale.reshape(1, -1).astype(jnp.float32),
            bias.reshape(1, -1).astype(jnp.float32))


def make_dense_grouped_weight(w2, cardinality):
    """w2: (Cout, Cin//groups, 3, 3) -> (9, Cin, Cout) block-diagonal taps."""
    cout_total, cpg = w2.shape[0], w2.shape[1]
    cin_total = cpg * cardinality
    assert cout_total == cin_total
    w2r = w2.reshape(cout_total, cpg, 9)                     # (cout, local_in, tap)
    cin_idx = jnp.arange(cin_total)
    cout_idx = jnp.arange(cout_total)
    same_group = (cin_idx[:, None] // cpg) == (cout_idx[None, :] // cpg)
    gathered = w2r[cout_idx[None, :], (cin_idx % cpg)[:, None], :]  # (Cin, Cout, 9)
    dense = jnp.where(same_group[:, :, None], gathered, 0.0)
    return jnp.transpose(dense, (2, 0, 1))                   # (9, Cin, Cout)


def prepare_fused_params(params):
    """Fold eval-mode BN into the conv weights ONCE (not per forward call)."""
    s1, b1 = fold_bn(params["bn1_g"], params["bn1_b"],
                     params["bn1_m"], params["bn1_v"])
    s2, b2 = fold_bn(params["bn2_g"], params["bn2_b"],
                     params["bn2_m"], params["bn2_v"])
    s3, b3 = fold_bn(params["bn3_g"], params["bn3_b"],
                     params["bn3_m"], params["bn3_v"])
    w1 = params["conv1_w"][:, :, 0, 0].T * s1[0]                       # (Cin, Cmid)
    w2 = make_dense_grouped_weight(params["conv2_w"],
                                   params["cardinality"]) * s2[0]      # (9, Cmid, Cmid)
    w3 = params["conv3_w"][:, :, 0, 0].T * s3[0]                       # (Cmid, Cout)
    return {
        "w1": w1.astype(jnp.bfloat16), "b1": b1,
        "w2": w2.astype(jnp.bfloat16), "b2": b2,
        "w3": w3.astype(jnp.bfloat16), "b3": b3,
    }


def init_params(key, inplanes, planes, cardinality=32):
    bottle = planes * cardinality // 32
    cpg = bottle // cardinality
    ks = jax.random.split(key, 15)
    f32 = jnp.float32

    def nrm(k, shape, scale):
        return jax.random.normal(k, shape, f32) * scale

    return {
        "cardinality": cardinality,
        "conv1_w": nrm(ks[0], (bottle, inplanes, 1, 1), 1.0 / math.sqrt(inplanes)),
        "conv2_w": nrm(ks[1], (bottle, cpg, 3, 3), 1.0 / math.sqrt(cpg * 9)),
        "conv3_w": nrm(ks[2], (planes, bottle, 1, 1), 1.0 / math.sqrt(bottle)),
        "bn1_g": 0.5 + jax.random.uniform(ks[3], (bottle,), f32),
        "bn1_b": nrm(ks[4], (bottle,), 0.1),
        "bn1_m": nrm(ks[5], (bottle,), 0.1),
        "bn1_v": 0.5 + jax.random.uniform(ks[6], (bottle,), f32),
        "bn2_g": 0.5 + jax.random.uniform(ks[7], (bottle,), f32),
        "bn2_b": nrm(ks[8], (bottle,), 0.1),
        "bn2_m": nrm(ks[9], (bottle,), 0.1),
        "bn2_v": 0.5 + jax.random.uniform(ks[10], (bottle,), f32),
        "bn3_g": 0.5 + jax.random.uniform(ks[11], (planes,), f32),
        "bn3_b": nrm(ks[12], (planes,), 0.1),
        "bn3_m": nrm(ks[13], (planes,), 0.1),
        "bn3_v": 0.5 + jax.random.uniform(ks[14], (planes,), f32),
    }


# ---------------------------------------------------------------------------
# Forward wrappers.
# ---------------------------------------------------------------------------
def _pick_h_chunk(H, W):
    """Largest divisor of H giving <= ~128 flat rows/chunk (SSA acc fits vregs)."""
    target = max(1, 128 // W)
    for hc in range(min(target, H), 0, -1):
        if H % hc == 0:
            return hc
    return 1


def bottleneck_x_forward_nhwc(x_nhwc, fused, *, stride=1, dilation=1,
                              residual_nhwc=None, out_dtype=jnp.bfloat16):
    """Fused BottleneckX forward (eval-mode BN). NHWC in / NHWC out (bf16)."""
    # TODO(synk): training-mode BatchNorm (batch statistics) is not implemented.
    if stride != 1:
        # TODO(synk): stride>1 needs an externally supplied downsampled residual
        # and a strided-gather epilogue; not supported by the fused kernel.
        raise NotImplementedError("fused BottleneckX kernel supports stride=1 only")

    N, H, W, cin = x_nhwc.shape
    w1, b1 = fused["w1"], fused["b1"]
    w2, b2 = fused["w2"], fused["b2"]
    w3, b3 = fused["w3"], fused["b3"]
    cmid = w1.shape[1]
    cout = w3.shape[1]

    separate_residual = residual_nhwc is not None
    if not separate_residual:
        assert cin == cout, ("residual defaults to x; supply residual_nhwc when "
                             "inplanes != planes")

    d = dilation
    lead = ((d * (W + 1) + 15) // 16) * 16     # bf16-vreg-aligned interior start
    mid_rows = 2 * lead + H * W                # leading halo + interior + trailing halo
    h_chunk = _pick_h_chunk(H, W)

    kernel = functools.partial(
        _fused_bottleneck_kernel, H=H, W=W, dilation=d, lead=lead,
        h_chunk=h_chunk, separate_residual=separate_residual)

    img_map = lambda n: (n, 0, 0, 0)
    c2 = lambda n: (0, 0)

    in_specs = [pl.BlockSpec((1, H, W, cin), img_map)]
    operands = [x_nhwc.astype(jnp.bfloat16)]
    if separate_residual:
        in_specs.append(pl.BlockSpec((1, H, W, cout), img_map))
        operands.append(residual_nhwc.astype(jnp.bfloat16))
    in_specs += [
        pl.BlockSpec((cin, cmid), c2),                      # w1 (scale folded)
        pl.BlockSpec((1, cmid), c2),                        # b1
        pl.BlockSpec((9, cmid, cmid), lambda n: (0, 0, 0)),  # w2 taps (scale folded)
        pl.BlockSpec((1, cmid), c2),                        # b2
        pl.BlockSpec((cmid, cout), c2),                     # w3 (scale folded)
        pl.BlockSpec((1, cout), c2),                        # b3
    ]
    operands += [w1, b1, w2, b2, w3, b3]

    return pl.pallas_call(
        kernel,
        out_shape=jax.ShapeDtypeStruct((N, H, W, cout), out_dtype),
        grid_spec=pltpu.PrefetchScalarGridSpec(
            num_scalar_prefetch=0,
            grid=(N,),
            in_specs=in_specs,
            out_specs=pl.BlockSpec((1, H, W, cout), img_map),
            scratch_shapes=[
                pltpu.VMEM((mid_rows, cmid), jnp.bfloat16),  # haloed conv2 input
            ],
        ),
        compiler_params=pltpu.CompilerParams(
            dimension_semantics=("parallel",),
        ),
    )(*operands)


def bottleneck_x_forward(x_nchw, fused, *, stride=1, dilation=1,
                         residual=None, out_dtype=jnp.bfloat16):
    """NCHW interface wrapper (PyTorch layout).  The transposes here are pure
    interface plumbing; use bottleneck_x_forward_nhwc in an NHWC-native model."""
    x_nhwc = jnp.transpose(x_nchw, (0, 2, 3, 1))
    res_nhwc = None if residual is None else jnp.transpose(residual, (0, 2, 3, 1))
    out = bottleneck_x_forward_nhwc(x_nhwc, fused, stride=stride,
                                    dilation=dilation, residual_nhwc=res_nhwc,
                                    out_dtype=out_dtype)
    return jnp.transpose(out, (0, 3, 1, 2))


# ---------------------------------------------------------------------------
# References.
# ---------------------------------------------------------------------------
def reference_from_fused(x_nhwc, fused, *, dilation=1, residual_nhwc=None,
                         out_dtype=jnp.bfloat16):
    """Pure-JAX mirror of the kernel math (same folded bf16 operands)."""
    d = dilation
    cmid = fused["w1"].shape[1]
    x = x_nhwc.astype(jnp.bfloat16)
    res = x if residual_nhwc is None else residual_nhwc.astype(jnp.bfloat16)
    y1 = jnp.einsum("nhwc,cd->nhwd", x, fused["w1"],
                    preferred_element_type=jnp.float32)
    y1 = jnp.maximum(y1 + fused["b1"][0], 0.0).astype(jnp.bfloat16)
    w2 = fused["w2"].reshape(3, 3, cmid, cmid)               # (ky,kx,Cin,Cout) = HWIO
    y2 = lax.conv_general_dilated(
        y1, w2, (1, 1), ((d, d), (d, d)), rhs_dilation=(d, d),
        dimension_numbers=("NHWC", "HWIO", "NHWC"),
        preferred_element_type=jnp.float32)
    y2 = jnp.maximum(y2 + fused["b2"][0], 0.0).astype(jnp.bfloat16)
    y3 = jnp.einsum("nhwc,cd->nhwd", y2, fused["w3"],
                    preferred_element_type=jnp.float32)
    y3 = jnp.maximum(y3 + fused["b3"][0] + res.astype(jnp.float32), 0.0)
    return y3.astype(out_dtype)


def reference_forward(x, params, *, stride=1, dilation=1, residual=None):
    """f32 PyTorch-style reference (eval-mode BN), NCHW."""
    if residual is None:
        residual = x

    def bn(y, g, b, m, v):
        g = g[None, :, None, None]; b = b[None, :, None, None]
        m = m[None, :, None, None]; v = v[None, :, None, None]
        return (y - m) / jnp.sqrt(v + EPS) * g + b

    dn = ('NCHW', 'OIHW', 'NCHW')
    out = lax.conv_general_dilated(x, params["conv1_w"], (1, 1), 'VALID',
                                   dimension_numbers=dn)
    out = jax.nn.relu(bn(out, params["bn1_g"], params["bn1_b"],
                         params["bn1_m"], params["bn1_v"]))
    out = lax.conv_general_dilated(out, params["conv2_w"], (stride, stride),
                                   ((dilation, dilation), (dilation, dilation)),
                                   rhs_dilation=(dilation, dilation),
                                   dimension_numbers=dn,
                                   feature_group_count=params["cardinality"])
    out = jax.nn.relu(bn(out, params["bn2_g"], params["bn2_b"],
                         params["bn2_m"], params["bn2_v"]))
    out = lax.conv_general_dilated(out, params["conv3_w"], (1, 1), 'VALID',
                                   dimension_numbers=dn)
    out = bn(out, params["bn3_g"], params["bn3_b"], params["bn3_m"], params["bn3_v"])
    return jax.nn.relu(out + residual)


if __name__ == "__main__":
    key = jax.random.PRNGKey(0)
    kx_, kp_ = jax.random.split(key)
    # inplanes == planes == 128: residual add is well-defined (stride=1), the
    # channel width is lane-dense (multiple of 128) and divisible by the
    # cardinality=32 grouped conv.
    N, C, H, W = 2, 128, 16, 16
    params = init_params(kp_, inplanes=C, planes=C, cardinality=32)
    fused = prepare_fused_params(params)     # host-side, once (not per call)
    x = jax.random.normal(kx_, (N, C, H, W), jnp.float32)

    out = jax.block_until_ready(bottleneck_x_forward(x, fused, stride=1, dilation=1))
    assert out.shape == (N, C, H, W) and out.dtype == jnp.bfloat16
    out_f32 = out.astype(jnp.float32)

    # Tight check: pure-JAX mirror of the exact kernel math (same folded bf16
    # operands, f32 accumulation) -> differences are accumulation-order noise.
    x_nhwc = jnp.transpose(x, (0, 2, 3, 1))
    ref_t = jnp.transpose(
        reference_from_fused(x_nhwc, fused, dilation=1).astype(jnp.float32),
        (0, 3, 1, 2))
    err_t = float(jnp.max(jnp.abs(out_f32 - ref_t)))
    assert err_t < 0.15, f"mismatch vs folded-bf16 reference: {err_t}"

    # Loose sanity check vs the straight f32 PyTorch-style reference (bf16
    # weights/activations/output add small rounding noise; structural or
    # indexing bugs would be O(1)).
    ref32 = reference_forward(x, params, stride=1, dilation=1)
    diff = jnp.abs(out_f32 - ref32)
    err_max = float(jnp.max(diff))
    err_mean = float(jnp.mean(diff))
    assert err_max < 0.75 and err_mean < 0.05, (
        f"mismatch vs f32 reference: max={err_max} mean={err_mean}")

    print("KERNEL_OK")
</pallas_src>

<mosaic_0001>
module attributes {stable_mosaic.version = 11 : i64} {
  func.func @_fused_bottleneck_kernel(%arg0: i32, %arg1: memref<1x16x16x128xbf16, #tpu.memory_space<vmem>>, %arg2: memref<128x128xbf16, #tpu.memory_space<vmem>>, %arg3: memref<1x128xf32, #tpu.memory_space<vmem>>, %arg4: memref<9x128x128xbf16, #tpu.memory_space<vmem>>, %arg5: memref<1x128xf32, #tpu.memory_space<vmem>>, %arg6: memref<128x128xbf16, #tpu.memory_space<vmem>>, %arg7: memref<1x128xf32, #tpu.memory_space<vmem>>, %arg8: memref<1x16x16x128xbf16, #tpu.memory_space<vmem>>, %arg9: memref<320x128xbf16, #tpu.memory_space<vmem>>) attributes {dimension_semantics = [#tpu.dimension_semantics<parallel>], iteration_bounds = array<i64: 2>, scalar_prefetch = 0 : i64, scratch_operands = 1 : i64, tpu.core_type = #tpu.core_type<tc>, window_params = [{transform_indices = @transform_0, window_bounds = array<i64: 1, 16, 16, 128>}, {pipeline_mode = #tpu.pipeline_mode<synchronous>, transform_indices = @transform_1, window_bounds = array<i64: 128, 128>}, {pipeline_mode = #tpu.pipeline_mode<synchronous>, transform_indices = @transform_2, window_bounds = array<i64: 1, 128>}, {pipeline_mode = #tpu.pipeline_mode<synchronous>, transform_indices = @transform_3, window_bounds = array<i64: 9, 128, 128>}, {pipeline_mode = #tpu.pipeline_mode<synchronous>, transform_indices = @transform_4, window_bounds = array<i64: 1, 128>}, {pipeline_mode = #tpu.pipeline_mode<synchronous>, transform_indices = @transform_5, window_bounds = array<i64: 128, 128>}, {pipeline_mode = #tpu.pipeline_mode<synchronous>, transform_indices = @transform_6, window_bounds = array<i64: 1, 128>}, {transform_indices = @transform_7, window_bounds = array<i64: 1, 16, 16, 128>}]} {
    %cst = arith.constant 0.000000e+00 : bf16
    %0 = vector.broadcast %cst : bf16 to vector<32x128xbf16>
    %c0 = arith.constant 0 : index
    %c0_0 = arith.constant 0 : index
    %1 = vector.load %arg9[%c0, %c0_0] : memref<320x128xbf16, #tpu.memory_space<vmem>>, vector<32x128xbf16>
    tpu.vector_store %arg9[%c0, %c0_0], %0 {strides = array<i32>} : memref<320x128xbf16, #tpu.memory_space<vmem>>, vector<32x128xbf16>,
    %c288 = arith.constant 288 : index
    %c0_1 = arith.constant 0 : index
    %2 = vector.load %arg9[%c288, %c0_1] : memref<320x128xbf16, #tpu.memory_space<vmem>>, vector<32x128xbf16>
    tpu.vector_store %arg9[%c288, %c0_1], %0 {strides = array<i32>} : memref<320x128xbf16, #tpu.memory_space<vmem>>, vector<32x128xbf16>,
    %c0_2 = arith.constant 0 : index
    %c0_3 = arith.constant 0 : index
    %c0_4 = arith.constant 0 : index
    %c0_5 = arith.constant 0 : index
    %3 = vector.load %arg1[%c0_2, %c0_3, %c0_4, %c0_5] : memref<1x16x16x128xbf16, #tpu.memory_space<vmem>>, vector<1x8x16x128xbf16>
    %4 = vector.shape_cast %3 : vector<1x8x16x128xbf16> to vector<8x16x128xbf16>
    %5 = vector.shape_cast %4 : vector<8x16x128xbf16> to vector<128x128xbf16>
    %c0_6 = arith.constant 0 : index
    %c0_7 = arith.constant 0 : index
    %6 = vector.load %arg2[%c0_6, %c0_7] : memref<128x128xbf16, #tpu.memory_space<vmem>>, vector<128x128xbf16>
    %cst_8 = arith.constant dense<0.000000e+00> : vector<128x128xf32>
    %7 = tpu.matmul %5, %6, %cst_8 {dimension_numbers = #tpu.dot_dimension_numbers<[1], [0], [0], [1], [0, 0, 1, 1], [], []>} : vector<128x128xbf16>, vector<128x128xbf16>, vector<128x128xf32> -> vector<128x128xf32>
    %c0_9 = arith.constant 0 : index
    %c0_10 = arith.constant 0 : index
    %8 = vector.load %arg3[%c0_9, %c0_10] : memref<1x128xf32, #tpu.memory_space<vmem>>, vector<1x128xf32>
    %9 = vector.broadcast %8 : vector<1x128xf32> to vector<128x128xf32>
    %10 = arith.addf %7, %9 : vector<128x128xf32>
    %cst_11 = arith.constant 0.000000e+00 : f32
    %11 = vector.broadcast %cst_11 : f32 to vector<128x128xf32>
    %12 = arith.maximumf %10, %11 : vector<128x128xf32>
    %13 = arith.truncf %12 : vector<128x128xf32> to vector<128x128xbf16>
    %c32 = arith.constant 32 : index
    %c0_12 = arith.constant 0 : index
    %14 = vector.load %arg9[%c32, %c0_12] : memref<320x128xbf16, #tpu.memory_space<vmem>>, vector<128x128xbf16>
    tpu.vector_store %arg9[%c32, %c0_12], %13 {strides = array<i32>} : memref<320x128xbf16, #tpu.memory_space<vmem>>, vector<128x128xbf16>,
    %c0_13 = arith.constant 0 : index
    %c8 = arith.constant 8 : index
    %c0_14 = arith.constant 0 : index
    %c0_15 = arith.constant 0 : index
    %15 = vector.load %arg1[%c0_13, %c8, %c0_14, %c0_15] : memref<1x16x16x128xbf16, #tpu.memory_space<vmem>>, vector<1x8x16x128xbf16>
    %16 = vector.shape_cast %15 : vector<1x8x16x128xbf16> to vector<8x16x128xbf16>
    %17 = vector.shape_cast %16 : vector<8x16x128xbf16> to vector<128x128xbf16>
    %c0_16 = arith.constant 0 : index
    %c0_17 = arith.constant 0 : index
    %18 = vector.load %arg2[%c0_16, %c0_17] : memref<128x128xbf16, #tpu.memory_space<vmem>>, vector<128x128xbf16>
    %cst_18 = arith.constant dense<0.000000e+00> : vector<128x128xf32>
    %19 = tpu.matmul %17, %18, %cst_18 {dimension_numbers = #tpu.dot_dimension_numbers<[1], [0], [0], [1], [0, 0, 1, 1], [], []>} : vector<128x128xbf16>, vector<128x128xbf16>, vector<128x128xf32> -> vector<128x128xf32>
    %c0_19 = arith.constant 0 : index
    %c0_20 = arith.constant 0 : index
    %20 = vector.load %arg3[%c0_19, %c0_20] : memref<1x128xf32, #tpu.memory_space<vmem>>, vector<1x128xf32>
    %21 = vector.broadcast %20 : vector<1x128xf32> to vector<128x128xf32>
    %22 = arith.addf %19, %21 : vector<128x128xf32>
    %cst_21 = arith.constant 0.000000e+00 : f32
    %23 = vector.broadcast %cst_21 : f32 to vector<128x128xf32>
    %24 = arith.maximumf %22, %23 : vector<128x128xf32>
    %25 = arith.truncf %24 : vector<128x128xf32> to vector<128x128xbf16>
    %c160 = arith.constant 160 : index
    %c0_22 = arith.constant 0 : index
    %26 = vector.load %arg9[%c160, %c0_22] : memref<320x128xbf16, #tpu.memory_space<vmem>>, vector<128x128xbf16>
    tpu.vector_store %arg9[%c160, %c0_22], %25 {strides = array<i32>} : memref<320x128xbf16, #tpu.memory_space<vmem>>, vector<128x128xbf16>,
    %27 = tpu.iota {dimensions = array<i32: 0>} : vector<128x1xi32>
    %c16_i32 = arith.constant 16 : i32
    %c0_i32 = arith.constant 0 : i32
    %28 = arith.cmpi eq, %c16_i32, %c0_i32 : i32
    %c1_i32 = arith.constant 1 : i32
    %29 = arith.select %28, %c1_i32, %c16_i32 : i32
    %30 = vector.broadcast %29 : i32 to vector<128x1xi32>
    %31 = arith.remsi %27, %30 : vector<128x1xi32>
    %c0_i32_23 = arith.constant 0 : i32
    %32 = vector.broadcast %c0_i32_23 : i32 to vector<128x1xi32>
    %33 = arith.cmpi ne, %31, %32 : vector<128x1xi32>
    %c0_i32_24 = arith.constant 0 : i32
    %34 = vector.broadcast %c0_i32_24 : i32 to vector<128x1xi32>
    %35 = arith.cmpi slt, %31, %34 : vector<128x1xi32>
    %c0_i32_25 = arith.constant 0 : i32
    %36 = arith.cmpi slt, %29, %c0_i32_25 : i32
    %37 = vector.broadcast %36 : i1 to vector<128x1xi1>
    %38 = vector.broadcast %37 : vector<128x1xi1> to vector<128x1xi1>
    %39 = arith.xori %35, %38 : vector<128x1xi1>
    %40 = arith.andi %39, %33 : vector<128x1xi1>
    %41 = vector.broadcast %29 : i32 to vector<128x1xi32>
    %42 = arith.addi %31, %41 : vector<128x1xi32>
    %43 = arith.select %40, %42, %31 : vector<128x1xi1>, vector<128x1xi32>
    %c1_i32_26 = arith.constant 1 : i32
    %44 = vector.broadcast %c1_i32_26 : i32 to vector<128x1xi32>
    %45 = arith.cmpi sge, %43, %44 : vector<128x1xi32>
    %c15_i32 = arith.constant 15 : i32
    %46 = vector.broadcast %c15_i32 : i32 to vector<128x1xi32>
    %47 = arith.cmpi slt, %43, %46 : vector<128x1xi32>
    %c15 = arith.constant 15 : index
    %c0_27 = arith.constant 0 : index
    %48 = vector.load %arg9[%c15, %c0_27] : memref<320x128xbf16, #tpu.memory_space<vmem>>, vector<128x128xbf16>
    %cst_28 = arith.constant 0.000000e+00 : bf16
    %49 = vector.broadcast %cst_28 : bf16 to vector<128x128xbf16>
    %50 = vector.shape_cast %45 : vector<128x1xi1> to vector<128x1xi1>
    %51 = vector.broadcast %50 : vector<128x1xi1> to vector<128x128xi1>
    %52 = arith.select %51, %48, %49 : vector<128x128xi1>, vector<128x128xbf16>
    %c0_29 = arith.constant 0 : index
    %c0_30 = arith.constant 0 : index
    %c0_31 = arith.constant 0 : index
    %53 = vector.load %arg4[%c0_29, %c0_30, %c0_31] : memref<9x128x128xbf16, #tpu.memory_space<vmem>>, vector<1x128x128xbf16>
    %54 = vector.shape_cast %53 : vector<1x128x128xbf16> to vector<128x128xbf16>
    %cst_32 = arith.constant dense<0.000000e+00> : vector<128x128xf32>
    %55 = tpu.matmul %52, %54, %cst_32 {dimension_numbers = #tpu.dot_dimension_numbers<[1], [0], [0], [1], [0, 0, 1, 1], [], []>} : vector<128x128xbf16>, vector<128x128xbf16>, vector<128x128xf32> -> vector<128x128xf32>
    %c16 = arith.constant 16 : index
    %c0_33 = arith.constant 0 : index
    %56 = vector.load %arg9[%c16, %c0_33] : memref<320x128xbf16, #tpu.memory_space<vmem>>, vector<128x128xbf16>
    %c1 = arith.constant 1 : index
    %c0_34 = arith.constant 0 : index
    %c0_35 = arith.constant 0 : index
    %57 = vector.load %arg4[%c1, %c0_34, %c0_35] : memref<9x128x128xbf16, #tpu.memory_space<vmem>>, vector<1x128x128xbf16>
    %58 = vector.shape_cast %57 : vector<1x128x128xbf16> to vector<128x128xbf16>
    %cst_36 = arith.constant dense<0.000000e+00> : vector<128x128xf32>
    %59 = tpu.matmul %56, %58, %cst_36 {dimension_numbers = #tpu.dot_dimension_numbers<[1], [0], [0], [1], [0, 0, 1, 1], [], []>} : vector<128x128xbf16>, vector<128x128xbf16>, vector<128x128xf32> -> vector<128x128xf32>
    %60 = arith.addf %55, %59 : vector<128x128xf32>
    %c17 = arith.constant 17 : index
    %c0_37 = arith.constant 0 : index
    %61 = vector.load %arg9[%c17, %c0_37] : memref<320x128xbf16, #tpu.memory_space<vmem>>, vector<128x128xbf16>
    %cst_38 = arith.constant 0.000000e+00 : bf16
    %62 = vector.broadcast %cst_38 : bf16 to vector<128x128xbf16>
    %63 = vector.shape_cast %47 : vector<128x1xi1> to vector<128x1xi1>
    %64 = vector.broadcast %63 : vector<128x1xi1> to vector<128x128xi1>
    %65 = arith.select %64, %61, %62 : vector<128x128xi1>, vector<128x128xbf16>
    %c2 = arith.constant 2 : index
    %c0_39 = arith.constant 0 : index
    %c0_40 = arith.constant 0 : index
    %66 = vector.load %arg4[%c2, %c0_39, %c0_40] : memref<9x128x128xbf16, #tpu.memory_space<vmem>>, vector<1x128x128xbf16>
    %67 = vector.shape_cast %66 : vector<1x128x128xbf16> to vector<128x128xbf16>
    %cst_41 = arith.constant dense<0.000000e+00> : vector<128x128xf32>
    %68 = tpu.matmul %65, %67, %cst_41 {dimension_numbers = #tpu.dot_dimension_numbers<[1], [0], [0], [1], [0, 0, 1, 1], [], []>} : vector<128x128xbf16>, vector<128x128xbf16>, vector<128x128xf32> -> vector<128x128xf32>
    %69 = arith.addf %60, %68 : vector<128x128xf32>
    %c31 = arith.constant 31 : index
    %c0_42 = arith.constant 0 : index
    %70 = vector.load %arg9[%c31, %c0_42] : memref<320x128xbf16, #tpu.memory_space<vmem>>, vector<128x128xbf16>
    %cst_43 = arith.constant 0.000000e+00 : bf16
    %71 = vector.broadcast %cst_43 : bf16 to vector<128x128xbf16>
    %72 = vector.shape_cast %45 : vector<128x1xi1> to vector<128x1xi1>
    %73 = vector.broadcast %72 : vector<128x1xi1> to vector<128x128xi1>
    %74 = arith.select %73, %70, %71 : vector<128x128xi1>, vector<128x128xbf16>
    %c3 = arith.constant 3 : index
    %c0_44 = arith.constant 0 : index
    %c0_45 = arith.constant 0 : index
    %75 = vector.load %arg4[%c3, %c0_44, %c0_45] : memref<9x128x128xbf16, #tpu.memory_space<vmem>>, vector<1x128x128xbf16>
    %76 = vector.shape_cast %75 : vector<1x128x128xbf16> to vector<128x128xbf16>
    %cst_46 = arith.constant dense<0.000000e+00> : vector<128x128xf32>
    %77 = tpu.matmul %74, %76, %cst_46 {dimension_numbers = #tpu.dot_dimension_numbers<[1], [0], [0], [1], [0, 0, 1, 1], [], []>} : vector<128x128xbf16>, vector<128x128xbf16>, vector<128x128xf32> -> vector<128x128xf32>
    %78 = arith.addf %69, %77 : vector<128x128xf32>
    %c32_47 = arith.constant 32 : index
    %c0_48 = arith.constant 0 : index
    %79 = vector.load %arg9[%c32_47, %c0_48] : memref<320x128xbf16, #tpu.memory_space<vmem>>, vector<128x128xbf16>
    %c4 = arith.constant 4 : index
    %c0_49 = arith.constant 0 : index
    %c0_50 = arith.constant 0 : index
    %80 = vector.load %arg4[%c4, %c0_49, %c0_50] : memref<9x128x128xbf16, #tpu.memory_space<vmem>>, vector<1x128x128xbf16>
    %81 = vector.shape_cast %80 : vector<1x128x128xbf16> to vector<128x128xbf16>
    %cst_51 = arith.constant dense<0.000000e+00> : vector<128x128xf32>
    %82 = tpu.matmul %79, %81, %cst_51 {dimension_numbers = #tpu.dot_dimension_numbers<[1], [0], [0], [1], [0, 0, 1, 1], [], []>} : vector<128x128xbf16>, vector<128x128xbf16>, vector<128x128xf32> -> vector<128x128xf32>
    %83 = arith.addf %78, %82 : vector<128x128xf32>
    %c33 = arith.constant 33 : index
    %c0_52 = arith.constant 0 : index
    %84 = vector.load %arg9[%c33, %c0_52] : memref<320x128xbf16, #tpu.memory_space<vmem>>, vector<128x128xbf16>
    %cst_53 = arith.constant 0.000000e+00 : bf16
    %85 = vector.broadcast %cst_53 : bf16 to vector<128x128xbf16>
    %86 = vector.shape_cast %47 : vector<128x1xi1> to vector<128x1xi1>
    %87 = vector.broadcast %86 : vector<128x1xi1> to vector<128x128xi1>
    %88 = arith.select %87, %84, %85 : vector<128x128xi1>, vector<128x128xbf16>
    %c5 = arith.constant 5 : index
    %c0_54 = arith.constant 0 : index
    %c0_55 = arith.constant 0 : index
    %89 = vector.load %arg4[%c5, %c0_54, %c0_55] : memref<9x128x128xbf16, #tpu.memory_space<vmem>>, vector<1x128x128xbf16>
    %90 = vector.shape_cast %89 : vector<1x128x128xbf16> to vector<128x128xbf16>
    %cst_56 = arith.constant dense<0.000000e+00> : vector<128x128xf32>
    %91 = tpu.matmul %88, %90, %cst_56 {dimension_numbers = #tpu.dot_dimension_numbers<[1], [0], [0], [1], [0, 0, 1, 1], [], []>} : vector<128x128xbf16>, vector<128x128xbf16>, vector<128x128xf32> -> vector<128x128xf32>
    %92 = arith.addf %83, %91 : vector<128x128xf32>
    %c47 = arith.constant 47 : index
    %c0_57 = arith.constant 0 : index
    %93 = vector.load %arg9[%c47, %c0_57] : memref<320x128xbf16, #tpu.memory_space<vmem>>, vector<128x128xbf16>
    %cst_58 = arith.constant 0.000000e+00 : bf16
    %94 = vector.broadcast %cst_58 : bf16 to vector<128x128xbf16>
    %95 = vector.shape_cast %45 : vector<128x1xi1> to vector<128x1xi1>
    %96 = vector.broadcast %95 : vector<128x1xi1> to vector<128x128xi1>
    %97 = arith.select %96, %93, %94 : vector<128x128xi1>, vector<128x128xbf16>
    %c6 = arith.constant 6 : index
    %c0_59 = arith.constant 0 : index
    %c0_60 = arith.constant 0 : index
    %98 = vector.load %arg4[%c6, %c0_59, %c0_60] : memref<9x128x128xbf16, #tpu.memory_space<vmem>>, vector<1x128x128xbf16>
    %99 = vector.shape_cast %98 : vector<1x128x128xbf16> to vector<128x128xbf16>
    %cst_61 = arith.constant dense<0.000000e+00> : vector<128x128xf32>
    %100 = tpu.matmul %97, %99, %cst_61 {dimension_numbers = #tpu.dot_dimension_numbers<[1], [0], [0], [1], [0, 0, 1, 1], [], []>} : vector<128x128xbf16>, vector<128x128xbf16>, vector<128x128xf32> -> vector<128x128xf32>
    %101 = arith.addf %92, %100 : vector<128x128xf32>
    %c48 = arith.constant 48 : index
    %c0_62 = arith.constant 0 : index
    %102 = vector.load %arg9[%c48, %c0_62] : memref<320x128xbf16, #tpu.memory_space<vmem>>, vector<128x128xbf16>
    %c7 = arith.constant 7 : index
    %c0_63 = arith.constant 0 : index
    %c0_64 = arith.constant 0 : index
    %103 = vector.load %arg4[%c7, %c0_63, %c0_64] : memref<9x128x128xbf16, #tpu.memory_space<vmem>>, vector<1x128x128xbf16>
    %104 = vector.shape_cast %103 : vector<1x128x128xbf16> to vector<128x128xbf16>
    %cst_65 = arith.constant dense<0.000000e+00> : vector<128x128xf32>
    %105 = tpu.matmul %102, %104, %cst_65 {dimension_numbers = #tpu.dot_dimension_numbers<[1], [0], [0], [1], [0, 0, 1, 1], [], []>} : vector<128x128xbf16>, vector<128x128xbf16>, vector<128x128xf32> -> vector<128x128xf32>
    %106 = arith.addf %101, %105 : vector<128x128xf32>
    %c49 = arith.constant 49 : index
    %c0_66 = arith.constant 0 : index
    %107 = vector.load %arg9[%c49, %c0_66] : memref<320x128xbf16, #tpu.memory_space<vmem>>, vector<128x128xbf16>
    %cst_67 = arith.constant 0.000000e+00 : bf16
    %108 = vector.broadcast %cst_67 : bf16 to vector<128x128xbf16>
    %109 = vector.shape_cast %47 : vector<128x1xi1> to vector<128x1xi1>
    %110 = vector.broadcast %109 : vector<128x1xi1> to vector<128x128xi1>
    %111 = arith.select %110, %107, %108 : vector<128x128xi1>, vector<128x128xbf16>
    %c8_68 = arith.constant 8 : index
    %c0_69 = arith.constant 0 : index
    %c0_70 = arith.constant 0 : index
    %112 = vector.load %arg4[%c8_68, %c0_69, %c0_70] : memref<9x128x128xbf16, #tpu.memory_space<vmem>>, vector<1x128x128xbf16>
    %113 = vector.shape_cast %112 : vector<1x128x128xbf16> to vector<128x128xbf16>
    %cst_71 = arith.constant dense<0.000000e+00> : vector<128x128xf32>
    %114 = tpu.matmul %111, %113, %cst_71 {dimension_numbers = #tpu.dot_dimension_numbers<[1], [0], [0], [1], [0, 0, 1, 1], [], []>} : vector<128x128xbf16>, vector<128x128xbf16>, vector<128x128xf32> -> vector<128x128xf32>
    %115 = arith.addf %106, %114 : vector<128x128xf32>
    %c0_72 = arith.constant 0 : index
    %c0_73 = arith.constant 0 : index
    %116 = vector.load %arg5[%c0_72, %c0_73] : memref<1x128xf32, #tpu.memory_space<vmem>>, vector<1x128xf32>
    %117 = vector.broadcast %116 : vector<1x128xf32> to vector<128x128xf32>
    %118 = arith.addf %115, %117 : vector<128x128xf32>
    %cst_74 = arith.constant 0.000000e+00 : f32
    %119 = vector.broadcast %cst_74 : f32 to vector<128x128xf32>
    %120 = arith.maximumf %118, %119 : vector<128x128xf32>
    %121 = arith.truncf %120 : vector<128x128xf32> to vector<128x128xbf16>
    %c0_75 = arith.constant 0 : index
    %c0_76 = arith.constant 0 : index
    %122 = vector.load %arg6[%c0_75, %c0_76] : memref<128x128xbf16, #tpu.memory_space<vmem>>, vector<128x128xbf16>
    %cst_77 = arith.constant dense<0.000000e+00> : vector<128x128xf32>
    %123 = tpu.matmul %121, %122, %cst_77 {dimension_numbers = #tpu.dot_dimension_numbers<[1], [0], [0], [1], [0, 0, 1, 1], [], []>} : vector<128x128xbf16>, vector<128x128xbf16>, vector<128x128xf32> -> vector<128x128xf32>
    %c0_78 = arith.constant 0 : index
    %c0_79 = arith.constant 0 : index
    %c0_80 = arith.constant 0 : index
    %c0_81 = arith.constant 0 : index
    %124 = vector.load %arg1[%c0_78, %c0_79, %c0_80, %c0_81] : memref<1x16x16x128xbf16, #tpu.memory_space<vmem>>, vector<1x8x16x128xbf16>
    %125 = vector.shape_cast %124 : vector<1x8x16x128xbf16> to vector<8x16x128xbf16>
    %126 = vector.shape_cast %125 : vector<8x16x128xbf16> to vector<128x128xbf16>
    %c0_82 = arith.constant 0 : index
    %c0_83 = arith.constant 0 : index
    %127 = vector.load %arg7[%c0_82, %c0_83] : memref<1x128xf32, #tpu.memory_space<vmem>>, vector<1x128xf32>
    %128 = vector.broadcast %127 : vector<1x128xf32> to vector<128x128xf32>
    %129 = arith.addf %123, %128 : vector<128x128xf32>
    %130 = arith.extf %126 : vector<128x128xbf16> to vector<128x128xf32>
    %131 = arith.addf %129, %130 : vector<128x128xf32>
    %cst_84 = arith.constant 0.000000e+00 : f32
    %132 = vector.broadcast %cst_84 : f32 to vector<128x128xf32>
    %133 = arith.maximumf %131, %132 : vector<128x128xf32>
    %134 = arith.truncf %133 : vector<128x128xf32> to vector<128x128xbf16>
    %135 = vector.shape_cast %134 : vector<128x128xbf16> to vector<8x16x128xbf16>
    %c0_85 = arith.constant 0 : index
    %c0_86 = arith.constant 0 : index
    %c0_87 = arith.constant 0 : index
    %c0_88 = arith.constant 0 : index
    %136 = vector.load %arg8[%c0_85, %c0_86, %c0_87, %c0_88] : memref<1x16x16x128xbf16, #tpu.memory_space<vmem>>, vector<1x8x16x128xbf16>
    %137 = vector.shape_cast %136 : vector<1x8x16x128xbf16> to vector<8x16x128xbf16>
    %138 = vector.shape_cast %135 : vector<8x16x128xbf16> to vector<1x8x16x128xbf16>
    tpu.vector_store %arg8[%c0_85, %c0_86, %c0_87, %c0_88], %138 {strides = array<i32>} : memref<1x16x16x128xbf16, #tpu.memory_space<vmem>>, vector<1x8x16x128xbf16>,
    %c143 = arith.constant 143 : index
    %c0_89 = arith.constant 0 : index
    %139 = vector.load %arg9[%c143, %c0_89] : memref<320x128xbf16, #tpu.memory_space<vmem>>, vector<128x128xbf16>
    %cst_90 = arith.constant 0.000000e+00 : bf16
    %140 = vector.broadcast %cst_90 : bf16 to vector<128x128xbf16>
    %141 = vector.shape_cast %45 : vector<128x1xi1> to vector<128x1xi1>
    %142 = vector.broadcast %141 : vector<128x1xi1> to vector<128x128xi1>
    %143 = arith.select %142, %139, %140 : vector<128x128xi1>, vector<128x128xbf16>
    %c0_91 = arith.constant 0 : index
    %c0_92 = arith.constant 0 : index
    %c0_93 = arith.constant 0 : index
    %144 = vector.load %arg4[%c0_91, %c0_92, %c0_93] : memref<9x128x128xbf16, #tpu.memory_space<vmem>>, vector<1x128x128xbf16>
    %145 = vector.shape_cast %144 : vector<1x128x128xbf16> to vector<128x128xbf16>
    %cst_94 = arith.constant dense<0.000000e+00> : vector<128x128xf32>
    %146 = tpu.matmul %143, %145, %cst_94 {dimension_numbers = #tpu.dot_dimension_numbers<[1], [0], [0], [1], [0, 0, 1, 1], [], []>} : vector<128x128xbf16>, vector<128x128xbf16>, vector<128x128xf32> -> vector<128x128xf32>
    %c144 = arith.constant 144 : index
    %c0_95 = arith.constant 0 : index
    %147 = vector.load %arg9[%c144, %c0_95] : memref<320x128xbf16, #tpu.memory_space<vmem>>, vector<128x128xbf16>
    %c1_96 = arith.constant 1 : index
    %c0_97 = arith.constant 0 : index
    %c0_98 = arith.constant 0 : index
    %148 = vector.load %arg4[%c1_96, %c0_97, %c0_98] : memref<9x128x128xbf16, #tpu.memory_space<vmem>>, vector<1x128x128xbf16>
    %149 = vector.shape_cast %148 : vector<1x128x128xbf16> to vector<128x128xbf16>
    %cst_99 = arith.constant dense<0.000000e+00> : vector<128x128xf32>
    %150 = tpu.matmul %147, %149, %cst_99 {dimension_numbers = #tpu.dot_dimension_numbers<[1], [0], [0], [1], [0, 0, 1, 1], [], []>} : vector<128x128xbf16>, vector<128x128xbf16>, vector<128x128xf32> -> vector<128x128xf32>
    %151 = arith.addf %146, %150 : vector<128x128xf32>
    %c145 = arith.constant 145 : index
    %c0_100 = arith.constant 0 : index
    %152 = vector.load %arg9[%c145, %c0_100] : memref<320x128xbf16, #tpu.memory_space<vmem>>, vector<128x128xbf16>
    %cst_101 = arith.constant 0.000000e+00 : bf16
    %153 = vector.broadcast %cst_101 : bf16 to vector<128x128xbf16>
    %154 = vector.shape_cast %47 : vector<128x1xi1> to vector<128x1xi1>
    %155 = vector.broadcast %154 : vector<128x1xi1> to vector<128x128xi1>
    %156 = arith.select %155, %152, %153 : vector<128x128xi1>, vector<128x128xbf16>
    %c2_102 = arith.constant 2 : index
    %c0_103 = arith.constant 0 : index
    %c0_104 = arith.constant 0 : index
    %157 = vector.load %arg4[%c2_102, %c0_103, %c0_104] : memref<9x128x128xbf16, #tpu.memory_space<vmem>>, vector<1x128x128xbf16>
    %158 = vector.shape_cast %157 : vector<1x128x128xbf16> to vector<128x128xbf16>
    %cst_105 = arith.constant dense<0.000000e+00> : vector<128x128xf32>
    %159 = tpu.matmul %156, %158, %cst_105 {dimension_numbers = #tpu.dot_dimension_numbers<[1], [0], [0], [1], [0, 0, 1, 1], [], []>} : vector<128x128xbf16>, vector<128x128xbf16>, vector<128x128xf32> -> vector<128x128xf32>
    %160 = arith.addf %151, %159 : vector<128x128xf32>
    %c159 = arith.constant 159 : index
    %c0_106 = arith.constant 0 : index
    %161 = vector.load %arg9[%c159, %c0_106] : memref<320x128xbf16, #tpu.memory_space<vmem>>, vector<128x128xbf16>
    %cst_107 = arith.constant 0.000000e+00 : bf16
    %162 = vector.broadcast %cst_107 : bf16 to vector<128x128xbf16>
    %163 = vector.shape_cast %45 : vector<128x1xi1> to vector<128x1xi1>
    %164 = vector.broadcast %163 : vector<128x1xi1> to vector<128x128xi1>
    %165 = arith.select %164, %161, %162 : vector<128x128xi1>, vector<128x128xbf16>
    %c3_108 = arith.constant 3 : index
    %c0_109 = arith.constant 0 : index
    %c0_110 = arith.constant 0 : index
    %166 = vector.load %arg4[%c3_108, %c0_109, %c0_110] : memref<9x128x128xbf16, #tpu.memory_space<vmem>>, vector<1x128x128xbf16>
    %167 = vector.shape_cast %166 : vector<1x128x128xbf16> to vector<128x128xbf16>
    %cst_111 = arith.constant dense<0.000000e+00> : vector<128x128xf32>
    %168 = tpu.matmul %165, %167, %cst_111 {dimension_numbers = #tpu.dot_dimension_numbers<[1], [0], [0], [1], [0, 0, 1, 1], [], []>} : vector<128x128xbf16>, vector<128x128xbf16>, vector<128x128xf32> -> vector<128x128xf32>
    %169 = arith.addf %160, %168 : vector<128x128xf32>
    %c160_112 = arith.constant 160 : index
    %c0_113 = arith.constant 0 : index
    %170 = vector.load %arg9[%c160_112, %c0_113] : memref<320x128xbf16, #tpu.memory_space<vmem>>, vector<128x128xbf16>
    %c4_114 = arith.constant 4 : index
    %c0_115 = arith.constant 0 : index
    %c0_116 = arith.constant 0 : index
    %171 = vector.load %arg4[%c4_114, %c0_115, %c0_116] : memref<9x128x128xbf16, #tpu.memory_space<vmem>>, vector<1x128x128xbf16>
    %172 = vector.shape_cast %171 : vector<1x128x128xbf16> to vector<128x128xbf16>
    %cst_117 = arith.constant dense<0.000000e+00> : vector<128x128xf32>
    %173 = tpu.matmul %170, %172, %cst_117 {dimension_numbers = #tpu.dot_dimension_numbers<[1], [0], [0], [1], [0, 0, 1, 1], [], []>} : vector<128x128xbf16>, vector<128x128xbf16>, vector<128x128xf32> -> vector<128x128xf32>
    %174 = arith.addf %169, %173 : vector<128x128xf32>
    %c161 = arith.constant 161 : index
    %c0_118 = arith.constant 0 : index
    %175 = vector.load %arg9[%c161, %c0_118] : memref<320x128xbf16, #tpu.memory_space<vmem>>, vector<128x128xbf16>
    %cst_119 = arith.constant 0.000000e+00 : bf16
    %176 = vector.broadcast %cst_119 : bf16 to vector<128x128xbf16>
    %177 = vector.shape_cast %47 : vector<128x1xi1> to vector<128x1xi1>
    %178 = vector.broadcast %177 : vector<128x1xi1> to vector<128x128xi1>
    %179 = arith.select %178, %175, %176 : vector<128x128xi1>, vector<128x128xbf16>
    %c5_120 = arith.constant 5 : index
    %c0_121 = arith.constant 0 : index
    %c0_122 = arith.constant 0 : index
    %180 = vector.load %arg4[%c5_120, %c0_121, %c0_122] : memref<9x128x128xbf16, #tpu.memory_space<vmem>>, vector<1x128x128xbf16>
    %181 = vector.shape_cast %180 : vector<1x128x128xbf16> to vector<128x128xbf16>
    %cst_123 = arith.constant dense<0.000000e+00> : vector<128x128xf32>
    %182 = tpu.matmul %179, %181, %cst_123 {dimension_numbers = #tpu.dot_dimension_numbers<[1], [0], [0], [1], [0, 0, 1, 1], [], []>} : vector<128x128xbf16>, vector<128x128xbf16>, vector<128x128xf32> -> vector<128x128xf32>
    %183 = arith.addf %174, %182 : vector<128x128xf32>
    %c175 = arith.constant 175 : index
    %c0_124 = arith.constant 0 : index
    %184 = vector.load %arg9[%c175, %c0_124] : memref<320x128xbf16, #tpu.memory_space<vmem>>, vector<128x128xbf16>
    %cst_125 = arith.constant 0.000000e+00 : bf16
    %185 = vector.broadcast %cst_125 : bf16 to vector<128x128xbf16>
    %186 = vector.shape_cast %45 : vector<128x1xi1> to vector<128x1xi1>
    %187 = vector.broadcast %186 : vector<128x1xi1> to vector<128x128xi1>
    %188 = arith.select %187, %184, %185 : vector<128x128xi1>, vector<128x128xbf16>
    %c6_126 = arith.constant 6 : index
    %c0_127 = arith.constant 0 : index
    %c0_128 = arith.constant 0 : index
    %189 = vector.load %arg4[%c6_126, %c0_127, %c0_128] : memref<9x128x128xbf16, #tpu.memory_space<vmem>>, vector<1x128x128xbf16>
    %190 = vector.shape_cast %189 : vector<1x128x128xbf16> to vector<128x128xbf16>
    %cst_129 = arith.constant dense<0.000000e+00> : vector<128x128xf32>
    %191 = tpu.matmul %188, %190, %cst_129 {dimension_numbers = #tpu.dot_dimension_numbers<[1], [0], [0], [1], [0, 0, 1, 1], [], []>} : vector<128x128xbf16>, vector<128x128xbf16>, vector<128x128xf32> -> vector<128x128xf32>
    %192 = arith.addf %183, %191 : vector<128x128xf32>
    %c176 = arith.constant 176 : index
    %c0_130 = arith.constant 0 : index
    %193 = vector.load %arg9[%c176, %c0_130] : memref<320x128xbf16, #tpu.memory_space<vmem>>, vector<128x128xbf16>
    %c7_131 = arith.constant 7 : index
    %c0_132 = arith.constant 0 : index
    %c0_133 = arith.constant 0 : index
    %194 = vector.load %arg4[%c7_131, %c0_132, %c0_133] : memref<9x128x128xbf16, #tpu.memory_space<vmem>>, vector<1x128x128xbf16>
    %195 = vector.shape_cast %194 : vector<1x128x128xbf16> to vector<128x128xbf16>
    %cst_134 = arith.constant dense<0.000000e+00> : vector<128x128xf32>
    %196 = tpu.matmul %193, %195, %cst_134 {dimension_numbers = #tpu.dot_dimension_numbers<[1], [0], [0], [1], [0, 0, 1, 1], [], []>} : vector<128x128xbf16>, vector<128x128xbf16>, vector<128x128xf32> -> vector<128x128xf32>
    %197 = arith.addf %192, %196 : vector<128x128xf32>
    %c177 = arith.constant 177 : index
    %c0_135 = arith.constant 0 : index
    %198 = vector.load %arg9[%c177, %c0_135] : memref<320x128xbf16, #tpu.memory_space<vmem>>, vector<128x128xbf16>
    %cst_136 = arith.constant 0.000000e+00 : bf16
    %199 = vector.broadcast %cst_136 : bf16 to vector<128x128xbf16>
    %200 = vector.shape_cast %47 : vector<128x1xi1> to vector<128x1xi1>
    %201 = vector.broadcast %200 : vector<128x1xi1> to vector<128x128xi1>
    %202 = arith.select %201, %198, %199 : vector<128x128xi1>, vector<128x128xbf16>
    %c8_137 = arith.constant 8 : index
    %c0_138 = arith.constant 0 : index
    %c0_139 = arith.constant 0 : index
    %203 = vector.load %arg4[%c8_137, %c0_138, %c0_139] : memref<9x128x128xbf16, #tpu.memory_space<vmem>>, vector<1x128x128xbf16>
    %204 = vector.shape_cast %203 : vector<1x128x128xbf16> to vector<128x128xbf16>
    %cst_140 = arith.constant dense<0.000000e+00> : vector<128x128xf32>
    %205 = tpu.matmul %202, %204, %cst_140 {dimension_numbers = #tpu.dot_dimension_numbers<[1], [0], [0], [1], [0, 0, 1, 1], [], []>} : vector<128x128xbf16>, vector<128x128xbf16>, vector<128x128xf32> -> vector<128x128xf32>
    %206 = arith.addf %197, %205 : vector<128x128xf32>
    %c0_141 = arith.constant 0 : index
    %c0_142 = arith.constant 0 : index
    %207 = vector.load %arg5[%c0_141, %c0_142] : memref<1x128xf32, #tpu.memory_space<vmem>>, vector<1x128xf32>
    %208 = vector.broadcast %207 : vector<1x128xf32> to vector<128x128xf32>
    %209 = arith.addf %206, %208 : vector<128x128xf32>
    %cst_143 = arith.constant 0.000000e+00 : f32
    %210 = vector.broadcast %cst_143 : f32 to vector<128x128xf32>
    %211 = arith.maximumf %209, %210 : vector<128x128xf32>
    %212 = arith.truncf %211 : vector<128x128xf32> to vector<128x128xbf16>
    %c0_144 = arith.constant 0 : index
    %c0_145 = arith.constant 0 : index
    %213 = vector.load %arg6[%c0_144, %c0_145] : memref<128x128xbf16, #tpu.memory_space<vmem>>, vector<128x128xbf16>
    %cst_146 = arith.constant dense<0.000000e+00> : vector<128x128xf32>
    %214 = tpu.matmul %212, %213, %cst_146 {dimension_numbers = #tpu.dot_dimension_numbers<[1], [0], [0], [1], [0, 0, 1, 1], [], []>} : vector<128x128xbf16>, vector<128x128xbf16>, vector<128x128xf32> -> vector<128x128xf32>
    %c0_147 = arith.constant 0 : index
    %c8_148 = arith.constant 8 : index
    %c0_149 = arith.constant 0 : index
    %c0_150 = arith.constant 0 : index
    %215 = vector.load %arg1[%c0_147, %c8_148, %c0_149, %c0_150] : memref<1x16x16x128xbf16, #tpu.memory_space<vmem>>, vector<1x8x16x128xbf16>
    %216 = vector.shape_cast %215 : vector<1x8x16x128xbf16> to vector<8x16x128xbf16>
    %217 = vector.shape_cast %216 : vector<8x16x128xbf16> to vector<128x128xbf16>
    %c0_151 = arith.constant 0 : index
    %c0_152 = arith.constant 0 : index
    %218 = vector.load %arg7[%c0_151, %c0_152] : memref<1x128xf32, #tpu.memory_space<vmem>>, vector<1x128xf32>
    %219 = vector.broadcast %218 : vector<1x128xf32> to vector<128x128xf32>
    %220 = arith.addf %214, %219 : vector<128x128xf32>
    %221 = arith.extf %217 : vector<128x128xbf16> to vector<128x128xf32>
    %222 = arith.addf %220, %221 : vector<128x128xf32>
    %cst_153 = arith.constant 0.000000e+00 : f32
    %223 = vector.broadcast %cst_153 : f32 to vector<128x128xf32>
    %224 = arith.maximumf %222, %223 : vector<128x128xf32>
    %225 = arith.truncf %224 : vector<128x128xf32> to vector<128x128xbf16>
    %226 = vector.shape_cast %225 : vector<128x128xbf16> to vector<8x16x128xbf16>
    %c0_154 = arith.constant 0 : index
    %c8_155 = arith.constant 8 : index
    %c0_156 = arith.constant 0 : index
    %c0_157 = arith.constant 0 : index
    %227 = vector.load %arg8[%c0_154, %c8_155, %c0_156, %c0_157] : memref<1x16x16x128xbf16, #tpu.memory_space<vmem>>, vector<1x8x16x128xbf16>
    %228 = vector.shape_cast %227 : vector<1x8x16x128xbf16> to vector<8x16x128xbf16>
    %229 = vector.shape_cast %226 : vector<8x16x128xbf16> to vector<1x8x16x128xbf16>
    tpu.vector_store %arg8[%c0_154, %c8_155, %c0_156, %c0_157], %229 {strides = array<i32>} : memref<1x16x16x128xbf16, #tpu.memory_space<vmem>>, vector<1x8x16x128xbf16>,
    return
  }
  func.func @transform_0(%arg0: i32) -> (i32, i32, i32, i32) {
    %c0_i32 = arith.constant 0 : i32
    %c0_i32_0 = arith.constant 0 : i32
    %c0_i32_1 = arith.constant 0 : i32
    %c0_i32_2 = arith.constant 0 : i32
    return %arg0, %c0_i32, %c0_i32_0, %c0_i32_1 : i32, i32, i32, i32
  }
  func.func @transform_1(%arg0: i32) -> (i32, i32) {
    %c0_i32 = arith.constant 0 : i32
    %c0_i32_0 = arith.constant 0 : i32
    %c0_i32_1 = arith.constant 0 : i32
    return %c0_i32, %c0_i32_0 : i32, i32
  }
  func.func @transform_2(%arg0: i32) -> (i32, i32) {
    %c0_i32 = arith.constant 0 : i32
    %c0_i32_0 = arith.constant 0 : i32
    %c0_i32_1 = arith.constant 0 : i32
    return %c0_i32, %c0_i32_0 : i32, i32
  }
  func.func @transform_3(%arg0: i32) -> (i32, i32, i32) {
    %c0_i32 = arith.constant 0 : i32
    %c0_i32_0 = arith.constant 0 : i32
    %c0_i32_1 = arith.constant 0 : i32
    %c0_i32_2 = arith.constant 0 : i32
    return %c0_i32, %c0_i32_0, %c0_i32_1 : i32, i32, i32
  }
  func.func @transform_4(%arg0: i32) -> (i32, i32) {
    %c0_i32 = arith.constant 0 : i32
    %c0_i32_0 = arith.constant 0 : i32
    %c0_i32_1 = arith.constant 0 : i32
    return %c0_i32, %c0_i32_0 : i32, i32
  }
  func.func @transform_5(%arg0: i32) -> (i32, i32) {
    %c0_i32 = arith.constant 0 : i32
    %c0_i32_0 = arith.constant 0 : i32
    %c0_i32_1 = arith.constant 0 : i32
    return %c0_i32, %c0_i32_0 : i32, i32
  }
  func.func @transform_6(%arg0: i32) -> (i32, i32) {
    %c0_i32 = arith.constant 0 : i32
    %c0_i32_0 = arith.constant 0 : i32
    %c0_i32_1 = arith.constant 0 : i32
    return %c0_i32, %c0_i32_0 : i32, i32
  }
  func.func @transform_7(%arg0: i32) -> (i32, i32, i32, i32) {
    %c0_i32 = arith.constant 0 : i32
    %c0_i32_0 = arith.constant 0 : i32
    %c0_i32_1 = arith.constant 0 : i32
    %c0_i32_2 = arith.constant 0 : i32
    return %arg0, %c0_i32, %c0_i32_0, %c0_i32_1 : i32, i32, i32, i32
  }
}

</mosaic_0001>

<bundles_post_ra>
// kernel: tpu_custom_call.1
= control target key start
LH: loop header
LB: loop body
LE: loop exit
PB: predicated region body
PF: predicated region fallthrough
CT: control target
= control target key end

     0   :  { %s11147_s0 = inlined_call_operand.hbm [shape: bf16[2,16,16,128], index: 0, kind: input, shape index: {}]   ;;  %s11148_s1 = inlined_call_operand.hbm [shape: bf16[128,128], index: 1, kind: input, shape index: {}]   ;;  %s11149_s2 = inlined_call_operand.vmem [shape: f32[1,128], index: 2, kind: input, shape index: {}]   ;;  %s11150_s3 = inlined_call_operand.hbm [shape: bf16[9,128,128], index: 3, kind: input, shape index: {}]   ;;  %s11151_s4 = inlined_call_operand.vmem [shape: f32[1,128], index: 4, kind: input, shape index: {}]   ;;  %s11152_s5 = inlined_call_operand.hbm [shape: bf16[128,128], index: 5, kind: input, shape index: {}]   ;;  %s11153_s6 = inlined_call_operand.vmem [shape: f32[1,128], index: 6, kind: input, shape index: {}]   ;;  %s11154_s7 = inlined_call_operand.hbm [shape: bf16[2,16,16,128], index: 7, kind: output, shape index: {}]  }
   0x1   :  { %11298 = sst [smem:[#allocation55_spill]] %s11148_s1 }
   0x2   :  { %12 = vsyncpa [#allocation4], 0 }
   0x3   :  { %14 = vsyncpa [#allocation4 + $0x1], 0 }
   0x4   :  { %15 = vsyncpa [#allocation7], 0 }
   0x5   :  { %16 = vsyncpa [#allocation10], 0 }
   0x6   :  { %17 = vsyncpa [#allocation5], 0 }
   0x7   :  { %19 = vsyncpa [#allocation5 + $0x1], 0  ;;  %s8722_s24 = smov 0   ;;  %s8724_s25 = smov 0  }
   0x8   :  { %s8726_s26 = smov 0   ;;  %s8728_s27 = smov 0  }
   0x9 LB: > { %s8743_s28 = sadd.s32 4294967295, %s8671_s27   ;;  %s6831_s29 = sadd.s32 4294967294, %s8671_s27   ;;  %s8671_s27 = sphi %s8728_s27, %s11730_s27   ;;  %s8667_s26 = sphi %s8726_s26, %s11729_s26   ;;  %s8663_s25 = sphi %s8724_s25, %s11728_s25   ;;  %s8659_s24 = sphi %s8722_s24, %s11727_s24  }
   0xa   : > { %p45_p0 = scmp.ne.s32.totalorder %s8663_s25, %s8659_s24  ;;  %p46_p1 = scmp.eq.s32.totalorder %s8743_s28, 0 }
   0xb   : > { %p195_p2 = scmp.eq.s32.totalorder %s8743_s28, 1  ;;  %p201_p3 = scmp.eq.s32.totalorder %s6831_s29, 1 }
   0xc   : > { %p8752_p4 = por %p46_p1, %p45_p0  ;;  %p6832_p5 = scmp.ge.s32.totalorder %s8671_s27, 1 }
   0xd   : > { %p8757_p6 = por %p201_p3, %p45_p0  ;;  %p208_p7 = scmp.lt.s32.totalorder %s8671_s27, 3 }
   0xe   : > { %s11301_s1 = sld [smem:[#allocation55_spill]]  ;;  %s8673_s13 = smov [#allocation6]  }
   0xf   : > { %p8765_p8 = pnand %p6832_p5, %p208_p7  ;;  %s221_s14 = sshll.u32 %s8673_s13, 4  ;;  %s222_s14 = int_to_ptr.vmem [resolvable:$true] %s221_s14 }
  0x10   : > { %s236_s18 = sshll.u32 %s11150_s3, 4  ;;  %s11155_s19 = smov 64   ;;  %s237_s18 = int_to_ptr.hbm [resolvable:$true] %s236_s18 }
  0x11   : > { %p8403_p9 = pneg %p8765_p8  ;;  %s11156_s20 = smov 4  }
  0x12   : > { %s8676_s21 = smov [#allocation8]   ;;  %s253_s9 = sshll.u32 %s11152_s5, 4  ;;  %s254_s9 = int_to_ptr.hbm [resolvable:$true] %s253_s9 }
  0x13   : > { %p8773_p10 = pnand %p8403_p9, %p46_p1  ;;  %s238_s22 = sshll.u32 %s8676_s21, 4  ;;  %s239_s22 = int_to_ptr.vmem [resolvable:$true] %s238_s22 }
  0x14   : > { %s219_s11 = sshll.u32 %s11301_s1, 4  ;;  %s8677_s10 = smov [#allocation9]   ;;  %s220_s11 = int_to_ptr.hbm [resolvable:$true] %s219_s11 }
  0x15   : > { %8406 = dma.hbm_to_vmem [thread:$0]  (!%p8773_p10), %s220_s11, 1024, %s222_s14, [#allocation7], %s11155_s19, %s11155_s19, %s11156_s20  }
  0x16   : > { %8409 = dma.hbm_to_vmem [thread:$0]  (!%p8773_p10), %s237_s18, 9216, %s239_s22, [#allocation7], %s11155_s19, %s11155_s19, %s11156_s20  }
  0x17   : > { %s255_s11 = sshll.u32 %s8677_s10, 4  ;;  %s8795_s13 = sadd.s32 1, %s8671_s27   ;;  %s256_s11 = int_to_ptr.vmem [resolvable:$true] %s255_s11 }
  0x18   : > { %8412 = dma.hbm_to_vmem [thread:$0]  (!%p8773_p10), %s254_s9, 1024, %s256_s11, [#allocation10], %s11155_s19, %s11155_s19, %s11156_s20  }
  0x19   : > { %s29_s14 = ssub.s32 %s8671_s27, %s8795_s13  ;;  %s32_s16 = sadd.s32 1, %s8667_s26 }
  0x1a   : > { %p30_p12 = scmp.eq.s32.totalorder %s29_s14, 0  ;;  %p39_p13 = scmp.ne.s32.totalorder %s8667_s26, %s8663_s25 }
  0x1b   : > { %p40_p0 = scmp.eq.s32.totalorder %s8671_s27, 0  ;;  %p8424_p5 = scmp.lt.s32.totalorder %s8671_s27, 2 }
  0x1c   : > { %s8809_s17 = scalar_select %p30_p12, %s8667_s26, %s32_s16  }
  0x1d   : > { %p8813_p3 = por %p195_p2, %p39_p13  ;;  %s272_s21 = sand.u32 1, %s8667_s26  }
  0x1e   : > { %s7859_s15 = sshll.u32 %s8671_s27, 7  ;;  %p41_p7 = por %p40_p0, %p39_p13 }
  0x1f   : > { %s6837_s22 = sshll.u32 %s272_s21, 7  ;;  %s281_s9 = scalar_lea.hbm %s11147_s0, %s7859_s15 }
  0x20   : > { %s282_s10 = sshll.u32 %s281_s9, 4  ;;  %s276_s11 = scalar_lea.vmem [#allocation3], %s6837_s22  ;;  %s283_s10 = int_to_ptr.hbm [resolvable:$true] %s282_s10 }
  0x21   : > { %s284_s14 = sshll.u32 %s276_s11, 4  ;;  %p8823_p9 = pnand %p8424_p5, %p41_p7  ;;  %s285_s14 = int_to_ptr.vmem [resolvable:$true] %s284_s14 }
  0x22   : > { %s273_s19 = scalar_lea.sflag [#allocation4], %s272_s21  ;;  %s8567_s20 = sshra.s32 %s283_s10, 4  ;;  %s8568_s20 = int_to_ptr.hbm [resolvable:$true] %s8567_s20 }
  0x23   : > { %s8569_s1 = scalar_lea.hbm %s8568_s20, 128  ;;  %p8571_p10 = pneg %p8823_p9 }
  0x24   : > { %p8570_p2 = scmp.ne.s32.totalorder %s8568_s20, %s8569_s1  ;;  %s8574_s22 = scalar_lea.hbm %s11147_s0, 256 }
  0x25   : > { %p8575_p0 = scmp.lt.s32.totalorder %s8568_s20, %s11147_s0  ;;  %p8576_p5 = scmp.lt.s32.totalorder %s8574_s22, %s8569_s1 }
  0x26   : > { %p8572_p12 = pnand %p8571_p10, %p8570_p2 }
  0x27   : > { %p8577_p7 = por %p8576_p5, %p8575_p0 }
  0x28   : > { %p8573_p13 = pneg %p8572_p12 }
  0x2a   : > { %p8578_p11 = pnand %p8577_p7, %p8573_p13 }
  0x2c   : > { %8581 = shalt.err (!%p8578_p11)
}
  0x2d   : > { %s11306_s21 = smov 4   ;;  %s11307_s11 = smov 64  }
  0x2e   : > { %8416 = dma.hbm_to_vmem [thread:$0]  (!%p8823_p9), %s283_s10, 2048, %s285_s14, %s273_s19, %s11307_s11, %s11307_s11, %s11306_s21  }
  0x2f   : > { %296 = sbr.rel (%p8765_p8) target bundleno = 1304 (0x518), region = 48 }
  0x34   : > { %s8843_s15 = sand.u32 1, %s8663_s25  }
  0x35   : > { %s6841_s1 = sshll.u32 %s8843_s15, 7  ;;  %s299_s20 = scalar_lea.sflag [#allocation4], %s8843_s15 }
  0x36   : > { %s8849_s23 = scalar_lea.vmem [#allocation3], %s6841_s1 }
  0x37   : > { %8642 = dma.done.wait (%p8752_p4), %s299_s20, 2048  }
  0x38   : > { %8644 = vsyncadd (%p8752_p4), %s299_s20, 4294965248 }
  0x39   : > { %8646 = dma.done.wait (%p46_p1), [#allocation7], 10240  }
  0x3a   : > { %8648 = vsyncadd (%p46_p1), [#allocation7], 4294957056 }
  0x3b   : > { %8650 = dma.done.wait (%p46_p1), [#allocation10], 1024  }
  0x3c   : > { %8652 = vsyncadd (%p46_p1), [#allocation10], 4294966272  ;;  %v7875_v0 = vld [vmem:[#allocation6 + $0x38] sm:$0xff]  ;;  %v7874_v1 = vld [vmem:[#allocation6 + $0x30] sm:$0xff]  ;;  %v8678_v36 = vmov 0   ;;  %v819_v37 = vlaneseq  ;;  %vm8679_vm1 = vmmov 1  }
  0x3d   : > { %492 = vmatpush.bf16.msra.mxu0 %v7875_v0  ;;  %8371 = vmatpush.bf16.msra.mxu2 %v7875_v0  ;;  %v7873_v2 = vld [vmem:[#allocation6 + $0x28] sm:$0xff]  ;;  %v7872_v3 = vld [vmem:[#allocation6 + $0x20] sm:$0xff]  ;;  %v7871_v4 = vld [vmem:[#allocation6 + $0x18] sm:$0xff]  ;;  %354 = vst [vmem:[#allocation2 + $0x8] sm:$0xf] %v8678_v36  ;;  %s10745_s11 = scalar_lea.vmem [#allocation11], %s6841_s1 }
  0x3e   : > { %v7870_v5 = vld [vmem:[#allocation6 + $0x10] sm:$0xff]  ;;  %v7869_v6 = vld [vmem:[#allocation6 + $0x8] sm:$0xff]  ;;  %v7868_v7 = vld [vmem:[#allocation6] sm:$0xff]  ;;  %355 = vst [vmem:[#allocation2 + $0xc] sm:$0xf] %v8678_v36  ;;  %v8882_v41 = vshrl.u32 %v819_v37, 7 }
  0x3f   : > { %v7860_v8 = vld [vmem:[%s8849_s23] sm:$0xff]  ;;  %v7861_v10 = vld [vmem:[%s8849_s23 + $0x8] sm:$0xff]  ;;  %v7891_v12 = vld [vmem:[#allocation6 + $0x38] sm:$0xff]  ;;  %353 = vst [vmem:[#allocation2 + $0x4] sm:$0xf] %v8678_v36  ;;  %s8100_s19 = sshll.u32 %s8743_s28, 7 }
  0x40   : > { %v7864_v9 = vld [vmem:[%s8849_s23 + $0x20] sm:$0xff]  ;;  %v7865_v11 = vld [vmem:[%s8849_s23 + $0x28] sm:$0xff]  ;;  %722 = vmatpush.bf16.msra.mxu1 %v7891_v12  ;;  %v7890_v13 = vld [vmem:[#allocation6 + $0x30] sm:$0xff]  ;;  %8379 = vmatpush.bf16.msra.mxu3 %v7891_v12  ;;  %356 = vst [vmem:[#allocation2 + $0x90] sm:$0xf] %v8678_v36  ;;  %v821_v44 = vadd.s32 8, %v8882_v41  ;;  %s6725_s16 = scalar_lea.hbm %s11154_s7, %s8100_s19 }
  0x41   : > { %493 = vmatpush.bf16.msra.mxu0 %v7874_v1  ;;  %8372 = vmatpush.bf16.msra.mxu2 %v7874_v1  ;;  %v7915_v14 = vld [vmem:[#allocation8 + $0x78] sm:$0xff]  ;;  %v7914_v15 = vld [vmem:[#allocation8 + $0x70] sm:$0xff]  ;;  %v7889_v16 = vld [vmem:[#allocation6 + $0x28] sm:$0xff]  ;;  %357 = vst [vmem:[#allocation2 + $0x94] sm:$0xf] %v8678_v36  ;;  %v823_v45 = vadd.s32 24, %v8882_v41 }
  0x42   : > { %v7913_v17 = vld [vmem:[#allocation8 + $0x68] sm:$0xff]  ;;  %v7888_v18 = vld [vmem:[#allocation6 + $0x20] sm:$0xff]  ;;  %v7862_v19 = vld [vmem:[%s8849_s23 + $0x10] sm:$0xff]  ;;  %358 = vst [vmem:[#allocation2 + $0x98] sm:$0xf] %v8678_v36  ;;  %v847_v46 = vand.u32 15, %v821_v44 }
  0x43   : > { %v7866_v20 = vld [vmem:[%s8849_s23 + $0x30] sm:$0xff]  ;;  %v7912_v21 = vld [vmem:[#allocation8 + $0x60] sm:$0xff]  ;;  %v7887_v22 = vld [vmem:[#allocation6 + $0x18] sm:$0xff]  ;;  %v840_v48 = vand.u32 15, %v8882_v41  ;;  %v861_v49 = vand.u32 15, %v823_v45  ;;  %v822_v50 = vadd.s32 16, %v8882_v41 }
  0x44   : > { %723 = vmatpush.bf16.msra.mxu1 %v7890_v13  ;;  %8380 = vmatpush.bf16.msra.mxu3 %v7890_v13  ;;  %v7911_v23 = vld [vmem:[#allocation8 + $0x58] sm:$0xff]  ;;  %v7886_v24 = vld [vmem:[#allocation6 + $0x10] sm:$0xff]  ;;  %v7885_v26 = vld [vmem:[#allocation6 + $0x8] sm:$0xff]  ;;  %vm1045_vm0 = vcmp.lt.s32.totalorder %v847_v46, 15  ;;  %vm1927_vm8 = vsmask.f32 256  ;;  %v8930_v13 = vunpack.c.h.b16 %v8678_v36 }
  0x45   : > { %494 = vmatpush.bf16.msra.mxu0 %v7873_v2  ;;  %8373 = vmatpush.bf16.msra.mxu2 %v7873_v2  ;;  %v7910_v25 = vld [vmem:[#allocation8 + $0x50] sm:$0xff]  ;;  %v7909_v27 = vld [vmem:[#allocation8 + $0x48] sm:$0xff]  ;;  %v7884_v28 = vld [vmem:[#allocation6] sm:$0xff]  ;;  %vm8888_vm3 = vcmp.lt.s32.totalorder %v861_v49, 15  ;;  %vm8894_vm5 = vcmp.ge.s32.totalorder %v840_v48, 1  ;;  %v854_v59 = vand.u32 15, %v822_v50 }
  0x46   : > { %v7863_v29 = vld [vmem:[%s8849_s23 + $0x18] sm:$0xff]  ;;  %v7876_v31 = vld [vmem:[%s8849_s23 + $0x40] sm:$0xff]  ;;  %v7881_v34 = vld [vmem:[%s8849_s23 + $0x68] sm:$0xff]  ;;  %vm1928_vm9 = vsmask.f32 4368  ;;  %v8927_v12 = vadd.s32 32, %v8882_v41 }
  0x47   : > { %v7867_v30 = vld [vmem:[%s8849_s23 + $0x38] sm:$0xff]  ;;  %v7880_v32 = vld [vmem:[%s8849_s23 + $0x60] sm:$0xff]  ;;  %v7877_v35 = vld [vmem:[%s8849_s23 + $0x48] sm:$0xff]  ;;  %vm8918_vm11 = vcmp.ge.s32.totalorder %v854_v59, 1  ;;  %v11324_v44 = vmov 0  ;;  %s6726_s22 = sshll.u32 %s10745_s11, 4  ;;  %s6727_s22 = int_to_ptr.vmem [resolvable:$true] %s6726_s22 }
  0x48   : > { %724 = vmatpush.bf16.msra.mxu1 %v7889_v16  ;;  %8381 = vmatpush.bf16.msra.mxu3 %v7889_v16  ;;  %v7908_v33 = vld [vmem:[#allocation8 + $0x40] sm:$0xff]  ;;  %v7892_v38 = vld [vmem:[#allocation2 + $0x8] sm:$0xff]  ;;  %v7923_v39 = vld [vmem:[#allocation8 + $0xb8] sm:$0xff]  ;;  %s6728_s29 = sshll.u32 %s6725_s16, 4  ;;  %s6714_s28 = scalar_lea.sflag [#allocation5], %s8843_s15  ;;  %s6729_s29 = int_to_ptr.hbm [resolvable:$true] %s6728_s29 }
  0x49   : > { %495 = vmatpush.bf16.msra.mxu0 %v7872_v3  ;;  %8374 = vmatpush.bf16.msra.mxu2 %v7872_v3  ;;  %v7882_v40 = vld [vmem:[%s8849_s23 + $0x70] sm:$0xff]  ;;  %v7907_v42 = vld [vmem:[#allocation8 + $0x38] sm:$0xff]  ;;  %v7921_v51 = vld [vmem:[#allocation8 + $0xa8] sm:$0xff]  ;;  %s8617_s20 = scalar_lea.hbm %s11154_s7, 256 }
  0x4a   : > { %v7922_v43 = vld [vmem:[#allocation8 + $0xb0] sm:$0xff]  ;;  %vm1110_vm2 = vmpackc.low %vm8679_vm1, %vm8679_vm1  ;;  %v7905_v54 = vld [vmem:[#allocation8 + $0x28] sm:$0xff]  ;;  %vm1141_vm1 = vsmask.f32 3328 }
  0x4b   : > { %v7906_v47 = vld [vmem:[#allocation8 + $0x30] sm:$0xff]  ;;  %v1126_v53 = vsel %vm1110_vm2, 65537, %v8678_v36  ;;  %vm1896_vm4 = vmpackc.low %vm1045_vm0, %vm1045_vm0  ;;  %v7920_v60 = vld [vmem:[#allocation8 + $0xa0] sm:$0xff]  ;;  %vm1142_vm2 = vsmask.f32 7440 }
  0x4c   : > { %725 = vmatpush.bf16.msra.mxu1 %v7888_v18  ;;  %8382 = vmatpush.bf16.msra.mxu3 %v7888_v18  ;;  %v1158_v55 = vshrl.u32 %v1126_v53, 16  ;;  %v1912_v56 = vsel %vm1896_vm4, 65537, %v8678_v36  ;;  %vm1898_vm6 = vmpackc.low %vm8888_vm3, %vm8888_vm3  ;;  %v1154_v63 = vshll.u32 %v1126_v53, 16  ;;  %v7904_v1 = vld [vmem:[#allocation8 + $0x20] sm:$0xff]  ;;  %v7947_v3 = vld [vmem:[#allocation8 + $0x138] sm:$0xff] }
  0x4d   : > { %496 = vmatpush.bf16.msra.mxu0 %v7871_v4  ;;  %8375 = vmatpush.bf16.msra.mxu2 %v7871_v4  ;;  %v1939_v58 = vshrl.u32 %v1912_v56, 16  ;;  %v1942_v62 = vshll.u32 %v1912_v56, 16  ;;  %vm1109_vm7 = vmpackc.low %vm8894_vm5, %vm8894_vm5  ;;  %v8909_v4 = vsel %vm1898_vm6, 65537, %v8678_v36  ;;  %v1846_v49 = vld [vmem:[#allocation2 + $0x8] sm:$0xf] }
  0x4e   : > { %v1933_v61 = vrot.slane %v1158_v55, 7  ;;  %vm8911_vm10 = vmor %vm1927_vm8, %vm1928_vm9  ;;  %v1960_v37 = vshll.u32 %v8909_v4, 16  ;;  %v1847_v50 = vld [vmem:[#allocation2 + $0xc] sm:$0xf] }
  0x4f   : > { %v8901_v0 = vrot.slane %v1939_v58, 7  ;;  %vm1111_vm12 = vmpackc.low %vm8918_vm11, %vm8918_vm11  ;;  %v7937_v56 = vld [vmem:[#allocation8 + $0xe8] sm:$0xff] }
  0x50   : > { %726 = vmatpush.bf16.msra.mxu1 %v7887_v22  ;;  %8383 = vmatpush.bf16.msra.mxu3 %v7887_v22  ;;  %v8906_v2 = vrot.slane %v1933_v61, 4  ;;  %vm8992_vm5 = vmor %vm1141_vm1, %vm1142_vm2 }
  0x51   : > { %497 = vmatpush.bf16.msra.mxu0 %v7870_v5  ;;  %8376 = vmatpush.bf16.msra.mxu2 %v7870_v5  ;;  %v1946_v57 = vrot.slane %v8901_v0, 4 }
  0x54   : > { %727 = vmatpush.bf16.msra.mxu1 %v7886_v24  ;;  %8384 = vmatpush.bf16.msra.mxu3 %v7886_v24  ;;  %v7918_v24 = vld [vmem:[#allocation8 + $0x90] sm:$0xff] }
  0x55   : > { %498 = vmatpush.bf16.msra.mxu0 %v7869_v6  ;;  %8377 = vmatpush.bf16.msra.mxu2 %v7869_v6  ;;  %v8915_v6 = vor.u32 %v1933_v61, %v1154_v63 }
  0x57   : > { %v2074_v18 = vunpack.c.h.b16 %v8915_v6 }
  0x58   : > { %728 = vmatpush.bf16.msra.mxu1 %v7885_v26  ;;  %8385 = vmatpush.bf16.msra.mxu3 %v7885_v26 }
  0x59   : > { %499 = vmatpush.bf16.msra.mxu0 %v7868_v7  ;;  %8378 = vmatpush.bf16.msra.mxu2 %v7868_v7  ;;  %v1944_v7 = vor.u32 %v1942_v62, %v8901_v0  ;;  %vm8952_vm14 = vcmp.ne.s32.totalorder %v2074_v18, %v8930_v13 }
  0x5b   : > { %v1945_v16 = vsel %vm8911_vm10, %v8906_v2, %v1944_v7  ;;  %v11367_v7 = vmov 0 }
  0x5c   : > { %500 = vmatmul.bf16.vlgmr.msra.gmra.mxu0 %v7860_v8  ;;  %520 = vmatmul.bf16.vlgmr.msra.gmra.mxu2 %v7864_v9  ;;  %v8923_v9 = vunpack.c.l.b16 %v8678_v36  ;;  %v2080_v22 = vunpack.c.l.b16 %v1945_v16 }
  0x5d   : > { %1568 = vmatpush.bf16.msrb.mxu2 %v7915_v14  ;;  %729 = vmatpush.bf16.msra.mxu1 %v7884_v28  ;;  %v7878_v14 = vld [vmem:[%s8849_s23 + $0x50] sm:$0xff] }
  0x5e   : > { %8386 = vmatpush.bf16.msra.mxu3 %v7884_v28  ;;  %2394 = vmatpush.bf16.msrb.mxu0 %v7923_v39  ;;  %v868_v28 = vand.u32 15, %v8927_v12  ;;  %vm8961_vm15 = vcmp.ne.s32.totalorder %v2080_v22, %v8923_v9 }
  0x60   : > { %730 = vmatmul.bf16.vlgmr.msra.gmra.mxu1 %v7876_v31  ;;  %vm8996_vm6 = vcmp.ge.s32.totalorder %v868_v28, 1  ;;  %v11343_v31 = vmov 0 }
  0x61   : > { %1569 = vmatpush.bf16.msrb.mxu2 %v7914_v15  ;;  %750 = vmatmul.bf16.vlgmr.msra.gmra.mxu3 %v7880_v32  ;;  %v7883_v15 = vld [vmem:[%s8849_s23 + $0x78] sm:$0xff]  ;;  %v1127_v32 = vsel %vm1111_vm12, 65537, %v8678_v36  ;;  %vm1113_vm11 = vmpackc.low %vm8996_vm6, %vm8996_vm6 }
  0x62   : > { %1797 = vmatpush.bf16.msrb.mxu3 %v7907_v42  ;;  %2395 = vmatpush.bf16.msrb.mxu0 %v7922_v43  ;;  %v7917_v43 = vld [vmem:[#allocation8 + $0x88] sm:$0xff]  ;;  %v1164_v45 = vshll.u32 %v1127_v32, 16  ;;  %v1168_v46 = vshrl.u32 %v1127_v32, 16 }
  0x64   : > { %v1166_v62 = vrot.slane %v1164_v45, 5 }
  0x65   : > { %1570 = vmatpush.bf16.msrb.mxu2 %v7913_v17  ;;  %v2073_v17 = vunpack.c.l.b16 %v8915_v6 }
  0x66   : > { %1798 = vmatpush.bf16.msrb.mxu3 %v7906_v47  ;;  %2396 = vmatpush.bf16.msrb.mxu0 %v7921_v51  ;;  %v825_v47 = vadd.s32 40, %v8882_v41  ;;  %v11327_v51 = vmov 0 }
  0x67   : > { %vm8947_vm13 = vcmp.ne.s32.totalorder %v2073_v17, %v8923_v9 }
  0x68   : > { %vm8974_vm3 = vmpackc.low %vm8952_vm14, %vm8947_vm13 }
  0x69   : > { %1571 = vmatpush.bf16.msrb.mxu2 %v7912_v21  ;;  %v1957_v21 = vshrl.u32 %v8909_v4, 16  ;;  %v11325_v44 = vsel %vm8974_vm3, 4294967295, %v11324_v44  ;;  %v2192_v0 = vsel %vm8974_vm3, %v1846_v49, 0  ;;  %v1129_v49 = vsel %vm1113_vm11, 65537, %v8678_v36 }
  0x6a   : > { %1799 = vmatpush.bf16.msrb.mxu3 %v7905_v54  ;;  %2397 = vmatpush.bf16.msrb.mxu0 %v7920_v60  ;;  %11326 = vst [vmem:[#allocation16_spill] sm:$0xff] %v11325_v44  ;;  %v875_v60 = vand.u32 15, %v825_v47 }
  0x6c   : > { %505 = vmatmul.bf16.gmra.mxu0 %v7861_v10  ;;  %525 = vmatmul.bf16.gmra.mxu2 %v7865_v11  ;;  %v7919_v10 = vld [vmem:[#allocation8 + $0x98] sm:$0xff]  ;;  %v1125_v11 = vsel %vm1109_vm7, 65537, %v8678_v36  ;;  %vm9019_vm9 = vcmp.lt.s32.totalorder %v875_v60, 15 }
  0x6d   : > { %1572 = vmatpush.bf16.msrb.mxu2 %v7911_v23  ;;  %v2081_v23 = vunpack.c.h.b16 %v1945_v16  ;;  %v1148_v26 = vshrl.u32 %v1125_v11, 16  ;;  %v7936_v16 = vld [vmem:[#allocation8 + $0xe0] sm:$0xff] }
  0x6e   : > { %1800 = vmatpush.bf16.msrb.mxu3 %v7904_v1  ;;  %2398 = vmatpush.bf16.msrb.mxu0 %v7919_v10 }
  0x6f   : > { %vm8966_vm0 = vcmp.ne.s32.totalorder %v2081_v23, %v8930_v13  ;;  %v1150_v42 = vrot.slane %v1148_v26, 4  ;;  %v1061_v23 = vld [vmem:[#allocation2 + $0x8] sm:$0xf] }
  0x70   : > { %735 = vmatmul.bf16.gmra.mxu1 %v7877_v35  ;;  %v8957_v35 = vrot.slane %v1957_v21, 7  ;;  %vm8984_vm4 = vmpackc.low %vm8966_vm0, %vm8961_vm15  ;;  %v2243_v21 = vunpack.c.l.b16 %v2192_v0  ;;  %v11373_v0 = vmov 0 }
  0x71   : > { %1573 = vmatpush.bf16.msrb.mxu2 %v7910_v25  ;;  %755 = vmatmul.bf16.gmra.mxu3 %v7881_v34  ;;  %v1145_v25 = vshll.u32 %v1125_v11, 16  ;;  %v7938_v34 = vld [vmem:[#allocation8 + $0xf0] sm:$0xff]  ;;  %v11328_v51 = vsel %vm8984_vm4, 4294967295, %v11327_v51  ;;  %v2193_v4 = vsel %vm8984_vm4, %v1847_v50, 0  ;;  %v1060_v11 = vld [vmem:[#allocation2 + $0x4] sm:$0x8]  ;;  %vm1900_vm15 = vmpackc.low %vm9019_vm9, %vm9019_vm9 }
  0x72   : > { %2399 = vmatpush.bf16.msrb.mxu0 %v7918_v24  ;;  %11329 = vst [vmem:[#allocation17_spill] sm:$0xff] %v11328_v51  ;;  %v1962_v58 = vor.u32 %v1960_v37, %v8957_v35  ;;  %v2244_v22 = vunpack.c.l.b16 %v2193_v4  ;;  %v1916_v45 = vsel %vm1900_vm15, 65537, %v8678_v36 }
  0x74   : > { %v1963_v28 = vsel %vm8911_vm10, %v8906_v2, %v1962_v58  ;;  %v11370_v58 = vmov 0 }
  0x75   : > { %1574 = vmatpush.bf16.msrb.mxu2 %v7909_v27  ;;  %v8943_v27 = vrot.slane %v1154_v63, 5  ;;  %v1170_v63 = vrot.slane %v1168_v46, 4  ;;  %v2094_v39 = vunpack.c.l.b16 %v1963_v28  ;;  %v2095_v46 = vunpack.c.h.b16 %v1963_v28  ;;  %v7933_v28 = vld [vmem:[#allocation8 + $0xc8] sm:$0xff] }
  0x76   : > { %2400 = vmatpush.bf16.msrb.mxu0 %v7917_v43  ;;  %v7935_v43 = vld [vmem:[#allocation8 + $0xd8] sm:$0xff] }
  0x77   : > { %v1171_v24 = vor.u32 %v1170_v63, %v1166_v62  ;;  %v7934_v63 = vld [vmem:[#allocation8 + $0xd0] sm:$0xff]  ;;  %vm9087_vm6 = vcmp.ne.s32.totalorder %v2094_v39, %v8923_v9 }
  0x79   : > { %1575 = vmatpush.bf16.msrb.mxu2 %v7908_v33  ;;  %v7902_v33 = vld [vmem:[#allocation8 + $0x10] sm:$0xff] }
  0x7c   : > { %510 = vmatmul.bf16.gmra.mxu0 %v7862_v19  ;;  %530 = vmatmul.bf16.gmra.mxu2 %v7866_v20  ;;  %v7903_v19 = vld [vmem:[#allocation8 + $0x18] sm:$0xff] }
  0x7d   : > { %2867 = vmatpush.bf16.msra.mxu2 %v7947_v3  ;;  %v7939_v20 = vld [vmem:[#allocation8 + $0xf8] sm:$0xff]  ;;  %1801 = vmatpush.bf16.msrb.mxu3 %v7903_v19  ;;  %v7916_v3 = vld [vmem:[#allocation8 + $0x80] sm:$0xff]  ;;  %v7946_v19 = vld [vmem:[#allocation8 + $0x130] sm:$0xff] }
  0x7e   : > { %2689 = vmatpush.bf16.msrb.mxu1 %v7939_v20  ;;  %2401 = vmatpush.bf16.msrb.mxu0 %v7916_v3  ;;  %v1954_v20 = vsel %vm8911_vm10, %v1946_v57, %v8915_v6 }
  0x7f   : > { %v2087_v32 = vunpack.c.l.b16 %v1954_v20 }
  0x80   : > { %740 = vmatmul.bf16.gmra.mxu1 %v7878_v14 }
  0x81   : > { %760 = vmatmul.bf16.gmra.mxu3 %v7882_v40  ;;  %v1147_v40 = vrot.slane %v1145_v25, 5  ;;  %v11340_v25 = vmov 0  ;;  %2868 = vmatpush.bf16.msra.mxu2 %v7946_v19  ;;  %vm9073_vm1 = vcmp.ne.s32.totalorder %v2087_v32, %v8923_v9 }
  0x82   : > { %1802 = vmatpush.bf16.msrb.mxu3 %v7902_v33  ;;  %2690 = vmatpush.bf16.msrb.mxu1 %v7938_v34  ;;  %v2088_v33 = vunpack.c.h.b16 %v1954_v20 }
  0x83   : > { %v1151_v52 = vor.u32 %v1150_v42, %v1147_v40  ;;  %v1303_v53 = vunpack.c.l.b16 %v1147_v40  ;;  %v1304_v54 = vunpack.c.h.b16 %v1147_v40  ;;  %v9062_v40 = vpack.c.b16 %v2244_v22, %v2243_v21 }
  0x84   : > { %v1172_v42 = vrot.slane %v1171_v24, 4  ;;  %vm9078_vm2 = vcmp.ne.s32.totalorder %v2088_v33, %v8930_v13  ;;  %v1062_v24 = vld [vmem:[#allocation2 + $0xc] sm:$0xf]  ;;  %v827_v33 = vadd.s32 56, %v8882_v41 }
  0x85   : > { %v1152_v61 = vrot.slane %v1151_v52, 4  ;;  %vm9005_vm7 = vcmp.ne.s32.totalorder %v1303_v53, %v8923_v9  ;;  %vm9010_vm8 = vcmp.ne.s32.totalorder %v1304_v54, %v8930_v13  ;;  %v1188_v53 = vshrl.u32 %v1129_v49, 16  ;;  %vm9156_vm4 = vmpackc.low %vm9078_vm2, %vm9073_vm1 }
  0x86   : > { %2691 = vmatpush.bf16.msrb.mxu1 %v7937_v56  ;;  %vm9033_vm12 = vmpackc.low %vm9010_vm8, %vm9005_vm7  ;;  %v1184_v56 = vshll.u32 %v1129_v49, 16  ;;  %vm9092_vm7 = vcmp.ne.s32.totalorder %v2095_v46, %v8930_v13  ;;  %v11368_v7 = vsel %vm9156_vm4, 4294967295, %v11367_v7 }
  0x87   : > { %v1157_v12 = vsel %vm8992_vm5, %v1152_v61, %v8943_v27  ;;  %v11341_v25 = vsel %vm9033_vm12, 4294967295, %v11340_v25  ;;  %v1422_v34 = vsel %vm9033_vm12, %v1060_v11, 0  ;;  %v2273_v61 = vshll.u32 %v9062_v40, 16  ;;  %11369 = vst [vmem:[#allocation21_spill] sm:$0xff] %v11368_v7 }
  0x88   : > { %v1310_v17 = vunpack.c.l.b16 %v1157_v12  ;;  %v1311_v18 = vunpack.c.h.b16 %v1157_v12  ;;  %11342 = vst [vmem:[#allocation18_spill] sm:$0xff] %v11341_v25  ;;  %v1634_v50 = vunpack.c.l.b16 %v1422_v34  ;;  %v1190_v8 = vrot.slane %v1188_v53, 4 }
  0x89   : > { %v2271_v12 = vshrl.u32 %v9062_v40, 16  ;;  %v1186_v19 = vrot.slane %v1184_v56, 5  ;;  %v2459_v40 = vld [vmem:[#allocation2 + $0xc] sm:$0x8] }
  0x8a   : > { %2692 = vmatpush.bf16.msrb.mxu1 %v7936_v16  ;;  %vm1314_vm13 = vcmp.ne.s32.totalorder %v1310_v17, %v8923_v9  ;;  %vm1315_vm14 = vcmp.ne.s32.totalorder %v1311_v18, %v8930_v13  ;;  %v1978_v18 = vshll.u32 %v1916_v45, 16 }
  0x8b   : > { %vm9049_vm0 = vmpackc.low %vm1315_vm14, %vm1314_vm13  ;;  %v1191_v32 = vor.u32 %v1190_v8, %v1186_v19 }
  0x8c   : > { %515 = vmatmul.bf16.gmra.mxu0 %v7863_v29  ;;  %535 = vmatmul.bf16.gmra.mxu2 %v7867_v30  ;;  %v1160_v29 = vrot.slane %v1158_v55, 4  ;;  %v7901_v55 = vld [vmem:[#allocation8 + $0x8] sm:$0xff]  ;;  %v11344_v31 = vsel %vm9049_vm0, 4294967295, %v11343_v31  ;;  %v1423_v37 = vsel %vm9049_vm0, %v1061_v23, 0  ;;  %v2275_v23 = vrot.slane %v2273_v61, 1 }
  0x8d   : > { %1803 = vmatpush.bf16.msrb.mxu3 %v7901_v55  ;;  %11345 = vst [vmem:[#allocation19_spill] sm:$0xff] %v11344_v31  ;;  %v1635_v52 = vunpack.c.l.b16 %v1423_v37  ;;  %v1975_v55 = vshrl.u32 %v1916_v45, 16  ;;  %v2476_v61 = vsel %vm9033_vm12, %v2459_v40, 0  ;;  %vm11418_vm12 = vsmask.f32 7424 }
  0x8e   : > { %v1161_v48 = vor.u32 %v1160_v29, %v8943_v27  ;;  %v7879_v29 = vld [vmem:[%s8849_s23 + $0x58] sm:$0xff]  ;;  %2693 = vmatpush.bf16.msrb.mxu1 %v7935_v43  ;;  %v9172_v60 = vor.u32 %v2275_v23, %v2271_v12 }
  0x8f   : > { %v1651_v14 = vpack.c.b16 %v1635_v52, %v1634_v50  ;;  %v9109_v17 = vrot.slane %v1975_v55, 7  ;;  %v7945_v50 = vld [vmem:[#allocation8 + $0x128] sm:$0xff]  ;;  %v7932_v52 = vld [vmem:[#allocation8 + $0xc0] sm:$0xff] }
  0x90   : > { %v9014_v10 = vrot.slane %v1161_v48, 4  ;;  %745 = vmatmul.bf16.gmra.mxu1 %v7879_v29  ;;  %2869 = vmatpush.bf16.msra.mxu2 %v7945_v50 }
  0x91   : > { %765 = vmatmul.bf16.gmra.mxu3 %v7883_v15  ;;  %v7900_v15 = vld [vmem:[#allocation8] sm:$0xff]  ;;  %v1662_v37 = vshrl.u32 %v1651_v14, 16  ;;  %v1665_v39 = vshll.u32 %v1651_v14, 16 }
  0x92   : > { %1804 = vmatpush.bf16.msrb.mxu3 %v7900_v15  ;;  %v1167_v30 = vsel %vm8992_vm5, %v9014_v10, %v1166_v62  ;;  %v1177_v62 = vsel %vm8992_vm5, %v1172_v42, %v8943_v27  ;;  %2694 = vmatpush.bf16.msrb.mxu1 %v7934_v63  ;;  %v826_v15 = vadd.s32 48, %v8882_v41  ;;  %v1187_v53 = vsel %vm8992_vm5, %v9014_v10, %v1186_v19 }
  0x93   : > { %v1317_v47 = vunpack.c.l.b16 %v1167_v30  ;;  %v1318_v48 = vunpack.c.h.b16 %v1167_v30  ;;  %v1324_v16 = vunpack.c.l.b16 %v1177_v62  ;;  %v1325_v29 = vunpack.c.h.b16 %v1177_v62 }
  0x94   : > { %v1964_v30 = vrot.slane %v8957_v35, 4  ;;  %v882_v42 = vand.u32 15, %v826_v15  ;;  %v1980_v35 = vor.u32 %v1978_v18, %v9109_v17  ;;  %v9144_v63 = vrot.slane %v1662_v37, 3 }
  0x95   : > { %vm9097_vm8 = vcmp.ne.s32.totalorder %v1317_v47, %v8923_v9  ;;  %vm9102_vm9 = vcmp.ne.s32.totalorder %v1318_v48, %v8930_v13  ;;  %vm9123_vm13 = vcmp.ne.s32.totalorder %v1324_v16, %v8923_v9  ;;  %v889_v47 = vand.u32 15, %v827_v33 }
  0x96   : > { %vm9116_vm11 = vmpackc.low %vm9102_vm9, %vm9097_vm8  ;;  %2695 = vmatpush.bf16.msrb.mxu1 %v7933_v28  ;;  %vm9135_vm14 = vcmp.ne.s32.totalorder %v1325_v29, %v8930_v13  ;;  %vm9148_vm9 = vcmp.ge.s32.totalorder %v882_v42, 1  ;;  %v1981_v8 = vsel %vm8911_vm10, %v8906_v2, %v1980_v35  ;;  %v1332_v14 = vunpack.c.h.b16 %v1187_v53 }
  0x97   : > { %v1424_v46 = vsel %vm9116_vm11, %v1062_v24, 0  ;;  %vm1051_vm15 = vcmp.lt.s32.totalorder %v889_v47, 15  ;;  %vm1115_vm1 = vmpackc.low %vm9148_vm9, %vm9148_vm9  ;;  %v2108_v23 = vunpack.c.l.b16 %v1981_v8  ;;  %v2109_v28 = vunpack.c.h.b16 %v1981_v8 }
  0x98   : > { %vm1902_vm8 = vmpackc.low %vm1051_vm15, %vm1051_vm15  ;;  %v1636_v18 = vunpack.c.l.b16 %v1424_v46  ;;  %v9211_v35 = vsel %vm1115_vm1, 65537, %v8678_v36  ;;  %v9239_v8 = vadd.s32 64, %v8882_v41 }
  0x99   : > { %v1918_v15 = vsel %vm1902_vm8, 65537, %v8678_v36  ;;  %vm9168_vm15 = vmpackc.low %vm9092_vm7, %vm9087_vm6  ;;  %vm9197_vm8 = vcmp.ne.s32.totalorder %v1332_v14, %v8930_v13  ;;  %vm9229_vm9 = vcmp.ne.s32.totalorder %v2108_v23, %v8923_v9  ;;  %vm9234_vm1 = vcmp.ne.s32.totalorder %v2109_v28, %v8930_v13 }
  0x9a   : > { %2696 = vmatpush.bf16.msrb.mxu1 %v7932_v52  ;;  %v11371_v58 = vsel %vm9168_vm15, 4294967295, %v11370_v58  ;;  %v1993_v24 = vshrl.u32 %v1918_v15, 16  ;;  %vm9185_vm6 = vmpackc.low %vm9135_vm14, %vm9123_vm13  ;;  %v1996_v46 = vshll.u32 %v1918_v15, 16  ;;  %v9327_v14 = vadd.s32 72, %v8882_v41 }
  0x9b   : > { %11372 = vst [vmem:[#allocation22_spill] sm:$0xff] %v11371_v58  ;;  %v11374_v0 = vsel %vm9185_vm6, 4294967295, %v11373_v0  ;;  %vm9305_vm3 = vmpackc.low %vm9234_vm1, %vm9229_vm9 }
  0x9c   : > { %1576 = vmatmul.bf16.vlgmr.msrb.gmra.mxu2 %v7892_v38  ;;  %v9060_v38 = vld [vmem:[%s11149_s2] ss:$0 sm:$0xff]  ;;  %11375 = vst [vmem:[#allocation23_spill] sm:$0xff] %v11374_v0 }
  0xd9   : > { %v501_v26 = vpop.f32.mrf.mxu0 }
  0xda   : > { %v502_v57 = vadd.f32 %v9060_v38, %v501_v26  ;;  %v11358_v26 = vmov 0 }
  0xdb   : > { %v11359_v26 = vsel %vm9116_vm11, 4294967295, %v11358_v26 }
  0xdc   : > { %v541_v20 = vmax.f32 %v502_v57, 0.0  ;;  %11360 = vst [vmem:[#allocation20_spill] sm:$0xff] %v11359_v26  ;;  %v1972_v57 = vsel %vm8911_vm10, %v1964_v30, %v8915_v6 }
  0xdf   : > { %v521_v54 = vpop.f32.mrf.mxu2 }
  0xe0   : > { %v522_v22 = vadd.f32 %v9060_v38, %v521_v54  ;;  %v1192_v54 = vrot.slane %v1191_v32, 4 }
  0xe1   : > { %v503_v1 = vpop.f32.mrf.mxu0 }
  0xe2   : > { %v504_v11 = vadd.f32 %v9060_v38, %v503_v1  ;;  %v549_v48 = vmax.f32 %v522_v22, 0.0  ;;  %v9146_v1 = vrot.slane %v1665_v39, 4  ;;  %v1197_v19 = vsel %vm8992_vm5, %v1192_v54, %v8943_v27 }
  0xe3   : > { %v2527_v22 = vunpack.c.l.b16 %v2476_v61  ;;  %v1338_v39 = vunpack.c.l.b16 %v1197_v19  ;;  %v1339_v40 = vunpack.c.h.b16 %v1197_v19 }
  0xe4   : > { %v542_v21 = vmax.f32 %v504_v11, 0.0  ;;  %v1331_v11 = vunpack.c.l.b16 %v1187_v53  ;;  %v1668_v12 = vor.u32 %v9146_v1, %v9144_v63  ;;  %v11399_v63 = vmov 0 }
  0xe5   : > { %vm9244_vm13 = vcmp.ne.s32.totalorder %v1338_v39, %v8923_v9  ;;  %v11400_v63 = vsel %vm9305_vm3, 4294967295, %v11399_v63 }
  0xe6   : > { %v8104_v34 = vpack.c.bf16 %v542_v21, %v541_v20  ;;  %v2101_v20 = vunpack.c.l.b16 %v1972_v57  ;;  %v2102_v21 = vunpack.c.h.b16 %v1972_v57  ;;  %vm9192_vm7 = vcmp.ne.s32.totalorder %v1331_v11, %v8923_v9 }
  0xe7   : > { %v523_v43 = vpop.f32.mrf.mxu2 }
  0xe8   : > { %8325 = vst [vmem:[#allocation2 + $0x10] sm:$0xff] %v8104_v34   ;;  %v524_v49 = vadd.f32 %v9060_v38, %v523_v43  ;;  %vm9216_vm14 = vcmp.ne.s32.totalorder %v2101_v20, %v8923_v9  ;;  %vm9221_vm2 = vcmp.ne.s32.totalorder %v2102_v21, %v8930_v13 }
  0xe9   : > { %v506_v55 = vpop.f32.mrf.mxu0 }
  0xea   : > { %v550_v62 = vmax.f32 %v524_v49, 0.0  ;;  %v507_v3 = vadd.f32 %v9060_v38, %v506_v55  ;;  %v9225_v55 = vrot.slane %v1993_v24, 7 }
  0xec   : > { %v8124_v16 = vpack.c.bf16 %v550_v62, %v549_v48  ;;  %v543_v56 = vmax.f32 %v507_v3, 0.0  ;;  %v11390_v3 = vmov 0  ;;  %v11401_v62 = vmov 0 }
  0xee   : > { %8329 = vst [vmem:[#allocation2 + $0x30] sm:$0xff] %v8124_v16   ;;  %v1982_v16 = vrot.slane %v9109_v17, 4  ;;  %v1998_v17 = vor.u32 %v1996_v46, %v9225_v55 }
  0xef   : > { %v7893_v29 = vld [vmem:[#allocation2 + $0x10] sm:$0xff]  ;;  %v526_v33 = vpop.f32.mrf.mxu2 }
  0xf0   : > { %v1848_v30 = vld [vmem:[#allocation2 + $0x10] sm:$0xf]  ;;  %v1849_v32 = vld [vmem:[#allocation2 + $0x14] sm:$0xf]  ;;  %1581 = vmatmul.bf16.gmra.mxu2 %v7893_v29  ;;  %v527_v21 = vadd.f32 %v9060_v38, %v526_v33 }
  0xf1   : > { %v2194_v42 = vsel %vm9156_vm4, %v1848_v30, 0  ;;  %v2195_v43 = vsel %vm9168_vm15, %v1849_v32, 0  ;;  %v1063_v45 = vld [vmem:[#allocation2 + $0x10] sm:$0xf]  ;;  %v508_v47 = vpop.f32.mrf.mxu0  ;;  %v1064_v24 = vld [vmem:[#allocation2 + $0x14] sm:$0xf]  ;;  %vm9256_vm15 = vmpackc.low %vm9197_vm8, %vm9192_vm7  ;;  %vm9262_vm4 = vcmp.ne.s32.totalorder %v1339_v40, %v8930_v13  ;;  %v1990_v40 = vsel %vm8911_vm10, %v1982_v16, %v8915_v6 }
  0xf2   : > { %v2245_v48 = vunpack.c.l.b16 %v2194_v42  ;;  %v2246_v49 = vunpack.c.l.b16 %v2195_v43  ;;  %v1425_v50 = vsel %vm9185_vm6, %v1063_v45, 0  ;;  %v2460_v54 = vld [vmem:[#allocation2 + $0x10] sm:$0xf]  ;;  %v509_v57 = vadd.f32 %v9060_v38, %v508_v47  ;;  %v2461_v34 = vld [vmem:[#allocation2 + $0x14] sm:$0xf] }
  0xf3   : > { %v1637_v61 = vunpack.c.l.b16 %v1425_v50  ;;  %v2477_v15 = vsel %vm9049_vm0, %v2460_v54, 0  ;;  %v11391_v3 = vsel %vm9256_vm15, 4294967295, %v11390_v3  ;;  %v1426_v43 = vsel %vm9256_vm15, %v1064_v24, 0  ;;  %v7944_v50 = vld [vmem:[#allocation8 + $0x120] sm:$0xff] }
  0xf4   : > { %v9241_v11 = vpack.c.b16 %v2246_v49, %v2245_v48  ;;  %v544_v19 = vmax.f32 %v509_v57, 0.0  ;;  %11392 = vst [vmem:[#allocation24_spill] sm:$0xff] %v11391_v3  ;;  %v2528_v23 = vunpack.c.l.b16 %v2477_v15  ;;  %v1208_v45 = vshrl.u32 %v9211_v35, 16  ;;  %2870 = vmatpush.bf16.msra.mxu2 %v7944_v50 }
  0xf5   : > { %v1652_v20 = vpack.c.b16 %v1637_v61, %v1636_v18  ;;  %v1204_v18 = vshll.u32 %v9211_v35, 16  ;;  %v551_v48 = vmax.f32 %v527_v21, 0.0  ;;  %vm11395_vm7 = vsmask.f32 7424 }
  0xf6   : > { %v2278_v28 = vshll.u32 %v9241_v11, 16  ;;  %v8109_v30 = vpack.c.bf16 %v544_v19, %v543_v56  ;;  %v2544_v37 = vpack.c.b16 %v2528_v23, %v2527_v22  ;;  %v2478_v56 = vsel %vm9116_vm11, %v2461_v34, 0 }
  0xf7   : > { %v1670_v32 = vshrl.u32 %v1652_v20, 16  ;;  %v1673_v33 = vshll.u32 %v1652_v20, 16  ;;  %v528_v42 = vpop.f32.mrf.mxu2  ;;  %v1999_v61 = vsel %vm8911_vm10, %v8906_v2, %v1998_v17  ;;  %v1638_v20 = vunpack.c.l.b16 %v1426_v43 }
  0xf8   : > { %v2280_v39 = vrot.slane %v2278_v28, 1  ;;  %8326 = vst [vmem:[#allocation2 + $0x18] sm:$0xff] %v8109_v30   ;;  %v529_v49 = vadd.f32 %v9060_v38, %v528_v42  ;;  %v2554_v57 = vshrl.u32 %v2544_v37, 16  ;;  %v2557_v19 = vshll.u32 %v2544_v37, 16 }
  0xf9   : > { %v1672_v46 = vrot.slane %v1670_v32, 3  ;;  %v1675_v47 = vrot.slane %v1673_v33, 4  ;;  %v511_v54 = vpop.f32.mrf.mxu0  ;;  %v2115_v21 = vunpack.c.l.b16 %v1990_v40  ;;  %v896_v24 = vand.u32 15, %v9239_v8 }
  0xfa   : > { %v2281_v22 = vsel %vm11395_vm7, %v9172_v60, %v2280_v39  ;;  %v9283_v35 = vadd.f32 %v9060_v38, %v511_v54  ;;  %v552_v16 = vmax.f32 %v529_v49, 0.0  ;;  %v1206_v60 = vrot.slane %v1204_v18, 5  ;;  %vm9297_vm7 = vmpackc.low %vm9221_vm2, %vm9216_vm14 }
  0xfb   : > { %2402 = vmatmul.bf16.vlgmr.msrb.gmra.mxu0 %v2281_v22  ;;  %v9285_v15 = vor.u32 %v1675_v47, %v1672_v46  ;;  %vm11396_vm8 = vsmask.f32 4352  ;;  %v11397_v17 = vmov 0  ;;  %v2116_v30 = vunpack.c.h.b16 %v1990_v40  ;;  %vm9318_vm2 = vmpackc.low %vm9262_vm4, %vm9244_vm13 }
  0xfc   : > { %v8129_v28 = vpack.c.bf16 %v552_v16, %v551_v48  ;;  %v11398_v17 = vsel %vm9297_vm7, 4294967295, %v11397_v17  ;;  %v1210_v32 = vrot.slane %v1208_v45, 4  ;;  %v2282_v1 = vshrl.u32 %v9241_v11, 16 }
  0xfd   : > { %v1677_v23 = vsel %vm11396_vm8, %v1668_v12, %v9285_v15  ;;  %v2529_v12 = vunpack.c.l.b16 %v2478_v56  ;;  %v2122_v52 = vunpack.c.l.b16 %v1999_v61  ;;  %v1207_v53 = vsel %vm8992_vm5, %v9014_v10, %v1206_v60 }
  0xfe   : > { %1805 = vmatmul.bf16.vlgmr.msrb.gmra.mxu3 %v1677_v23  ;;  %v545_v8 = vmax.f32 %v9283_v35, 0.0  ;;  %8330 = vst [vmem:[#allocation2 + $0x38] sm:$0xff] %v8129_v28   ;;  %v11402_v62 = vsel %vm9318_vm2, 4294967295, %v11401_v62  ;;  %v9322_v4 = vrot.slane %v2554_v57, 3  ;;  %v9324_v11 = vrot.slane %v2557_v19, 4 }
  0xff   : > { %11403 = vst [vmem:[#allocation25_spill] sm:$0xff] %v11402_v62  ;;  %v2123_v18 = vunpack.c.h.b16 %v1999_v61  ;;  %v7894_v33 = vld [vmem:[#allocation2 + $0x18] sm:$0xff]  ;;  %v2284_v42 = vor.u32 %v2282_v1, %v2280_v39  ;;  %v531_v43 = vpop.f32.mrf.mxu2  ;;  %v1211_v40 = vor.u32 %v1210_v32, %v1206_v60  ;;  %v1345_v45 = vunpack.c.l.b16 %v1207_v53 }
 0x100   : > { %v1850_v34 = vld [vmem:[#allocation2 + $0x18] sm:$0xf]  ;;  %v1851_v37 = vld [vmem:[#allocation2 + $0x1c] sm:$0xf]  ;;  %v9334_v49 = vadd.f32 %v9060_v38, %v531_v43  ;;  %vm9337_vm4 = vcmp.ne.s32.totalorder %v2115_v21, %v8923_v9  ;;  %vm9342_vm13 = vcmp.ne.s32.totalorder %v2116_v30, %v8930_v13  ;;  %v1346_v54 = vunpack.c.h.b16 %v1207_v53  ;;  %1586 = vmatmul.bf16.gmra.mxu2 %v7894_v33 }
 0x101   : > { %v2196_v29 = vsel %vm9297_vm7, %v1850_v34, 0  ;;  %v2197_v46 = vsel %vm9305_vm3, %v1851_v37, 0  ;;  %v1065_v47 = vld [vmem:[#allocation2 + $0x18] sm:$0xf]  ;;  %v513_v22 = vpop.f32.mrf.mxu0  ;;  %v2560_v60 = vor.u32 %v9324_v11, %v9322_v4  ;;  %vm9354_vm14 = vcmp.ne.s32.totalorder %v2122_v52, %v8923_v9 }
 0x102   : > { %v2462_v48 = vld [vmem:[#allocation2 + $0x18] sm:$0xf]  ;;  %v2247_v56 = vunpack.c.l.b16 %v2196_v29  ;;  %v2248_v57 = vunpack.c.l.b16 %v2197_v46  ;;  %v1427_v61 = vsel %vm9318_vm2, %v1065_v47, 0  ;;  %v514_v16 = vadd.f32 %v9060_v38, %v513_v22 }
 0x103   : > { %v2479_v35 = vsel %vm9185_vm6, %v2462_v48, 0  ;;  %v1639_v19 = vunpack.c.l.b16 %v1427_v61  ;;  %vm9359_vm9 = vcmp.ne.s32.totalorder %v2123_v18, %v8930_v13  ;;  %v7943_v30 = vld [vmem:[#allocation8 + $0x118] sm:$0xff]  ;;  %v1212_v1 = vrot.slane %v1211_v40, 4 }
 0x104   : > { %v2530_v21 = vunpack.c.l.b16 %v2479_v35  ;;  %v9363_v32 = vpack.c.b16 %v2248_v57, %v2247_v56  ;;  %v903_v53 = vand.u32 15, %v9327_v14  ;;  %vm9366_vm1 = vcmp.ge.s32.totalorder %v896_v24, 1  ;;  %2871 = vmatpush.bf16.msra.mxu2 %v7943_v30  ;;  %v2463_v14 = vld [vmem:[#allocation2 + $0x1c] sm:$0xf] }
 0x105   : > { %v546_v4 = vmax.f32 %v514_v16, 0.0  ;;  %v1653_v52 = vpack.c.b16 %v1639_v19, %v1638_v20  ;;  %vm9371_vm8 = vcmp.ne.s32.totalorder %v1345_v45, %v8923_v9  ;;  %v553_v37 = vmax.f32 %v9334_v49, 0.0  ;;  %v1066_v19 = vld [vmem:[#allocation2 + $0x1c] sm:$0xf] }
 0x106   : > { %v2545_v11 = vpack.c.b16 %v2530_v21, %v2529_v12  ;;  %v2286_v18 = vshll.u32 %v9363_v32, 16  ;;  %v1217_v24 = vsel %vm8992_vm5, %v1212_v1, %v8943_v27  ;;  %vm9381_vm3 = vcmp.ne.s32.totalorder %v1346_v54, %v8930_v13 }
 0x107   : > { %v8114_v20 = vpack.c.bf16 %v546_v4, %v545_v8  ;;  %v1679_v12 = vshrl.u32 %v1653_v52, 16  ;;  %v1682_v40 = vshll.u32 %v1653_v52, 16  ;;  %v533_v47 = vpop.f32.mrf.mxu2  ;;  %v1352_v48 = vunpack.c.l.b16 %v1217_v24  ;;  %vm9395_vm6 = vmpackc.low %vm9381_vm3, %vm9371_vm8 }
 0x108   : > { %v2562_v45 = vshrl.u32 %v2545_v11, 16  ;;  %v2288_v29 = vrot.slane %v2286_v18, 1  ;;  %v2565_v46 = vshll.u32 %v2545_v11, 16  ;;  %v1353_v22 = vunpack.c.h.b16 %v1217_v24  ;;  %vm9417_vm3 = vmpackc.low %vm9342_vm13, %vm9337_vm4 }
 0x109   : > { %8327 = vst [vmem:[#allocation2 + $0x20] sm:$0xff] %v8114_v20   ;;  %v1681_v49 = vrot.slane %v1679_v12, 3  ;;  %v1684_v56 = vrot.slane %v1682_v40, 4  ;;  %v534_v61 = vadd.f32 %v9060_v38, %v533_v47  ;;  %v516_v8 = vpop.f32.mrf.mxu0  ;;  %v2290_v16 = vshrl.u32 %v9363_v32, 16  ;;  %vm11429_vm13 = vmpackc.low %vm9366_vm1, %vm9366_vm1 }
 0x10a   : > { %v2564_v57 = vrot.slane %v2562_v45, 3  ;;  %v2289_v54 = vsel %vm11418_vm12, %v2284_v42, %v2288_v29  ;;  %v2567_v35 = vrot.slane %v2565_v46, 4  ;;  %v11419_v21 = vmov 0 }
 0x10b   : > { %v11420_v21 = vsel %vm9395_vm6, 4294967295, %v11419_v21  ;;  %v2480_v30 = vsel %vm9256_vm15, %v2463_v14, 0  ;;  %v9402_v1 = vadd.f32 %v9060_v38, %v516_v8  ;;  %2407 = vmatmul.bf16.gmra.mxu0 %v2289_v54  ;;  %v9404_v42 = vor.u32 %v1684_v56, %v1681_v49 }
 0x10c   : > { %11421 = vst [vmem:[#allocation26_spill] sm:$0xff] %v11420_v21  ;;  %v554_v4 = vmax.f32 %v534_v61, 0.0  ;;  %vm9407_vm12 = vcmp.ne.s32.totalorder %v1352_v48, %v8923_v9  ;;  %v9411_v52 = vor.u32 %v2567_v35, %v2564_v57  ;;  %v11424_v11 = vmov 0 }
 0x10d   : > { %v11425_v11 = vsel %vm9417_vm3, 4294967295, %v11424_v11  ;;  %vm9422_vm8 = vcmp.ne.s32.totalorder %v1353_v22, %v8930_v13  ;;  %vm1053_vm7 = vcmp.lt.s32.totalorder %v903_v53, 15  ;;  %v2000_v18 = vrot.slane %v9225_v55, 4 }
 0x10e   : > { %vm11428_vm15 = vsmask.f32 4352  ;;  %v8134_v43 = vpack.c.bf16 %v554_v4, %v553_v37  ;;  %v1428_v39 = vsel %vm9395_vm6, %v1066_v19, 0  ;;  %vm1904_vm4 = vmpackc.low %vm1053_vm7, %vm1053_vm7  ;;  %v1133_v50 = vsel %vm11429_vm13, 65537, %v8678_v36  ;;  %v9472_v4 = vpop.f32.mrf.mxu1 }
 0x10f   : > { %v1686_v24 = vsel %vm11428_vm15, %v9285_v15, %v9404_v42  ;;  %vm11430_vm11 = vmmov %vm11428_vm15  ;;  %v11431_v15 = vmov 0  ;;  %v1920_v53 = vsel %vm1904_vm4, 65537, %v8678_v36  ;;  %v2008_v33 = vsel %vm8911_vm10, %v2000_v18, %v8915_v6  ;;  %v536_v22 = vpop.f32.mrf.mxu2 }
 0x110   : > { %1810 = vmatmul.bf16.gmra.mxu3 %v1686_v24  ;;  %v2569_v55 = vsel %vm11430_vm11, %v2560_v60, %v9411_v52  ;;  %vm9444_vm15 = vmpackc.low %vm9359_vm9, %vm9354_vm14  ;;  %v1224_v37 = vshll.u32 %v1133_v50, 16  ;;  %v547_v20 = vmax.f32 %v9402_v1, 0.0  ;;  %8331 = vst [vmem:[#allocation2 + $0x40] sm:$0xff] %v8134_v43   ;;  %v11433_v60 = vmov 0  ;;  %v7895_v40 = vld [vmem:[#allocation2 + $0x20] sm:$0xff]  ;;  %v7942_v43 = vld [vmem:[#allocation8 + $0x110] sm:$0xff] }
 0x111   : > { %v11432_v15 = vsel %vm9444_vm15, 4294967295, %v11431_v15  ;;  %2697 = vmatmul.bf16.vlgmr.msrb.gmra.mxu1 %v2569_v55  ;;  %vm9457_vm11 = vmpackc.low %vm9422_vm8, %vm9407_vm12  ;;  %v2011_v23 = vshrl.u32 %v1920_v53, 16  ;;  %v2014_v28 = vshll.u32 %v1920_v53, 16  ;;  %v2129_v12 = vunpack.c.l.b16 %v2008_v33  ;;  %v1852_v45 = vld [vmem:[#allocation2 + $0x20] sm:$0xf]  ;;  %v518_v19 = vpop.f32.mrf.mxu0  ;;  %1591 = vmatmul.bf16.gmra.mxu2 %v7895_v40 }
 0x112   : > { %v11434_v60 = vsel %vm9457_vm11, 4294967295, %v11433_v60  ;;  %v1853_v14 = vld [vmem:[#allocation2 + $0x24] sm:$0xf]  ;;  %v2292_v46 = vor.u32 %v2290_v16, %v2288_v29  ;;  %v1640_v47 = vunpack.c.l.b16 %v1428_v39  ;;  %v2531_v48 = vunpack.c.l.b16 %v2480_v30  ;;  %v1067_v61 = vld [vmem:[#allocation2 + $0x20] sm:$0xf]  ;;  %2872 = vmatpush.bf16.msra.mxu2 %v7942_v43 }
 0x113   : > { %11435 = vst [vmem:[#allocation27_spill] sm:$0xff] %v11434_v60  ;;  %v9461_v49 = vrot.slane %v1224_v37, 5  ;;  %v2198_v56 = vsel %vm9417_vm3, %v1852_v45, 0  ;;  %v2199_v57 = vsel %vm9444_vm15, %v1853_v14, 0  ;;  %v2464_v8 = vld [vmem:[#allocation2 + $0x20] sm:$0xf]  ;;  %v537_v54 = vadd.f32 %v9060_v38, %v536_v22 }
 0x114   : > { %v2130_v35 = vunpack.c.h.b16 %v2008_v33  ;;  %v2249_v1 = vunpack.c.l.b16 %v2198_v56  ;;  %v2250_v29 = vunpack.c.l.b16 %v2199_v57  ;;  %v1429_v16 = vsel %vm9457_vm11, %v1067_v61, 0 }
 0x115   : > { %v2481_v30 = vsel %vm9318_vm2, %v2464_v8, 0  ;;  %v519_v32 = vadd.f32 %v9060_v38, %v518_v19  ;;  %v1641_v34 = vunpack.c.l.b16 %v1429_v16  ;;  %vm9476_vm7 = vcmp.ne.s32.totalorder %v2129_v12, %v8923_v9 }
 0x116   : > { %v2532_v18 = vunpack.c.l.b16 %v2481_v30  ;;  %v9480_v39 = vpack.c.b16 %v2250_v29, %v2249_v1  ;;  %v555_v55 = vmax.f32 %v537_v54, 0.0  ;;  %v9482_v53 = vrot.slane %v2011_v23, 7 }
 0x117   : > { %v1227_v33 = vsel %vm8992_vm5, %v9014_v10, %v9461_v49  ;;  %v548_v37 = vmax.f32 %v519_v32, 0.0  ;;  %v1654_v40 = vpack.c.b16 %v1641_v34, %v1640_v47  ;;  %v1228_v14 = vshrl.u32 %v1133_v50, 16  ;;  %v538_v47 = vpop.f32.mrf.mxu2 }
 0x118   : > { %v2546_v45 = vpack.c.b16 %v2532_v18, %v2531_v48  ;;  %v2294_v12 = vshll.u32 %v9480_v39, 16  ;;  %v2016_v22 = vor.u32 %v2014_v28, %v9482_v53  ;;  %vm9491_vm14 = vcmp.ne.s32.totalorder %v2130_v35, %v8930_v13 }
 0x119   : > { %v1359_v23 = vunpack.c.l.b16 %v1227_v33  ;;  %v8119_v57 = vpack.c.bf16 %v548_v37, %v547_v20  ;;  %v1688_v61 = vshrl.u32 %v1654_v40, 16  ;;  %v1691_v8 = vshll.u32 %v1654_v40, 16  ;;  %v2465_v40 = vld [vmem:[#allocation2 + $0x24] sm:$0xf]  ;;  %vm9522_vm4 = vmpackc.low %vm9491_vm14, %vm9476_vm7 }
 0x11a   : > { %v2571_v54 = vshrl.u32 %v2546_v45, 16  ;;  %v2296_v19 = vrot.slane %v2294_v12, 1  ;;  %v2574_v1 = vshll.u32 %v2546_v45, 16  ;;  %v2017_v50 = vsel %vm8911_vm10, %v8906_v2, %v2016_v22  ;;  %v9506_v45 = vld [vmem:[%s11149_s2] ss:$0 sm:$0xff]  ;;  %v733_v12 = vpop.f32.mrf.mxu1 }
 0x11b   : > { %v1230_v48 = vrot.slane %v1228_v14, 4  ;;  %8328 = vst [vmem:[#allocation2 + $0x28] sm:$0xff] %v8119_v57   ;;  %v1690_v28 = vrot.slane %v1688_v61, 3  ;;  %v1693_v29 = vrot.slane %v1691_v8, 4  ;;  %v539_v16 = vadd.f32 %v9060_v38, %v538_v47  ;;  %v1068_v61 = vld [vmem:[#allocation2 + $0x24] sm:$0xf] }
 0x11c   : > { %v2573_v35 = vrot.slane %v2571_v54, 3  ;;  %vm11440_vm9 = vsmask.f32 7424  ;;  %v2576_v20 = vrot.slane %v2574_v1, 4  ;;  %v2136_v32 = vunpack.c.l.b16 %v2017_v50 }
 0x11d   : > { %v2297_v30 = vsel %vm11440_vm9, %v2292_v46, %v2296_v19  ;;  %v2137_v34 = vunpack.c.h.b16 %v2017_v50  ;;  %v9500_v18 = vor.u32 %v1693_v29, %v1690_v28  ;;  %v556_v43 = vmax.f32 %v539_v16, 0.0 }
 0x11e   : > { %2412 = vmatmul.bf16.gmra.mxu0 %v2297_v30  ;;  %v1231_v37 = vor.u32 %v1230_v48, %v9461_v49  ;;  %v9509_v14 = vadd.s32 80, %v8882_v41  ;;  %v9511_v38 = vor.u32 %v2576_v20, %v2573_v35  ;;  %vm2140_vm1 = vcmp.ne.s32.totalorder %v2136_v32, %v8923_v9 }
 0x11f   : > { %vm2141_vm12 = vcmp.ne.s32.totalorder %v2137_v34, %v8930_v13  ;;  %v1360_v46 = vunpack.c.h.b16 %v1227_v33  ;;  %vm11441_vm8 = vsmask.f32 4352  ;;  %v8139_v22 = vpack.c.bf16 %v556_v43, %v555_v55 }
 0x120   : > { %v1695_v49 = vsel %vm11441_vm8, %v9404_v42, %v9500_v18  ;;  %v11442_v57 = vmov 0  ;;  %v1232_v8 = vrot.slane %v1231_v37, 4  ;;  %vm1363_vm13 = vcmp.ne.s32.totalorder %v1359_v23, %v8923_v9  ;;  %vm11444_vm9 = vmmov %vm11441_vm8 }
 0x121   : > { %v11443_v57 = vsel %vm9522_vm4, 4294967295, %v11442_v57  ;;  %1815 = vmatmul.bf16.gmra.mxu3 %v1695_v49  ;;  %v2578_v33 = vsel %vm11444_vm9, %v9411_v52, %v9511_v38  ;;  %vm9530_vm15 = vmpackc.low %vm2141_vm12, %vm2140_vm1  ;;  %v11445_v42 = vmov 0  ;;  %v2298_v24 = vshrl.u32 %v9480_v39, 16  ;;  %8332 = vst [vmem:[#allocation2 + $0x48] sm:$0xff] %v8139_v22  }
 0x122   : > { %v11446_v42 = vsel %vm9530_vm15, 4294967295, %v11445_v42  ;;  %vm1364_vm7 = vcmp.ne.s32.totalorder %v1360_v46, %v8930_v13  ;;  %v2482_v55 = vsel %vm9395_vm6, %v2465_v40, 0  ;;  %2702 = vmatmul.bf16.gmra.mxu1 %v2578_v33  ;;  %v1237_v56 = vsel %vm8992_vm5, %v1232_v8, %v8943_v27  ;;  %v7896_v1 = vld [vmem:[#allocation2 + $0x28] sm:$0xff] }
 0x123   : > { %11447 = vst [vmem:[#allocation28_spill] sm:$0xff] %v11446_v42  ;;  %vm9541_vm14 = vmpackc.low %vm1364_vm7, %vm1363_vm13  ;;  %v11448_v23 = vmov 0  ;;  %v732_v52 = vadd.f32 %v9506_v45, %v9472_v4  ;;  %v734_v39 = vadd.f32 %v9506_v45, %v733_v12  ;;  %v831_v54 = vadd.s32 88, %v8882_v41  ;;  %v1854_v47 = vld [vmem:[#allocation2 + $0x28] sm:$0xf]  ;;  %1596 = vmatmul.bf16.gmra.mxu2 %v7896_v1 }
 0x124   : > { %v11449_v23 = vsel %vm9541_vm14, 4294967295, %v11448_v23  ;;  %v1855_v50 = vld [vmem:[#allocation2 + $0x2c] sm:$0xf]  ;;  %v2300_v48 = vor.u32 %v2298_v24, %v2296_v19  ;;  %v1366_v28 = vunpack.c.l.b16 %v1237_v56  ;;  %v1367_v29 = vunpack.c.h.b16 %v1237_v56  ;;  %v1069_v4 = vld [vmem:[#allocation2 + $0x28] sm:$0xf] }
 0x125   : > { %11450 = vst [vmem:[#allocation29_spill] sm:$0xff] %v11449_v23  ;;  %v1430_v35 = vsel %vm9541_vm14, %v1068_v61, 0  ;;  %v2200_v16 = vsel %vm9522_vm4, %v1854_v47, 0  ;;  %v2201_v30 = vsel %vm9530_vm15, %v1855_v50, 0  ;;  %v2466_v32 = vld [vmem:[#allocation2 + $0x28] sm:$0xf]  ;;  %v2533_v34 = vunpack.c.l.b16 %v2482_v55 }
 0x126   : > { %v1642_v20 = vunpack.c.l.b16 %v1430_v35  ;;  %v2251_v43 = vunpack.c.l.b16 %v2200_v16  ;;  %v2252_v37 = vunpack.c.l.b16 %v2201_v30  ;;  %vm1370_vm1 = vcmp.ne.s32.totalorder %v1366_v28, %v8923_v9  ;;  %v1856_v30 = vld [vmem:[#allocation2 + $0x30] sm:$0xf] }
 0x127   : > { %vm1371_vm12 = vcmp.ne.s32.totalorder %v1367_v29, %v8930_v13  ;;  %v11451_v19 = vmov 0  ;;  %v2483_v40 = vsel %vm9457_vm11, %v2466_v32, 0  ;;  %v771_v46 = vmax.f32 %v732_v52, 0.0 }
 0x128   : > { %vm9557_vm8 = vmpackc.low %vm1371_vm12, %vm1370_vm1  ;;  %v772_v12 = vmax.f32 %v734_v39, 0.0  ;;  %v917_v49 = vand.u32 15, %v831_v54  ;;  %v2264_v22 = vpack.c.b16 %v2252_v37, %v2251_v43  ;;  %v2534_v8 = vunpack.c.l.b16 %v2483_v40  ;;  %v2467_v37 = vld [vmem:[#allocation2 + $0x2c] sm:$0xf] }
 0x129   : > { %v11452_v19 = vsel %vm9557_vm8, 4294967295, %v11451_v19  ;;  %v1431_v61 = vsel %vm9557_vm8, %v1069_v4, 0  ;;  %v2018_v33 = vrot.slane %v9482_v53, 4  ;;  %v910_v56 = vand.u32 15, %v9509_v14  ;;  %v7941_v40 = vld [vmem:[#allocation8 + $0x108] sm:$0xff] }
 0x12a   : > { %11453 = vst [vmem:[#allocation30_spill] sm:$0xff] %v11452_v19  ;;  %v1643_v24 = vunpack.c.l.b16 %v1431_v61  ;;  %v8144_v55 = vpack.c.bf16 %v772_v12, %v771_v46  ;;  %vm1055_vm13 = vcmp.lt.s32.totalorder %v917_v49, 15  ;;  %v2302_v1 = vshll.u32 %v2264_v22, 16  ;;  %v2468_v61 = vld [vmem:[#allocation2 + $0x30] sm:$0xf]  ;;  %2873 = vmatpush.bf16.msra.mxu2 %v7941_v40  ;;  %v7957_v19 = vld [vmem:[#allocation2 + $0x20] sm:$0xff] }
 0x12b   : > { %v2547_v47 = vpack.c.b16 %v2534_v8, %v2533_v34  ;;  %vm1906_vm9 = vmpackc.low %vm1055_vm13, %vm1055_vm13  ;;  %v2026_v52 = vsel %vm8911_vm10, %v2018_v33, %v8915_v6  ;;  %v2306_v39 = vshrl.u32 %v2264_v22, 16  ;;  %vm11456_vm1 = vsmask.f32 7424 }
 0x12c   : > { %v1655_v54 = vpack.c.b16 %v1643_v24, %v1642_v20  ;;  %8333 = vst [vmem:[#allocation2 + $0x50] sm:$0xff] %v8144_v55   ;;  %v1922_v50 = vsel %vm1906_vm9, 65537, %v8678_v36  ;;  %v2143_v28 = vunpack.c.l.b16 %v2026_v52  ;;  %v2144_v29 = vunpack.c.h.b16 %v2026_v52  ;;  %v751_v20 = vpop.f32.mrf.mxu3 }
 0x12d   : > { %v2304_v53 = vrot.slane %v2302_v1, 1  ;;  %v2580_v35 = vshrl.u32 %v2547_v47, 16  ;;  %v2583_v16 = vshll.u32 %v2547_v47, 16  ;;  %v2029_v4 = vshrl.u32 %v1922_v50, 16 }
 0x12e   : > { %v1697_v14 = vshrl.u32 %v1655_v54, 16  ;;  %v1700_v32 = vshll.u32 %v1655_v54, 16  ;;  %v2032_v34 = vshll.u32 %v1922_v50, 16  ;;  %vm9572_vm7 = vcmp.ne.s32.totalorder %v2143_v28, %v8923_v9 }
 0x12f   : > { %v2305_v46 = vsel %vm11456_vm1, %v2300_v48, %v2304_v53  ;;  %v2582_v12 = vrot.slane %v2580_v35, 3  ;;  %v2585_v49 = vrot.slane %v2583_v16, 4  ;;  %v2031_v22 = vrot.slane %v2029_v4, 7 }
 0x130   : > { %2417 = vmatmul.bf16.gmra.mxu0 %v2305_v46  ;;  %v1699_v8 = vrot.slane %v1697_v14, 3  ;;  %v1702_v33 = vrot.slane %v1700_v32, 4  ;;  %vm2148_vm12 = vcmp.ne.s32.totalorder %v2144_v29, %v8930_v13  ;;  %v9578_v24 = vor.u32 %v2306_v39, %v2304_v53  ;;  %v7897_v14 = vld [vmem:[#allocation2 + $0x30] sm:$0xff] }
 0x131   : > { %v9580_v55 = vor.u32 %v2585_v49, %v2582_v12  ;;  %v2034_v1 = vor.u32 %v2032_v34, %v2031_v22  ;;  %vm9584_vm13 = vmpackc.low %vm2148_vm12, %vm9572_vm7  ;;  %v11457_v47 = vmov 0  ;;  %vm1038_vm9 = vcmp.ge.s32.totalorder %v910_v56, 1  ;;  %v1857_v32 = vld [vmem:[#allocation2 + $0x34] sm:$0xf] }
 0x132   : > { %v11458_v47 = vsel %vm9584_vm13, 4294967295, %v11457_v47  ;;  %v2484_v48 = vsel %vm9541_vm14, %v2467_v37, 0  ;;  %v9590_v52 = vor.u32 %v1702_v33, %v1699_v8  ;;  %v2202_v39 = vsel %vm9584_vm13, %v1856_v30, 0  ;;  %vm1119_vm1 = vmpackc.low %vm1038_vm9, %vm1038_vm9 }
 0x133   : > { %v2485_v54 = vsel %vm9557_vm8, %v2468_v61, 0  ;;  %v2535_v50 = vunpack.c.l.b16 %v2484_v48  ;;  %vm11459_vm7 = vsmask.f32 4352  ;;  %v2035_v56 = vsel %vm8911_vm10, %v8906_v2, %v2034_v1  ;;  %1601 = vmatmul.bf16.gmra.mxu2 %v7897_v14 }
 0x134   : > { %v2587_v28 = vsel %vm11459_vm7, %v9511_v38, %v9580_v55  ;;  %v2253_v29 = vunpack.c.l.b16 %v2202_v39  ;;  %v1135_v53 = vsel %vm1119_vm1, 65537, %v8678_v36  ;;  %vm11460_vm12 = vmmov %vm11459_vm7  ;;  %v2150_v16 = vunpack.c.l.b16 %v2035_v56  ;;  %v753_v46 = vpop.f32.mrf.mxu3 }
 0x135   : > { %v1704_v35 = vsel %vm11460_vm12, %v9500_v18, %v9590_v52  ;;  %2707 = vmatmul.bf16.gmra.mxu1 %v2587_v28  ;;  %v2151_v30 = vunpack.c.h.b16 %v2035_v56  ;;  %v1244_v4 = vshll.u32 %v1135_v53, 16  ;;  %v1248_v34 = vshrl.u32 %v1135_v53, 16 }
 0x136   : > { %1820 = vmatmul.bf16.gmra.mxu3 %v1704_v35  ;;  %v2536_v38 = vunpack.c.l.b16 %v2485_v54  ;;  %v752_v43 = vadd.f32 %v9506_v45, %v751_v20  ;;  %v833_v37 = vadd.s32 104, %v8882_v41  ;;  %vm2154_vm9 = vcmp.ne.s32.totalorder %v2150_v16, %v8923_v9 }
 0x137   : > { %vm2155_vm1 = vcmp.ne.s32.totalorder %v2151_v30, %v8930_v13  ;;  %v1246_v40 = vrot.slane %v1244_v4, 5  ;;  %v2036_v18 = vrot.slane %v2031_v22, 4  ;;  %v11461_v12 = vmov 0 }
 0x138   : > { %vm9610_vm7 = vmpackc.low %vm2155_vm1, %vm2154_vm9  ;;  %v1250_v49 = vrot.slane %v1248_v34, 4  ;;  %v2548_v61 = vpack.c.b16 %v2536_v38, %v2535_v50  ;;  %v779_v8 = vmax.f32 %v752_v43, 0.0  ;;  %v754_v33 = vadd.f32 %v9506_v45, %v753_v46  ;;  %v1070_v50 = vld [vmem:[#allocation2 + $0x2c] sm:$0xf] }
 0x139   : > { %v11462_v12 = vsel %vm9610_vm7, 4294967295, %v11461_v12  ;;  %v2203_v20 = vsel %vm9610_vm7, %v1857_v32, 0  ;;  %v1247_v1 = vsel %vm8992_vm5, %v9014_v10, %v1246_v40  ;;  %v931_v48 = vand.u32 15, %v833_v37 }
 0x13a   : > { %11463 = vst [vmem:[#allocation31_spill] sm:$0xff] %v11462_v12  ;;  %v2044_v22 = vsel %vm8911_vm10, %v2036_v18, %v8915_v6  ;;  %v2254_v39 = vunpack.c.l.b16 %v2203_v20  ;;  %v1251_v54 = vor.u32 %v1250_v49, %v1246_v40  ;;  %v1373_v28 = vunpack.c.l.b16 %v1247_v1  ;;  %v1071_v18 = vld [vmem:[#allocation2 + $0x30] sm:$0xf] }
 0x13b   : > { %v1374_v56 = vunpack.c.h.b16 %v1247_v1  ;;  %v2589_v53 = vshrl.u32 %v2548_v61, 16  ;;  %v2592_v35 = vshll.u32 %v2548_v61, 16  ;;  %v780_v16 = vmax.f32 %v754_v33, 0.0 }
 0x13c   : > { %vm1057_vm12 = vcmp.lt.s32.totalorder %v931_v48, 15  ;;  %v2265_v30 = vpack.c.b16 %v2254_v39, %v2253_v29  ;;  %v1252_v4 = vrot.slane %v1251_v54, 4  ;;  %vm1377_vm9 = vcmp.ne.s32.totalorder %v1373_v28, %v8923_v9  ;;  %v2469_v54 = vld [vmem:[#allocation2 + $0x34] sm:$0xf] }
 0x13d   : > { %vm1378_vm1 = vcmp.ne.s32.totalorder %v1374_v56, %v8930_v13  ;;  %vm1908_vm7 = vmpackc.low %vm1057_vm12, %vm1057_vm12  ;;  %v11464_v14 = vmov 0  ;;  %v2591_v32 = vrot.slane %v2589_v53, 3  ;;  %v2594_v34 = vrot.slane %v2592_v35, 4 }
 0x13e   : > { %vm9625_vm13 = vmpackc.low %vm1378_vm1, %vm1377_vm9  ;;  %v8164_v38 = vpack.c.bf16 %v780_v16, %v779_v8  ;;  %v1924_v43 = vsel %vm1908_vm7, 65537, %v8678_v36  ;;  %v2310_v37 = vshll.u32 %v2265_v30, 16  ;;  %v1257_v29 = vsel %vm8992_vm5, %v1252_v4, %v8943_v27  ;;  %v1858_v16 = vld [vmem:[#allocation2 + $0x38] sm:$0xf] }
 0x13f   : > { %v11465_v14 = vsel %vm9625_vm13, 4294967295, %v11464_v14  ;;  %v1432_v40 = vsel %vm9625_vm13, %v1070_v50, 0  ;;  %v2047_v46 = vshrl.u32 %v1924_v43, 16  ;;  %v1380_v49 = vunpack.c.l.b16 %v1257_v29  ;;  %v2470_v50 = vld [vmem:[#allocation2 + $0x38] sm:$0xf] }
 0x140   : > { %11466 = vst [vmem:[#allocation32_spill] sm:$0xff] %v11465_v14  ;;  %v1381_v61 = vunpack.c.h.b16 %v1257_v29  ;;  %v1644_v33 = vunpack.c.l.b16 %v1432_v40  ;;  %v9635_v20 = vor.u32 %v2594_v34, %v2591_v32  ;;  %v2312_v1 = vrot.slane %v2310_v37, 1  ;;  %v736_v29 = vpop.f32.mrf.mxu1  ;;  %v756_v40 = vpop.f32.mrf.mxu3  ;;  %v7958_v14 = vld [vmem:[#allocation2 + $0x28] sm:$0xff] }
 0x141   : > { %8337 = vst [vmem:[#allocation2 + $0x70] sm:$0xff] %v8164_v38   ;;  %v9637_v8 = vrot.slane %v2047_v46, 7  ;;  %v2050_v48 = vshll.u32 %v1924_v43, 16  ;;  %v2157_v39 = vunpack.c.l.b16 %v2044_v22  ;;  %vm1384_vm7 = vcmp.ne.s32.totalorder %v1380_v49, %v8923_v9  ;;  %v7940_v46 = vld [vmem:[#allocation8 + $0x100] sm:$0xff] }
 0x142   : > { %vm1385_vm12 = vcmp.ne.s32.totalorder %v1381_v61, %v8930_v13  ;;  %vm11467_vm9 = vsmask.f32 4352  ;;  %v2158_v56 = vunpack.c.h.b16 %v2044_v22  ;;  %vm11468_vm1 = vsmask.f32 7424  ;;  %2874 = vmatpush.bf16.msra.mxu2 %v7940_v46 }
 0x143   : > { %v2596_v28 = vsel %vm11467_vm9, %v9580_v55, %v9635_v20  ;;  %v2313_v53 = vsel %vm11468_vm1, %v9578_v24, %v2312_v1  ;;  %vm9646_vm15 = vmpackc.low %vm1385_vm12, %vm1384_vm7  ;;  %v11469_v35 = vmov 0  ;;  %v2052_v4 = vor.u32 %v2050_v48, %v9637_v8 }
 0x144   : > { %v11470_v35 = vsel %vm9646_vm15, 4294967295, %v11469_v35  ;;  %vm2161_vm4 = vcmp.ne.s32.totalorder %v2157_v39, %v8923_v9  ;;  %v2314_v32 = vshrl.u32 %v2265_v30, 16  ;;  %2422 = vmatmul.bf16.gmra.mxu0 %v2313_v53  ;;  %v1433_v34 = vsel %vm9646_vm15, %v1071_v18, 0 }
 0x145   : > { %11471 = vst [vmem:[#allocation33_spill] sm:$0xff] %v11470_v35  ;;  %vm2162_vm9 = vcmp.ne.s32.totalorder %v2158_v56, %v8930_v13  ;;  %v832_v55 = vadd.s32 96, %v8882_v41  ;;  %v2486_v24 = vsel %vm9625_vm13, %v2469_v54, 0  ;;  %v1645_v22 = vunpack.c.l.b16 %v1433_v34  ;;  %2712 = vmatmul.bf16.gmra.mxu1 %v2596_v28  ;;  %v7898_v54 = vld [vmem:[#allocation2 + $0x38] sm:$0xff] }
 0x146   : > { %v2053_v38 = vsel %vm8911_vm10, %v8906_v2, %v2052_v4  ;;  %vm9661_vm7 = vmpackc.low %vm2162_vm9, %vm2161_vm4  ;;  %v11472_v43 = vmov 0  ;;  %v9665_v30 = vor.u32 %v2314_v32, %v2312_v1  ;;  %v2487_v37 = vsel %vm9646_vm15, %v2470_v50, 0  ;;  %v1859_v56 = vld [vmem:[#allocation2 + $0x3c] sm:$0xf]  ;;  %1606 = vmatmul.bf16.gmra.mxu2 %v7898_v54 }
 0x147   : > { %v11473_v43 = vsel %vm9661_vm7, 4294967295, %v11472_v43  ;;  %v2164_v18 = vunpack.c.l.b16 %v2053_v38  ;;  %v2165_v49 = vunpack.c.h.b16 %v2053_v38  ;;  %v2204_v61 = vsel %vm9661_vm7, %v1858_v16, 0 }
 0x148   : > { %11474 = vst [vmem:[#allocation34_spill] sm:$0xff] %v11473_v43  ;;  %v924_v48 = vand.u32 15, %v832_v55  ;;  %v1656_v39 = vpack.c.b16 %v1645_v22, %v1644_v33  ;;  %v2255_v53 = vunpack.c.l.b16 %v2204_v61  ;;  %v2537_v4 = vunpack.c.l.b16 %v2486_v24  ;;  %v7971_v24 = vld [vmem:[#allocation8 + $0x1b8] sm:$0xff]  ;;  %v738_v50 = vpop.f32.mrf.mxu1 }
 0x149   : > { %v2538_v1 = vunpack.c.l.b16 %v2487_v37  ;;  %vm2168_vm4 = vcmp.ne.s32.totalorder %v2164_v18, %v8923_v9  ;;  %vm2169_vm12 = vcmp.ne.s32.totalorder %v2165_v49, %v8930_v13  ;;  %v737_v28 = vadd.f32 %v9506_v45, %v736_v29  ;;  %3445 = vmatpush.bf16.msra.mxu0 %v7971_v24 }
 0x14a   : > { %vm9673_vm1 = vcmp.ge.s32.totalorder %v924_v48, 1  ;;  %v1706_v32 = vshrl.u32 %v1656_v39, 16  ;;  %v1709_v16 = vshll.u32 %v1656_v39, 16  ;;  %vm9678_vm9 = vmpackc.low %vm2169_vm12, %vm2168_vm4  ;;  %v11477_v33 = vmov 0 }
 0x14b   : > { %v11478_v33 = vsel %vm9678_vm9, 4294967295, %v11477_v33  ;;  %v2549_v34 = vpack.c.b16 %v2538_v1, %v2537_v4  ;;  %v757_v55 = vadd.f32 %v9506_v45, %v756_v40  ;;  %v2205_v22 = vsel %vm9678_vm9, %v1859_v56, 0  ;;  %vm1121_vm7 = vmpackc.low %vm9673_vm1, %vm9673_vm1 }
 0x14c   : > { %11479 = vst [vmem:[#allocation35_spill] sm:$0xff] %v11478_v33  ;;  %v773_v38 = vmax.f32 %v737_v28, 0.0  ;;  %v835_v37 = vadd.s32 120, %v8882_v41  ;;  %v2054_v29 = vrot.slane %v9637_v8, 4  ;;  %v1708_v46 = vrot.slane %v1706_v32, 3 }
 0x14d   : > { %v1711_v18 = vrot.slane %v1709_v16, 4  ;;  %v2256_v49 = vunpack.c.l.b16 %v2205_v22  ;;  %v1137_v61 = vsel %vm1121_vm7, 65537, %v8678_v36  ;;  %v2598_v39 = vshrl.u32 %v2549_v34, 16  ;;  %v758_v16 = vpop.f32.mrf.mxu3 }
 0x14e   : > { %v1264_v40 = vshll.u32 %v1137_v61, 16  ;;  %v1268_v48 = vshrl.u32 %v1137_v61, 16  ;;  %v2601_v54 = vshll.u32 %v2549_v34, 16  ;;  %v781_v1 = vmax.f32 %v757_v55, 0.0 }
 0x14f   : > { %v9691_v56 = vor.u32 %v1711_v18, %v1708_v46  ;;  %v9693_v4 = vpack.c.b16 %v2256_v49, %v2255_v53  ;;  %v945_v28 = vand.u32 15, %v835_v37  ;;  %v2600_v8 = vrot.slane %v2598_v39, 3 }
 0x150   : > { %v1266_v33 = vrot.slane %v1264_v40, 5  ;;  %v1270_v43 = vrot.slane %v1268_v48, 4  ;;  %v2603_v32 = vrot.slane %v2601_v54, 4  ;;  %vm11480_vm7 = vsmask.f32 4352 }
 0x151   : > { %v1713_v24 = vsel %vm11480_vm7, %v9590_v52, %v9691_v56  ;;  %v2318_v22 = vshll.u32 %v9693_v4, 16  ;;  %v739_v34 = vadd.f32 %v9506_v45, %v738_v50  ;;  %v759_v46 = vadd.f32 %v9506_v45, %v758_v16  ;;  %v1072_v52 = vld [vmem:[#allocation2 + $0x34] sm:$0xf]  ;;  %vm11481_vm1 = vmmov %vm11480_vm7 }
 0x152   : > { %1825 = vmatmul.bf16.gmra.mxu3 %v1713_v24  ;;  %v1267_v53 = vsel %vm8992_vm5, %v9014_v10, %v1266_v33  ;;  %v1271_v55 = vor.u32 %v1270_v43, %v1266_v33  ;;  %v9704_v37 = vor.u32 %v2603_v32, %v2600_v8  ;;  %vm1059_vm4 = vcmp.lt.s32.totalorder %v945_v28, 15 }
 0x153   : > { %v2320_v18 = vrot.slane %v2318_v22, 1  ;;  %v1387_v49 = vunpack.c.l.b16 %v1267_v53  ;;  %v1388_v61 = vunpack.c.h.b16 %v1267_v53  ;;  %v774_v40 = vmax.f32 %v739_v34, 0.0  ;;  %vm1910_vm12 = vmpackc.low %vm1059_vm4, %vm1059_vm4  ;;  %v2471_v34 = vld [vmem:[#allocation2 + $0x3c] sm:$0xf] }
 0x154   : > { %v1272_v48 = vrot.slane %v1271_v55, 4  ;;  %v2605_v39 = vsel %vm11481_vm1, %v9635_v20, %v9704_v37  ;;  %v782_v54 = vmax.f32 %v759_v46, 0.0  ;;  %v1926_v50 = vsel %vm1910_vm12, 65537, %v8678_v36  ;;  %v1073_v46 = vld [vmem:[#allocation2 + $0x38] sm:$0xf] }
 0x155   : > { %vm11482_vm7 = vsmask.f32 7424  ;;  %vm1391_vm9 = vcmp.ne.s32.totalorder %v1387_v49, %v8923_v9  ;;  %vm1392_vm15 = vcmp.ne.s32.totalorder %v1388_v61, %v8930_v13  ;;  %v8149_v33 = vpack.c.bf16 %v774_v40, %v773_v38  ;;  %2717 = vmatmul.bf16.gmra.mxu1 %v2605_v39  ;;  %v2472_v61 = vld [vmem:[#allocation2 + $0x40] sm:$0xf]  ;;  %v11543_v23 = vld [vmem:[#allocation35_spill] sm:$0xff] }
 0x156   : > { %v2321_v43 = vsel %vm11482_vm7, %v9665_v30, %v2320_v18  ;;  %v1277_v28 = vsel %vm8992_vm5, %v1272_v48, %v8943_v27  ;;  %vm9717_vm4 = vmpackc.low %vm1392_vm15, %vm1391_vm9  ;;  %v11483_v8 = vmov 0  ;;  %v8169_v20 = vpack.c.bf16 %v782_v54, %v781_v1 }
 0x157   : > { %2427 = vmatmul.bf16.gmra.mxu0 %v2321_v43  ;;  %v11484_v8 = vsel %vm9717_vm4, 4294967295, %v11483_v8  ;;  %v2062_v32 = vsel %vm8911_vm10, %v2054_v29, %v8915_v6  ;;  %v2065_v30 = vshrl.u32 %v1926_v50, 16  ;;  %v1394_v16 = vunpack.c.l.b16 %v1277_v28  ;;  %8334 = vst [vmem:[#allocation2 + $0x58] sm:$0xff] %v8149_v33   ;;  %v7899_v6 = vld [vmem:[#allocation2 + $0x40] sm:$0xff]  ;;  %v761_v43 = vpop.f32.mrf.mxu3  ;;  %v7970_v33 = vld [vmem:[#allocation8 + $0x1b0] sm:$0xff] }
 0x158   : > { %11485 = vst [vmem:[#allocation36_spill] sm:$0xff] %v11484_v8  ;;  %v1395_v24 = vunpack.c.h.b16 %v1277_v28  ;;  %v1434_v38 = vsel %vm9717_vm4, %v1072_v52, 0  ;;  %v2068_v22 = vshll.u32 %v1926_v50, 16  ;;  %v2171_v1 = vunpack.c.l.b16 %v2062_v32  ;;  %v1860_v29 = vld [vmem:[#allocation2 + $0x40] sm:$0xf]  ;;  %v7955_v50 = vld [vmem:[#allocation8 + $0x178] sm:$0xff]  ;;  %1611 = vmatmul.bf16.gmra.mxu2 %v7899_v6  ;;  %3446 = vmatpush.bf16.msra.mxu0 %v7970_v33 }
 0x159   : > { %v1646_v53 = vunpack.c.l.b16 %v1434_v38  ;;  %8338 = vst [vmem:[#allocation2 + $0x78] sm:$0xff] %v8169_v20   ;;  %v9726_v55 = vrot.slane %v2065_v30, 7  ;;  %v2172_v49 = vunpack.c.h.b16 %v2062_v32  ;;  %vm1398_vm15 = vcmp.ne.s32.totalorder %v1394_v16, %v8923_v9  ;;  %v7987_v32 = vld [vmem:[#allocation8 + $0x238] sm:$0xff]  ;;  %3150 = vmatpush.bf16.msra.mxu3 %v7955_v50  ;;  %v7968_v33 = vld [vmem:[#allocation8 + $0x1a0] sm:$0xff] }
 0x15a   : > { %vm1399_vm9 = vcmp.ne.s32.totalorder %v1395_v24, %v8930_v13  ;;  %v2322_v40 = vshrl.u32 %v9693_v4, 16  ;;  %v834_v52 = vadd.s32 112, %v8882_v41  ;;  %v11486_v48 = vmov 0  ;;  %3906 = vmatpush.bf16.msrb.mxu2 %v7987_v32 }
 0x15b   : > { %vm9732_vm12 = vmpackc.low %vm1399_vm9, %vm1398_vm15  ;;  %v2070_v39 = vor.u32 %v2068_v22, %v9726_v55  ;;  %vm2175_vm1 = vcmp.ne.s32.totalorder %v2171_v1, %v8923_v9  ;;  %vm2176_vm7 = vcmp.ne.s32.totalorder %v2172_v49, %v8930_v13  ;;  %v2488_v54 = vsel %vm9717_vm4, %v2471_v34, 0  ;;  %v7954_v22 = vld [vmem:[#allocation8 + $0x170] sm:$0xff]  ;;  %v7969_v34 = vld [vmem:[#allocation8 + $0x1a8] sm:$0xff] }
 0x15c   : > { %v11487_v48 = vsel %vm9732_vm12, 4294967295, %v11486_v48  ;;  %v1435_v4 = vsel %vm9732_vm12, %v1073_v46, 0  ;;  %vm9743_vm15 = vmpackc.low %vm2176_vm7, %vm2175_vm1  ;;  %v11489_v41 = vmov 0  ;;  %v938_v28 = vand.u32 15, %v834_v52  ;;  %v7979_v46 = vld [vmem:[#allocation8 + $0x1f8] sm:$0xff]  ;;  %3447 = vmatpush.bf16.msra.mxu0 %v7969_v34 }
 0x15d   : > { %11488 = vst [vmem:[#allocation37_spill] sm:$0xff] %v11487_v48  ;;  %v11490_v41 = vsel %vm9743_vm15, 4294967295, %v11489_v41  ;;  %v2489_v20 = vsel %vm9732_vm12, %v2472_v61, 0  ;;  %v1647_v30 = vunpack.c.l.b16 %v1435_v4  ;;  %v2071_v16 = vsel %vm8911_vm10, %v8906_v2, %v2070_v39  ;;  %v1861_v52 = vld [vmem:[#allocation2 + $0x44] sm:$0xf]  ;;  %3623 = vmatpush.bf16.msra.mxu1 %v7979_v46  ;;  %3151 = vmatpush.bf16.msra.mxu3 %v7954_v22 }
 0x15e   : > { %11491 = vst [vmem:[#allocation38_spill] sm:$0xff] %v11490_v41  ;;  %v2206_v24 = vsel %vm9743_vm15, %v1860_v29, 0  ;;  %v9754_v38 = vor.u32 %v2322_v40, %v2320_v18  ;;  %v2178_v1 = vunpack.c.l.b16 %v2071_v16  ;;  %v2179_v49 = vunpack.c.h.b16 %v2071_v16 }
 0x15f   : > { %vm1042_vm9 = vcmp.ge.s32.totalorder %v938_v28, 1  ;;  %v2539_v61 = vunpack.c.l.b16 %v2488_v54  ;;  %v1657_v6 = vpack.c.b16 %v1647_v30, %v1646_v53  ;;  %v2257_v4 = vunpack.c.l.b16 %v2206_v24  ;;  %v741_v28 = vpop.f32.mrf.mxu1 }
 0x160   : > { %vm1123_vm1 = vmpackc.low %vm1042_vm9, %vm1042_vm9  ;;  %v2540_v2 = vunpack.c.l.b16 %v2489_v20  ;;  %v762_v5 = vadd.f32 %v9506_v45, %v761_v43  ;;  %vm2182_vm10 = vcmp.ne.s32.totalorder %v2178_v1, %v8923_v9  ;;  %vm2183_vm7 = vcmp.ne.s32.totalorder %v2179_v49, %v8930_v13  ;;  %v7953_v43 = vld [vmem:[#allocation8 + $0x168] sm:$0xff]  ;;  %v763_v1 = vpop.f32.mrf.mxu3  ;;  %3448 = vmatpush.bf16.msra.mxu0 %v7968_v33 }
 0x161   : > { %v1139_v18 = vsel %vm1123_vm1, 65537, %v8678_v36  ;;  %v2072_v29 = vrot.slane %v9726_v55, 4  ;;  %v1715_v40 = vshrl.u32 %v1657_v6, 16  ;;  %v1718_v39 = vshll.u32 %v1657_v6, 16  ;;  %vm9761_vm15 = vmpackc.low %vm2183_vm7, %vm2182_vm10  ;;  %3152 = vmatpush.bf16.msra.mxu3 %v7953_v43 }
 0x162   : > { %v11492_v54 = vmov 0  ;;  %v1284_v53 = vshll.u32 %v1139_v18, 16  ;;  %v1288_v50 = vshrl.u32 %v1139_v18, 16  ;;  %v2207_v20 = vsel %vm9761_vm15, %v1861_v52, 0  ;;  %v7952_v52 = vld [vmem:[#allocation8 + $0x160] sm:$0xff] }
 0x163   : > { %v11493_v54 = vsel %vm9761_vm15, 4294967295, %v11492_v54  ;;  %v2550_v32 = vpack.c.b16 %v2540_v2, %v2539_v61  ;;  %v783_v36 = vmax.f32 %v762_v5, 0.0  ;;  %v9768_v55 = vadd.f32 %v9506_v45, %v741_v28  ;;  %v7967_v5 = vld [vmem:[#allocation8 + $0x198] sm:$0xff] }
 0x164   : > { %11494 = vst [vmem:[#allocation39_spill] sm:$0xff] %v11493_v54  ;;  %v1717_v30 = vrot.slane %v1715_v40, 3  ;;  %v1720_v16 = vrot.slane %v1718_v39, 4  ;;  %v2258_v24 = vunpack.c.l.b16 %v2207_v20  ;;  %v1286_v46 = vrot.slane %v1284_v53, 5  ;;  %3449 = vmatpush.bf16.msra.mxu0 %v7967_v5 }
 0x165   : > { %v1290_v49 = vrot.slane %v1288_v50, 4  ;;  %v2607_v6 = vshrl.u32 %v2550_v32, 16  ;;  %v2610_v22 = vshll.u32 %v2550_v32, 16  ;;  %v764_v34 = vadd.f32 %v9506_v45, %v763_v1  ;;  %3153 = vmatpush.bf16.msra.mxu3 %v7952_v52  ;;  %v1862_v1 = vld [vmem:[#allocation2 + $0x48] sm:$0x1] }
 0x166   : > { %v9771_v18 = vor.u32 %v1720_v16, %v1717_v30  ;;  %v9773_v41 = vpack.c.b16 %v2258_v24, %v2257_v4  ;;  %v1287_v61 = vsel %vm8992_vm5, %v9014_v10, %v1286_v46  ;;  %v2185_v2 = vunpack.c.l.b16 %v2072_v29  ;;  %v1074_v30 = vld [vmem:[#allocation2 + $0x3c] sm:$0xf] }
 0x167   : > { %v1291_v40 = vor.u32 %v1290_v49, %v1286_v46  ;;  %v1401_v39 = vunpack.c.l.b16 %v1287_v61  ;;  %v1402_v53 = vunpack.c.h.b16 %v1287_v61  ;;  %v2609_v50 = vrot.slane %v2607_v6, 3  ;;  %v1075_v49 = vld [vmem:[#allocation2 + $0x40] sm:$0xf] }
 0x168   : > { %vm11495_vm9 = vsmask.f32 4352  ;;  %v2326_v4 = vshll.u32 %v9773_v41, 16  ;;  %v2612_v20 = vrot.slane %v2610_v22, 4  ;;  %v784_v32 = vmax.f32 %v764_v34, 0.0  ;;  %v766_v59 = vpop.f32.mrf.mxu3 }
 0x169   : > { %v1722_v28 = vsel %vm11495_vm9, %v9691_v56, %v9771_v18  ;;  %v1292_v16 = vrot.slane %v1291_v40, 4  ;;  %vm1405_vm1 = vcmp.ne.s32.totalorder %v1401_v39, %v8923_v9  ;;  %vm1406_vm10 = vcmp.ne.s32.totalorder %v1402_v53, %v8930_v13  ;;  %v2473_v34 = vld [vmem:[#allocation2 + $0x44] sm:$0xf]  ;;  %v7966_v40 = vld [vmem:[#allocation8 + $0x190] sm:$0xff] }
 0x16a   : > { %1830 = vmatmul.bf16.gmra.mxu3 %v1722_v28  ;;  %v2186_v43 = vunpack.c.h.b16 %v2072_v29  ;;  %v9784_v33 = vrot.slane %v2326_v4, 1  ;;  %vm9786_vm7 = vmpackc.low %vm1406_vm10, %vm1405_vm1  ;;  %v11496_v24 = vmov 0  ;;  %v9790_v46 = vor.u32 %v2612_v20, %v2609_v50  ;;  %v7924_v29 = vld [vmem:[#allocation2 + $0x10] sm:$0xff]  ;;  %v2474_v28 = vld [vmem:[#allocation2 + $0x48] sm:$0xf]  ;;  %3450 = vmatpush.bf16.msra.mxu0 %v7966_v40 }
 0x16b   : > { %v11497_v24 = vsel %vm9786_vm7, 4294967295, %v11496_v24  ;;  %v8174_v56 = vpack.c.bf16 %v784_v32, %v783_v36  ;;  %vm2189_vm9 = vcmp.ne.s32.totalorder %v2185_v2, %v8923_v9  ;;  %v1297_v6 = vsel %vm8992_vm5, %v1292_v16, %v8943_v27  ;;  %v7951_v27 = vld [vmem:[#allocation8 + $0x158] sm:$0xff]  ;;  %2875 = vmatmul.bf16.vlgmr.msra.gmra.mxu2 %v7924_v29  ;;  %v7978_v4 = vld [vmem:[#allocation8 + $0x1f0] sm:$0xff]  ;;  %v9816_v32 = vpop.f32.mrf.mxu2  ;;  %v743_v16 = vpop.f32.mrf.mxu1  ;;  %v7965_v29 = vld [vmem:[#allocation8 + $0x188] sm:$0xff] }
 0x16c   : > { %11498 = vst [vmem:[#allocation40_spill] sm:$0xff] %v11497_v24  ;;  %v775_v22 = vmax.f32 %v9768_v55, 0.0  ;;  %vm2190_vm1 = vcmp.ne.s32.totalorder %v2186_v43, %v8930_v13  ;;  %vm11499_vm10 = vsmask.f32 7424  ;;  %v1408_v61 = vunpack.c.l.b16 %v1297_v6  ;;  %v7986_v20 = vld [vmem:[#allocation8 + $0x230] sm:$0xff]  ;;  %3154 = vmatpush.bf16.msra.mxu3 %v7951_v27  ;;  %3624 = vmatpush.bf16.msra.mxu1 %v7978_v4 }
 0x16d   : > { %v2329_v36 = vsel %vm11499_vm10, %v9754_v38, %v9784_v33  ;;  %v1409_v52 = vunpack.c.h.b16 %v1297_v6  ;;  %v1436_v2 = vsel %vm9786_vm7, %v1074_v30, 0  ;;  %8339 = vst [vmem:[#allocation2 + $0x80] sm:$0xff] %v8174_v56   ;;  %vm9803_vm15 = vmpackc.low %vm2190_vm1, %vm2189_vm9  ;;  %v11500_v5 = vmov 0  ;;  %v7950_v43 = vld [vmem:[#allocation8 + $0x150] sm:$0xff]  ;;  %3907 = vmatpush.bf16.msrb.mxu2 %v7986_v20  ;;  %v7976_v20 = vld [vmem:[#allocation8 + $0x1e0] sm:$0xff] }
 0x16e   : > { %v11501_v5 = vsel %vm9803_vm15, 4294967295, %v11500_v5  ;;  %2432 = vmatmul.bf16.gmra.mxu0 %v2329_v36  ;;  %vm11503_vm5 = vsmask.f32 4352  ;;  %v2208_v38 = vsel %vm9803_vm15, %v1862_v1, 0  ;;  %v2330_v53 = vshrl.u32 %v9773_v41, 16  ;;  %v7977_v36 = vld [vmem:[#allocation8 + $0x1e8] sm:$0xff] }
 0x16f   : > { %11502 = vst [vmem:[#allocation41_spill] sm:$0xff] %v11501_v5  ;;  %v2614_v39 = vsel %vm11503_vm5, %v9704_v37, %v9790_v46  ;;  %v1415_v50 = vunpack.c.l.b16 %v9014_v10  ;;  %vm1412_vm9 = vcmp.ne.s32.totalorder %v1408_v61, %v8923_v9  ;;  %vm1413_vm1 = vcmp.ne.s32.totalorder %v1409_v52, %v8930_v13  ;;  %v1076_v52 = vld [vmem:[#allocation2 + $0x44] sm:$0xf]  ;;  %3451 = vmatpush.bf16.msra.mxu0 %v7965_v29 }
 0x170   : > { %2722 = vmatmul.bf16.gmra.mxu1 %v2614_v39  ;;  %v2259_v30 = vunpack.c.l.b16 %v2208_v38  ;;  %v1416_v37 = vunpack.c.h.b16 %v9014_v10  ;;  %vm9819_vm10 = vmpackc.low %vm1413_vm1, %vm1412_vm9  ;;  %v11504_v41 = vmov 0  ;;  %v1648_v56 = vunpack.c.l.b16 %v1436_v2  ;;  %3155 = vmatpush.bf16.msra.mxu3 %v7950_v43 }
 0x171   : > { %v11505_v41 = vsel %vm9819_vm10, 4294967295, %v11504_v41  ;;  %vm1419_vm5 = vcmp.ne.s32.totalorder %v1415_v50, %v8923_v9  ;;  %v2490_v1 = vsel %vm9786_vm7, %v2473_v34, 0  ;;  %v744_v6 = vadd.f32 %v9506_v45, %v743_v16  ;;  %3625 = vmatpush.bf16.msra.mxu1 %v7977_v36  ;;  %v7948_v36 = vld [vmem:[#allocation8 + $0x140] sm:$0xff] }
 0x172   : > { %11506 = vst [vmem:[#allocation42_spill] sm:$0xff] %v11505_v41  ;;  %v1437_v10 = vsel %vm9819_vm10, %v1075_v49, 0  ;;  %v2268_v61 = vpack.c.b16 %v2259_v30, %v2259_v30  ;;  %vm1420_vm9 = vcmp.ne.s32.totalorder %v1416_v37, %v8930_v13  ;;  %v2491_v2 = vsel %vm9819_vm10, %v2474_v28, 0  ;;  %v7949_v49 = vld [vmem:[#allocation8 + $0x148] sm:$0xff]  ;;  %v7964_v28 = vld [vmem:[#allocation8 + $0x180] sm:$0xff] }
 0x173   : > { %v1649_v9 = vunpack.c.l.b16 %v1437_v10  ;;  %vm9832_vm1 = vmpackc.low %vm1420_vm9, %vm1419_vm5  ;;  %v11507_v34 = vmov 0  ;;  %v2541_v27 = vunpack.c.l.b16 %v2490_v1  ;;  %v2542_v40 = vunpack.c.l.b16 %v2491_v2  ;;  %v3216_v37 = vld [vmem:[#allocation2 + $0x18] sm:$0xf]  ;;  %v3218_v2 = vld [vmem:[#allocation2 + $0x20] sm:$0xf]  ;;  %3452 = vmatpush.bf16.msra.mxu0 %v7964_v28 }
 0x174   : > { %v11508_v34 = vsel %vm9832_vm1, 4294967295, %v11507_v34  ;;  %v767_v39 = vadd.f32 %v9506_v45, %v766_v59  ;;  %v776_v38 = vmax.f32 %v744_v6, 0.0  ;;  %v2334_v4 = vshll.u32 %v2268_v61, 16  ;;  %v3217_v59 = vld [vmem:[#allocation2 + $0x1c] sm:$0xf]  ;;  %v768_v61 = vpop.f32.mrf.mxu3  ;;  %3156 = vmatpush.bf16.msra.mxu3 %v7949_v49 }
 0x175   : > { %11509 = vst [vmem:[#allocation43_spill] sm:$0xff] %v11508_v34  ;;  %v1658_v50 = vpack.c.b16 %v1649_v9, %v1648_v56  ;;  %v1438_v13 = vsel %vm9832_vm1, %v1076_v52, 0  ;;  %v2551_v30 = vpack.c.b16 %v2542_v40, %v2541_v27  ;;  %v2332_v16 = vor.u32 %v2330_v53, %v9784_v33  ;;  %v3215_v27 = vld [vmem:[#allocation2 + $0x14] sm:$0x8]  ;;  %3626 = vmatpush.bf16.msra.mxu1 %v7976_v20 }
 0x176   : > { %v8154_v1 = vpack.c.bf16 %v776_v38, %v775_v22  ;;  %v785_v56 = vmax.f32 %v767_v39, 0.0  ;;  %v1650_v9 = vunpack.c.l.b16 %v1438_v13  ;;  %v769_v29 = vadd.f32 %v9506_v45, %v768_v61  ;;  %v9847_v39 = vpop.f32.mrf.mxu2  ;;  %v746_v13 = vpop.f32.mrf.mxu1 }
 0x177   : > { %v1724_v6 = vshrl.u32 %v1658_v50, 16  ;;  %v1727_v43 = vshll.u32 %v1658_v50, 16  ;;  %v2616_v10 = vshrl.u32 %v2551_v30, 16  ;;  %v2619_v52 = vshll.u32 %v2551_v30, 16 }
 0x178   : > { %8335 = vst [vmem:[#allocation2 + $0x60] sm:$0xff] %v8154_v1   ;;  %v3233_v33 = vsel %vm9049_vm0, %v3216_v37, 0  ;;  %v2336_v53 = vrot.slane %v2334_v4, 1  ;;  %vm11510_vm5 = vnez %v11359_v26  ;;  %v786_v49 = vmax.f32 %v769_v29, 0.0  ;;  %v2475_v1 = vld [vmem:[#allocation2 + $0x4c] sm:$0xf]  ;;  %3157 = vmatpush.bf16.msra.mxu3 %v7948_v36 }
 0x179   : > { %v1726_v55 = vrot.slane %v1724_v6, 3  ;;  %v1729_v22 = vrot.slane %v1727_v43, 4  ;;  %v3234_v40 = vsel %vm11510_vm5, %v3217_v59, 0  ;;  %v2618_v38 = vrot.slane %v2616_v10, 3  ;;  %v7925_v43 = vld [vmem:[#allocation2 + $0x18] sm:$0xff]  ;;  %v7985_v36 = vld [vmem:[#allocation8 + $0x228] sm:$0xff] }
 0x17a   : > { %v2621_v50 = vrot.slane %v2619_v52, 4  ;;  %vm11511_vm9 = vnez %v11374_v0  ;;  %vm11512_vm0 = vnez %v11341_v25  ;;  %v1659_v28 = vpack.c.b16 %v1650_v9, %v1650_v9  ;;  %3908 = vmatpush.bf16.msrb.mxu2 %v7985_v36 }
 0x17b   : > { %v3235_v30 = vsel %vm11511_vm9, %v3218_v2, 0  ;;  %v9851_v61 = vor.u32 %v1729_v22, %v1726_v55  ;;  %v3232_v4 = vsel %vm11512_vm0, %v3215_v27, 0  ;;  %v8179_v37 = vpack.c.bf16 %v786_v49, %v785_v56  ;;  %v7975_v55 = vld [vmem:[#allocation8 + $0x1d8] sm:$0xff]  ;;  %2880 = vmatmul.bf16.gmra.mxu2 %v7925_v43 }
 0x17c   : > { %v9855_v20 = vor.u32 %v2621_v50, %v2618_v38  ;;  %v3284_v59 = vunpack.c.l.b16 %v3233_v33  ;;  %vm11513_vm5 = vsmask.f32 4352  ;;  %v3285_v10 = vunpack.c.l.b16 %v3234_v40  ;;  %3627 = vmatpush.bf16.msra.mxu1 %v7975_v55 }
 0x17d   : > { %v1731_v6 = vsel %vm11513_vm5, %v9771_v18, %v9851_v61  ;;  %v3286_v52 = vunpack.c.l.b16 %v3235_v30  ;;  %v2492_v2 = vsel %vm9832_vm1, %v2475_v1, 0  ;;  %vm11514_vm9 = vsmask.f32 7424  ;;  %8340 = vst [vmem:[#allocation2 + $0x88] sm:$0xff] %v8179_v37   ;;  %vm11515_vm0 = vmmov %vm11513_vm5 }
 0x17e   : > { %1835 = vmatmul.bf16.gmra.mxu3 %v1731_v6  ;;  %v2337_v29 = vsel %vm11514_vm9, %v2332_v16, %v2336_v53  ;;  %v3283_v9 = vunpack.c.l.b16 %v3232_v4  ;;  %v2543_v27 = vunpack.c.l.b16 %v2492_v2  ;;  %v2623_v56 = vsel %vm11515_vm0, %v9790_v46, %v9855_v20  ;;  %v7974_v16 = vld [vmem:[#allocation8 + $0x1d0] sm:$0xff]  ;;  %v9867_v53 = vpop.f32.mrf.mxu2  ;;  %v748_v43 = vpop.f32.mrf.mxu1 }
 0x17f   : > { %2437 = vmatmul.bf16.gmra.mxu0 %v2337_v29  ;;  %v3301_v18 = vpack.c.b16 %v3286_v52, %v3285_v10  ;;  %v1733_v40 = vshrl.u32 %v1659_v28, 16  ;;  %v1736_v38 = vshll.u32 %v1659_v28, 16  ;;  %v747_v50 = vadd.f32 %v9506_v45, %v746_v13  ;;  %v2932_v6 = vld [vmem:[#allocation2 + $0x10] sm:$0xf]  ;;  %v3220_v10 = vld [vmem:[#allocation2 + $0x28] sm:$0xf]  ;;  %v2403_v2 = vpop.f32.mrf.mxu0 }
 0x180   : > { %2727 = vmatmul.bf16.gmra.mxu1 %v2623_v56  ;;  %v3300_v33 = vpack.c.b16 %v3284_v59, %v3283_v9  ;;  %v2552_v22 = vpack.c.b16 %v2543_v27, %v2543_v27  ;;  %v2933_v29 = vld [vmem:[#allocation2 + $0x14] sm:$0xf]  ;;  %v8476_v45 = vld [vmem:[%s11149_s2] ss:$0 sm:$0xff]  ;;  %v7973_v9 = vld [vmem:[#allocation8 + $0x1c8] sm:$0xff]  ;;  %vm11516_vm0 = vnez %v11325_v44  ;;  %vm11517_vm5 = vnez %v11328_v51 }
 0x181   : > { %v3318_v49 = vshrl.u32 %v3301_v18, 16  ;;  %v3321_v30 = vshll.u32 %v3301_v18, 16  ;;  %v1735_v59 = vrot.slane %v1733_v40, 3  ;;  %v1738_v52 = vrot.slane %v1736_v38, 4  ;;  %3628 = vmatpush.bf16.msra.mxu1 %v7974_v16  ;;  %v2934_v56 = vld [vmem:[#allocation2 + $0x18] sm:$0xf] }
 0x182   : > { %v2625_v1 = vshrl.u32 %v2552_v22, 16  ;;  %v2628_v4 = vshll.u32 %v2552_v22, 16  ;;  %v3310_v46 = vshrl.u32 %v3300_v33, 16  ;;  %v3313_v37 = vshll.u32 %v3300_v33, 16  ;;  %v3219_v18 = vld [vmem:[#allocation2 + $0x24] sm:$0xf] }
 0x183   : > { %v777_v28 = vmax.f32 %v747_v50, 0.0  ;;  %v749_v13 = vadd.f32 %v8476_v45, %v748_v43  ;;  %v3320_v27 = vrot.slane %v3318_v49, 3  ;;  %v3323_v55 = vrot.slane %v3321_v30, 4  ;;  %v2935_v22 = vld [vmem:[#allocation2 + $0x1c] sm:$0xf]  ;;  %v7972_v30 = vld [vmem:[#allocation8 + $0x1c0] sm:$0xff] }
 0x184   : > { %v2627_v36 = vrot.slane %v2625_v1, 3  ;;  %v2630_v33 = vrot.slane %v2628_v4, 4  ;;  %v3237_v40 = vsel %vm9318_vm2, %v3220_v10, 0  ;;  %v3312_v38 = vrot.slane %v3310_v46, 3 }
 0x185   : > { %v778_v0 = vmax.f32 %v749_v13, 0.0  ;;  %v3315_v50 = vrot.slane %v3313_v37, 4  ;;  %v2949_v26 = vsel %vm11516_vm0, %v2932_v6, 0  ;;  %v2950_v16 = vsel %vm11517_vm5, %v2933_v29, 0  ;;  %3629 = vmatpush.bf16.msra.mxu1 %v7973_v9 }
 0x186   : > { %v1739_v43 = vor.u32 %v1738_v52, %v1735_v59  ;;  %vm11518_vm9 = vnez %v11391_v3  ;;  %v9880_v4 = vor.u32 %v3323_v55, %v3320_v27  ;;  %vm11519_vm15 = vnez %v11368_v7  ;;  %v9886_v37 = vpop.f32.mrf.mxu2  ;;  %v7926_v55 = vld [vmem:[#allocation2 + $0x20] sm:$0xff] }
 0x187   : > { %v8159_v49 = vpack.c.bf16 %v778_v0, %v777_v28  ;;  %v3236_v1 = vsel %vm11518_vm9, %v3219_v18, 0  ;;  %v2951_v10 = vsel %vm11519_vm15, %v2934_v56, 0  ;;  %vm11520_vm2 = vnez %v11371_v58  ;;  %v2405_v27 = vpop.f32.mrf.mxu0  ;;  %v1806_v18 = vpop.f32.mrf.mxu3 }
 0x188   : > { %v2952_v46 = vsel %vm11520_vm2, %v2935_v22, 0  ;;  %v3288_v6 = vunpack.c.l.b16 %v3237_v40  ;;  %v2631_v45 = vor.u32 %v2630_v33, %v2627_v36  ;;  %v3000_v29 = vunpack.c.l.b16 %v2949_v26  ;;  %v7984_v36 = vld [vmem:[#allocation8 + $0x220] sm:$0xff] }
 0x189   : > { %v3001_v59 = vunpack.c.l.b16 %v2950_v16  ;;  %8336 = vst [vmem:[#allocation2 + $0x68] sm:$0xff] %v8159_v49   ;;  %v3316_v0 = vor.u32 %v3315_v50, %v3312_v38  ;;  %v3287_v52 = vunpack.c.l.b16 %v3236_v1  ;;  %vm11521_vm1 = vsmask.f32 4352  ;;  %3630 = vmatpush.bf16.msra.mxu1 %v7972_v30  ;;  %3909 = vmatpush.bf16.msrb.mxu2 %v7984_v36  ;;  %v3221_v30 = vld [vmem:[#allocation2 + $0x2c] sm:$0xf] }
 0x18a   : > { %v1740_v28 = vsel %vm11521_vm1, %v9851_v61, %v1739_v43  ;;  %v3002_v13 = vunpack.c.l.b16 %v2951_v10  ;;  %v3003_v9 = vunpack.c.l.b16 %v2952_v46  ;;  %vm11522_vm9 = vmmov %vm11521_vm1  ;;  %v1807_v40 = vadd.f32 %v1806_v18, %v9816_v32  ;;  %v3222_v1 = vld [vmem:[#allocation2 + $0x30] sm:$0xf]  ;;  %v2936_v32 = vld [vmem:[#allocation2 + $0x20] sm:$0xf] }
 0x18b   : > { %v3325_v56 = vsel %vm11522_vm9, %v3316_v0, %v9880_v4  ;;  %v3302_v22 = vpack.c.b16 %v3288_v6, %v3287_v52  ;;  %vm11523_vm2 = vmmov %vm11521_vm1  ;;  %v3017_v33 = vpack.c.b16 %v3001_v59, %v3000_v29  ;;  %2885 = vmatmul.bf16.gmra.mxu2 %v7926_v55  ;;  %v2937_v29 = vld [vmem:[#allocation2 + $0x24] sm:$0xf]  ;;  %v3239_v52 = vsel %vm9457_vm11, %v3222_v1, 0  ;;  %v7927_v1 = vld [vmem:[#allocation2 + $0x28] sm:$0xff] }
 0x18c   : > { %v2632_v26 = vsel %vm11523_vm2, %v9855_v20, %v2631_v45  ;;  %v9895_v61 = vpack.c.b16 %v3003_v9, %v3002_v13  ;;  %v2443_v38 = vadd.f32 %v2403_v2, %v1807_v40  ;;  %v3238_v2 = vsel %vm9395_vm6, %v3221_v30, 0 }
 0x18d   : > { %v3327_v16 = vshrl.u32 %v3302_v22, 16  ;;  %v3330_v43 = vshll.u32 %v3302_v22, 16  ;;  %v3029_v49 = vshll.u32 %v3017_v33, 16  ;;  %vm11524_vm2 = vnez %v11398_v17 }
 0x18e   : > { %1840 = vmatmul.bf16.gmra.mxu3 %v1740_v28  ;;  %v9897_v50 = vpop.f32.mrf.mxu2  ;;  %v3034_v10 = vshll.u32 %v9895_v61, 16  ;;  %v3027_v28 = vshrl.u32 %v3017_v33, 16  ;;  %v2698_v9 = vpop.f32.mrf.mxu1  ;;  %v2953_v55 = vsel %vm11524_vm2, %v2936_v32, 0  ;;  %vm11525_vm1 = vnez %v11400_v63  ;;  %v7983_v32 = vld [vmem:[#allocation8 + $0x218] sm:$0xff] }
 0x18f   : > { %3453 = vmatmul.bf16.vlgmr.msra.gmra.mxu0 %v3325_v56  ;;  %v2408_v46 = vpop.f32.mrf.mxu0  ;;  %v1808_v20 = vpop.f32.mrf.mxu3  ;;  %v3329_v6 = vrot.slane %v3327_v16, 3  ;;  %v3332_v45 = vrot.slane %v3330_v43, 4  ;;  %v3031_v59 = vrot.slane %v3029_v49, 1  ;;  %v2954_v56 = vsel %vm11525_vm1, %v2937_v29, 0  ;;  %3910 = vmatpush.bf16.msrb.mxu2 %v7983_v32 }
 0x190   : > { %2732 = vmatmul.bf16.gmra.mxu1 %v2632_v26  ;;  %v1809_v0 = vadd.f32 %v1808_v20, %v9847_v39  ;;  %v3036_v13 = vrot.slane %v3034_v10, 1  ;;  %v9909_v22 = vadd.f32 %v2698_v9, %v2443_v38  ;;  %v3289_v26 = vunpack.c.l.b16 %v3238_v2  ;;  %v7956_v20 = vld [vmem:[#allocation2 + $0x18] sm:$0xff] }
 0x191   : > { %v3333_v36 = vor.u32 %v3332_v45, %v3329_v6  ;;  %v3290_v40 = vunpack.c.l.b16 %v3239_v52  ;;  %v3032_v16 = vor.u32 %v3031_v59, %v3027_v28  ;;  %vm11526_vm9 = vsmask.f32 7424  ;;  %v3223_v28 = vld [vmem:[#allocation2 + $0x34] sm:$0xf]  ;;  %v3224_v9 = vld [vmem:[#allocation2 + $0x38] sm:$0xf] }
 0x192   : > { %v2444_v18 = vadd.f32 %v2405_v27, %v1809_v0  ;;  %v3004_v33 = vunpack.c.l.b16 %v2953_v55  ;;  %v3005_v49 = vunpack.c.l.b16 %v2954_v56  ;;  %vm11527_vm11 = vsmask.f32 4352 }
 0x193   : > { %v3037_v43 = vsel %vm11526_vm9, %v3032_v16, %v3036_v13  ;;  %v3334_v10 = vsel %vm11527_vm11, %v9880_v4, %v3333_v36  ;;  %v3303_v38 = vpack.c.b16 %v3290_v40, %v3289_v26  ;;  %v2938_v16 = vld [vmem:[#allocation2 + $0x28] sm:$0xf]  ;;  %vm11528_vm11 = vnez %v11432_v15 }
 0x194   : > { %v9917_v45 = vpack.c.b16 %v3005_v49, %v3004_v33  ;;  %v3038_v49 = vshrl.u32 %v9895_v61, 16 }
 0x195   : > { %v3336_v52 = vshrl.u32 %v3303_v38, 16  ;;  %v3339_v4 = vshll.u32 %v3303_v38, 16 }
 0x196   : > { %v9911_v39 = vpop.f32.mrf.mxu2  ;;  %v2700_v29 = vpop.f32.mrf.mxu1  ;;  %v3042_v55 = vshll.u32 %v9917_v45, 16 }
 0x197   : > { %v2410_v30 = vpop.f32.mrf.mxu0  ;;  %v1811_v27 = vpop.f32.mrf.mxu3  ;;  %v9919_v0 = vadd.f32 %v2700_v29, %v2444_v18  ;;  %v3341_v40 = vrot.slane %v3339_v4, 4  ;;  %v3241_v18 = vsel %vm9557_vm8, %v3224_v9, 0  ;;  %v3040_v4 = vor.u32 %v3038_v49, %v3036_v13 }
 0x198   : > { %v1812_v6 = vadd.f32 %v1811_v27, %v9867_v53  ;;  %v3338_v53 = vrot.slane %v3336_v52, 3  ;;  %v3292_v52 = vunpack.c.l.b16 %v3241_v18  ;;  %vm11529_vm8 = vsmask.f32 4352 }
 0x19a   : > { %v2445_v59 = vadd.f32 %v2408_v46, %v1812_v6  ;;  %v3240_v46 = vsel %vm9541_vm14, %v3223_v28, 0  ;;  %vm11532_vm14 = vnez %v11446_v42 }
 0x19b   : > { %2890 = vmatmul.bf16.gmra.mxu2 %v7927_v1  ;;  %v3044_v1 = vrot.slane %v3042_v55, 1  ;;  %v3291_v29 = vunpack.c.l.b16 %v3240_v46 }
 0x19d   : > { %v3045_v28 = vsel %vm11526_vm9, %v3040_v4, %v3044_v1  ;;  %vm11531_vm9 = vnez %v11443_v57 }
 0x19e   : > { %3158 = vmatmul.bf16.vlgmr.msra.gmra.mxu3 %v3037_v43  ;;  %v9921_v2 = vpop.f32.mrf.mxu2  ;;  %v2939_v43 = vld [vmem:[#allocation2 + $0x2c] sm:$0xf] }
 0x19f   : > { %3458 = vmatmul.bf16.gmra.mxu0 %v3334_v10  ;;  %v2413_v56 = vpop.f32.mrf.mxu0  ;;  %v1813_v26 = vpop.f32.mrf.mxu3  ;;  %v2956_v27 = vsel %vm11528_vm11, %v2939_v43, 0 }
 0x1a0   : > { %3631 = vmatmul.bf16.vlgmr.msra.gmra.mxu1 %v7956_v20  ;;  %v1814_v33 = vadd.f32 %v1813_v26, %v9886_v37  ;;  %v2703_v10 = vpop.f32.mrf.mxu1  ;;  %v2955_v20 = vsel %vm9417_vm3, %v2938_v16, 0  ;;  %v3342_v37 = vor.u32 %v3341_v40, %v3338_v53  ;;  %v3007_v9 = vunpack.c.l.b16 %v2956_v27  ;;  %v7928_v26 = vld [vmem:[#allocation2 + $0x30] sm:$0xff] }
 0x1a1   : > { %v9934_v32 = vadd.f32 %v2703_v10, %v2445_v59  ;;  %v3006_v61 = vunpack.c.l.b16 %v2955_v20  ;;  %v7982_v59 = vld [vmem:[#allocation8 + $0x210] sm:$0xff]  ;;  %v3225_v10 = vld [vmem:[#allocation2 + $0x3c] sm:$0xf]  ;;  %v3226_v20 = vld [vmem:[#allocation2 + $0x40] sm:$0xf] }
 0x1a2   : > { %v2446_v38 = vadd.f32 %v2410_v30, %v1814_v33  ;;  %v3343_v16 = vsel %vm11529_vm8, %v3333_v36, %v3342_v37  ;;  %v3304_v30 = vpack.c.b16 %v3292_v52, %v3291_v29  ;;  %3911 = vmatpush.bf16.msrb.mxu2 %v7982_v59  ;;  %vm11530_vm8 = vnez %v11470_v35  ;;  %v7929_v35 = vld [vmem:[#allocation2 + $0x38] sm:$0xff] }
 0x1a3   : > { %v9941_v13 = vpack.c.b16 %v3007_v9, %v3006_v61  ;;  %v3046_v9 = vshrl.u32 %v9917_v45, 16 }
 0x1a4   : > { %v3345_v49 = vshrl.u32 %v3304_v30, 16  ;;  %v3348_v36 = vshll.u32 %v3304_v30, 16 }
 0x1a5   : > { %v3050_v27 = vshll.u32 %v9941_v13, 16 }
 0x1a6   : > { %v9936_v6 = vpop.f32.mrf.mxu2  ;;  %v3350_v4 = vrot.slane %v3348_v36, 4 }
 0x1a7   : > { %v2415_v55 = vpop.f32.mrf.mxu0  ;;  %v1816_v43 = vpop.f32.mrf.mxu3 }
 0x1a8   : > { %v1817_v53 = vadd.f32 %v1816_v43, %v9897_v50  ;;  %v2705_v40 = vpop.f32.mrf.mxu1  ;;  %v3347_v50 = vrot.slane %v3345_v49, 3 }
 0x1a9   : > { %v9943_v46 = vadd.f32 %v2705_v40, %v2446_v38  ;;  %v3243_v38 = vsel %vm11530_vm8, %v3226_v20, 0  ;;  %vm11533_vm8 = vsmask.f32 7424 }
 0x1aa   : > { %v2447_v33 = vadd.f32 %v2413_v56, %v1817_v53  ;;  %v3242_v56 = vsel %vm9625_vm13, %v3225_v10, 0  ;;  %v3294_v36 = vunpack.c.l.b16 %v3243_v38  ;;  %v3048_v10 = vor.u32 %v3046_v9, %v3044_v1 }
 0x1ab   : > { %2895 = vmatmul.bf16.gmra.mxu2 %v7928_v26  ;;  %v3052_v26 = vrot.slane %v3050_v27, 1  ;;  %v3293_v49 = vunpack.c.l.b16 %v3242_v56  ;;  %vm11534_vm13 = vsmask.f32 4352 }
 0x1ad   : > { %v3053_v20 = vsel %vm11533_vm8, %v3048_v10, %v3052_v26  ;;  %v2943_v10 = vld [vmem:[#allocation2 + $0x3c] sm:$0xf]  ;;  %vm11536_vm8 = vnez %v11462_v12 }
 0x1ae   : > { %3163 = vmatmul.bf16.gmra.mxu3 %v3045_v28  ;;  %v9945_v18 = vpop.f32.mrf.mxu2  ;;  %v2941_v28 = vld [vmem:[#allocation2 + $0x34] sm:$0xf] }
 0x1af   : > { %3463 = vmatmul.bf16.gmra.mxu0 %v3343_v16  ;;  %v2418_v29 = vpop.f32.mrf.mxu0  ;;  %v1818_v52 = vpop.f32.mrf.mxu3  ;;  %v2958_v30 = vsel %vm11532_vm14, %v2941_v28, 0  ;;  %v3305_v28 = vpack.c.b16 %v3294_v36, %v3293_v49  ;;  %v2942_v36 = vld [vmem:[#allocation2 + $0x38] sm:$0xf] }
 0x1b0   : > { %3636 = vmatmul.bf16.gmra.mxu1 %v7957_v19  ;;  %v2940_v19 = vld [vmem:[#allocation2 + $0x30] sm:$0xf]  ;;  %v1819_v61 = vadd.f32 %v1818_v52, %v9911_v39  ;;  %v3351_v39 = vor.u32 %v3350_v4, %v3347_v50  ;;  %v3009_v27 = vunpack.c.l.b16 %v2958_v30  ;;  %v3054_v30 = vshrl.u32 %v9941_v13, 16 }
 0x1b1   : > { %v2957_v43 = vsel %vm11531_vm9, %v2940_v19, 0  ;;  %v3354_v38 = vshrl.u32 %v3305_v28, 16  ;;  %v3357_v9 = vshll.u32 %v3305_v28, 16 }
 0x1b2   : > { %v2708_v16 = vpop.f32.mrf.mxu1  ;;  %v2448_v59 = vadd.f32 %v2415_v55, %v1819_v61  ;;  %v3008_v45 = vunpack.c.l.b16 %v2957_v43  ;;  %v3352_v19 = vsel %vm11534_vm13, %v3342_v37, %v3351_v39  ;;  %v7981_v55 = vld [vmem:[#allocation8 + $0x208] sm:$0xff]  ;;  %vm11535_vm13 = vnez %v11458_v47 }
 0x1b3   : > { %v9958_v53 = vadd.f32 %v2708_v16, %v2447_v33  ;;  %3912 = vmatpush.bf16.msrb.mxu2 %v7981_v55  ;;  %v3227_v16 = vld [vmem:[#allocation2 + $0x44] sm:$0xf]  ;;  %v3228_v43 = vld [vmem:[#allocation2 + $0x48] sm:$0xf]  ;;  %v3359_v49 = vrot.slane %v3357_v9, 4  ;;  %v2959_v28 = vsel %vm11535_vm13, %v2942_v36, 0 }
 0x1b4   : > { %v9964_v50 = vpack.c.b16 %v3009_v27, %v3008_v45  ;;  %v3056_v45 = vor.u32 %v3054_v30, %v3052_v26  ;;  %v2960_v55 = vsel %vm11536_vm8, %v2943_v10, 0  ;;  %v7930_v30 = vld [vmem:[#allocation2 + $0x40] sm:$0xff]  ;;  %v7959_v36 = vld [vmem:[#allocation2 + $0x30] sm:$0xff] }
 0x1b6   : > { %v9960_v40 = vpop.f32.mrf.mxu2 }
 0x1b7   : > { %v2420_v52 = vpop.f32.mrf.mxu0 }
 0x1b9   : > { %v1821_v33 = vpop.f32.mrf.mxu3 }
 0x1ba   : > { %v1822_v1 = vadd.f32 %v1821_v33, %v9921_v2  ;;  %v2710_v4 = vpop.f32.mrf.mxu1  ;;  %v3244_v2 = vsel %vm9717_vm4, %v3227_v16, 0  ;;  %vm11538_vm4 = vsmask.f32 4352 }
 0x1bb   : > { %2900 = vmatmul.bf16.gmra.mxu2 %v7929_v35  ;;  %v9967_v61 = vadd.f32 %v2710_v4, %v2448_v59  ;;  %v3356_v35 = vrot.slane %v3354_v38, 3  ;;  %v3245_v59 = vsel %vm9732_vm12, %v3228_v43, 0  ;;  %v3295_v38 = vunpack.c.l.b16 %v3244_v2 }
 0x1bc   : > { %v2449_v37 = vadd.f32 %v2418_v29, %v1822_v1  ;;  %v3296_v9 = vunpack.c.l.b16 %v3245_v59  ;;  %vm11537_vm12 = vsmask.f32 7424  ;;  %v3010_v43 = vunpack.c.l.b16 %v2959_v28  ;;  %v3689_v28 = vld [vmem:[#allocation2 + $0x1c] sm:$0xf] }
 0x1bd   : > { %v9986_v1 = vor.u32 %v3359_v49, %v3356_v35  ;;  %v7980_v35 = vld [vmem:[#allocation8 + $0x200] sm:$0xff] }
 0x1be   : > { %3168 = vmatmul.bf16.gmra.mxu3 %v3053_v20  ;;  %v9969_v56 = vpop.f32.mrf.mxu2  ;;  %v3306_v10 = vpack.c.b16 %v3296_v9, %v3295_v38  ;;  %3913 = vmatpush.bf16.msrb.mxu2 %v7980_v35  ;;  %v3690_v9 = vld [vmem:[#allocation2 + $0x20] sm:$0xf] }
 0x1bf   : > { %3468 = vmatmul.bf16.gmra.mxu0 %v3352_v19 }
 0x1c0   : > { %3641 = vmatmul.bf16.gmra.mxu1 %v7958_v14  ;;  %v3058_v14 = vshll.u32 %v9964_v50, 16 }
 0x1c1   : > { %v9973_v20 = vpop.f32.mrf.mxu0  ;;  %v1823_v29 = vpop.f32.mrf.mxu3 }
 0x1c2   : > { %v3060_v27 = vrot.slane %v3058_v14, 1  ;;  %v1824_v19 = vadd.f32 %v1823_v29, %v9936_v6  ;;  %v2713_v13 = vpop.f32.mrf.mxu1  ;;  %v3011_v6 = vunpack.c.l.b16 %v2960_v55  ;;  %v3361_v14 = vsel %vm11538_vm4, %v3351_v39, %v9986_v1  ;;  %v3229_v39 = vld [vmem:[#allocation2 + $0x4c] sm:$0xf] }
 0x1c3   : > { %v9984_v33 = vadd.f32 %v2713_v13, %v2449_v37  ;;  %v3366_v29 = vshll.u32 %v3306_v10, 16  ;;  %v3230_v13 = vld [vmem:[#allocation2 + $0x50] sm:$0xf]  ;;  %v3062_v55 = vshrl.u32 %v9964_v50, 16  ;;  %vm11540_vm4 = vnez %v11371_v58 }
 0x1c4   : > { %v2450_v26 = vadd.f32 %v2420_v52, %v1824_v19  ;;  %v3061_v16 = vsel %vm11537_vm12, %v3056_v45, %v3060_v27  ;;  %v9995_v49 = vpack.c.b16 %v3011_v6, %v3010_v43  ;;  %v3363_v45 = vshrl.u32 %v3306_v10, 16  ;;  %v3688_v19 = vld [vmem:[#allocation2 + $0x18] sm:$0xf] }
 0x1c5   : > { %v3368_v6 = vrot.slane %v3366_v29, 4  ;;  %v8019_v10 = vld [vmem:[#allocation8 + $0x78] sm:$0xff]  ;;  %v3705_v50 = vsel %vm11516_vm0, %v3688_v19, 0  ;;  %v3064_v24 = vor.u32 %v3062_v55, %v3060_v27 }
 0x1c6   : > { %v9988_v4 = vpop.f32.mrf.mxu2  ;;  %v3066_v38 = vshll.u32 %v9995_v49, 16  ;;  %v3365_v43 = vrot.slane %v3363_v45, 3  ;;  %v3707_v45 = vsel %vm11519_vm15, %v3690_v9, 0  ;;  %4390 = vmatpush.bf16.msrb.mxu0 %v8019_v10  ;;  %v3756_v55 = vunpack.c.l.b16 %v3705_v50 }
 0x1c7   : > { %vm11550_vm15 = vnez %v11493_v54 }
 0x1c9   : > { %v9993_v37 = vpop.f32.mrf.mxu0 }
 0x1ca   : > { %v2715_v52 = vpop.f32.mrf.mxu1 }
 0x1cb   : > { %2905 = vmatmul.bf16.gmra.mxu2 %v7930_v30  ;;  %v9997_v2 = vadd.f32 %v2715_v52, %v2450_v26  ;;  %v2944_v30 = vld [vmem:[#allocation2 + $0x40] sm:$0xf]  ;;  %v3246_v26 = vsel %vm9786_vm7, %v3229_v39, 0  ;;  %v3706_v52 = vsel %vm11517_vm5, %v3689_v28, 0  ;;  %v3068_v39 = vrot.slane %v3066_v38, 1 }
 0x1cc   : > { %v10022_v28 = vor.u32 %v3368_v6, %v3365_v43  ;;  %v3297_v9 = vunpack.c.l.b16 %v3246_v26  ;;  %v3757_v38 = vunpack.c.l.b16 %v3706_v52  ;;  %vm11545_vm7 = vsmask.f32 7424  ;;  %v8017_v52 = vld [vmem:[#allocation8 + $0x68] sm:$0xff] }
 0x1cd   : > { %11539 = vst [vmem:[#allocation44_spill] sm:$0xff] %v9997_v2  ;;  %v3069_v51 = vsel %vm11545_vm7, %v3064_v24, %v3068_v39  ;;  %vm11547_vm7 = vnez %v11508_v34  ;;  %v8010_v34 = vld [vmem:[#allocation8 + $0x30] sm:$0xff] }
 0x1ce   : > { %3173 = vmatmul.bf16.gmra.mxu3 %v3061_v16  ;;  %v9999_v59 = vpop.f32.mrf.mxu2  ;;  %v3691_v16 = vld [vmem:[#allocation2 + $0x24] sm:$0xf] }
 0x1cf   : > { %3473 = vmatmul.bf16.gmra.mxu0 %v3361_v14  ;;  %v2945_v14 = vld [vmem:[#allocation2 + $0x44] sm:$0xf]  ;;  %v3708_v29 = vsel %vm11540_vm4, %v3691_v16, 0  ;;  %v3758_v16 = vunpack.c.l.b16 %v3707_v45  ;;  %vm11546_vm4 = vsmask.f32 4352 }
 0x1d0   : > { %3646 = vmatmul.bf16.gmra.mxu1 %v7959_v36  ;;  %v3247_v36 = vsel %vm9819_vm10, %v3230_v13, 0  ;;  %v11541_v13 = vld [vmem:[#allocation34_spill] sm:$0xff]  ;;  %vm11544_vm10 = vnez %v11543_v23  ;;  %v7931_v23 = vld [vmem:[#allocation2 + $0x48] sm:$0xff] }
 0x1d1   : > { %vm11542_vm12 = vnez %v11541_v13  ;;  %v2962_v44 = vsel %vm11544_vm10, %v2945_v14, 0  ;;  %v3298_v58 = vunpack.c.l.b16 %v3247_v36  ;;  %v3759_v14 = vunpack.c.l.b16 %v3708_v29  ;;  %v3231_v45 = vld [vmem:[#allocation2 + $0x54] sm:$0xf] }
 0x1d2   : > { %v2718_v41 = vpop.f32.mrf.mxu1  ;;  %v2961_v8 = vsel %vm11542_vm12, %v2944_v30, 0  ;;  %v3013_v2 = vunpack.c.l.b16 %v2962_v44 }
 0x1d3   : > { %v3012_v30 = vunpack.c.l.b16 %v2961_v8  ;;  %v3307_v43 = vpack.c.b16 %v3298_v58, %v3297_v9  ;;  %v10035_v8 = vpack.c.b16 %v3759_v14, %v3758_v16  ;;  %v2947_v16 = vld [vmem:[#allocation2 + $0x4c] sm:$0xf] }
 0x1d4   : > { %v10007_v35 = vpop.f32.mrf.mxu0 }
 0x1d5   : > { %v1826_v48 = vpop.f32.mrf.mxu3  ;;  %v10033_v26 = vpack.c.b16 %v3013_v2, %v3012_v30  ;;  %v3375_v36 = vshll.u32 %v3307_v43, 16  ;;  %v3070_v2 = vshrl.u32 %v9995_v49, 16 }
 0x1d6   : > { %v1827_v19 = vadd.f32 %v1826_v48, %v9945_v18  ;;  %v10024_v7 = vpop.f32.mrf.mxu2  ;;  %v3370_v48 = vsel %vm11546_vm4, %v9986_v1, %v10022_v28  ;;  %v7960_v18 = vld [vmem:[#allocation2 + $0x38] sm:$0xff]  ;;  %v8018_v1 = vld [vmem:[#allocation8 + $0x70] sm:$0xff] }
 0x1d7   : > { %4391 = vmatpush.bf16.msrb.mxu0 %v8018_v1  ;;  %v3074_v29 = vshll.u32 %v10033_v26, 16  ;;  %v2964_v1 = vsel %vm11550_vm15, %v2947_v16, 0  ;;  %v7961_v16 = vld [vmem:[#allocation2 + $0x40] sm:$0xff] }
 0x1d8   : > { %v2451_v27 = vadd.f32 %v9973_v20, %v1827_v19  ;;  %v3773_v20 = vpack.c.b16 %v3757_v38, %v3756_v55  ;;  %v3692_v55 = vld [vmem:[#allocation2 + $0x28] sm:$0xf] }
 0x1d9   : > { %v2946_v38 = vld [vmem:[#allocation2 + $0x48] sm:$0xf]  ;;  %v3076_v49 = vrot.slane %v3074_v29, 1 }
 0x1da   : > { %v10028_v10 = vadd.f32 %v2718_v41, %v2451_v27  ;;  %v3372_v41 = vshrl.u32 %v3307_v43, 16  ;;  %v2720_v50 = vpop.f32.mrf.mxu1  ;;  %v3377_v27 = vrot.slane %v3375_v36, 4  ;;  %v3783_v30 = vshrl.u32 %v3773_v20, 16 }
 0x1db   : > { %2910 = vmatmul.bf16.gmra.mxu2 %v7931_v23  ;;  %v3785_v23 = vshll.u32 %v3773_v20, 16  ;;  %4392 = vmatpush.bf16.msrb.mxu0 %v8017_v52  ;;  %v8016_v20 = vld [vmem:[#allocation8 + $0x60] sm:$0xff] }
 0x1dc   : > { %v3374_v9 = vrot.slane %v3372_v41, 3  ;;  %v11548_v41 = vld [vmem:[#allocation38_spill] sm:$0xff] }
 0x1dd   : > { %v1828_v6 = vpop.f32.mrf.mxu3  ;;  %v3787_v14 = vrot.slane %v3785_v23, 1  ;;  %vm11549_vm4 = vnez %v11548_v41 }
 0x1de   : > { %3178 = vmatmul.bf16.gmra.mxu3 %v3069_v51  ;;  %v1829_v44 = vadd.f32 %v1828_v6, %v9960_v40  ;;  %v10038_v51 = vpop.f32.mrf.mxu0  ;;  %v10040_v24 = vpop.f32.mrf.mxu2  ;;  %v3790_v40 = vshll.u32 %v10035_v8, 16  ;;  %v3709_v6 = vsel %vm11524_vm2, %v3692_v55, 0  ;;  %v2963_v36 = vsel %vm11549_vm4, %v2946_v38, 0 }
 0x1df   : > { %3478 = vmatmul.bf16.gmra.mxu0 %v3370_v48  ;;  %v3693_v48 = vld [vmem:[#allocation2 + $0x2c] sm:$0xf]  ;;  %v3788_v52 = vor.u32 %v3787_v14, %v3783_v30  ;;  %vm11552_vm2 = vsmask.f32 4352  ;;  %v8011_v30 = vld [vmem:[#allocation8 + $0x38] sm:$0xff] }
 0x1e0   : > { %3651 = vmatmul.bf16.gmra.mxu1 %v7960_v18  ;;  %v2452_v58 = vadd.f32 %v9993_v37, %v1829_v44  ;;  %v3248_v37 = vsel %vm11547_vm7, %v3231_v45, 0  ;;  %v3072_v18 = vor.u32 %v3070_v2, %v3068_v39  ;;  %v10050_v43 = vrot.slane %v3790_v40, 1  ;;  %4393 = vmatpush.bf16.msrb.mxu0 %v8016_v20  ;;  %v8015_v45 = vld [vmem:[#allocation8 + $0x58] sm:$0xff] }
 0x1e1   : > { %v10054_v44 = vor.u32 %v3377_v27, %v3374_v9  ;;  %v3710_v39 = vsel %vm11525_vm1, %v3693_v48, 0  ;;  %vm11551_vm7 = vsmask.f32 7424  ;;  %v3014_v40 = vunpack.c.l.b16 %v2963_v36  ;;  %4618 = vmatpush.bf16.msrb.mxu1 %v8011_v30  ;;  %v3694_v30 = vld [vmem:[#allocation2 + $0x30] sm:$0xf] }
 0x1e2   : > { %v10046_v19 = vadd.f32 %v2720_v50, %v2452_v58  ;;  %v3299_v58 = vunpack.c.l.b16 %v3248_v37  ;;  %v3077_v2 = vsel %vm11551_vm7, %v3072_v18, %v3076_v49  ;;  %v3015_v9 = vunpack.c.l.b16 %v2964_v1  ;;  %vm11553_vm1 = vmmov %vm11551_vm7 }
 0x1e3   : > { %v3760_v27 = vunpack.c.l.b16 %v3709_v6  ;;  %v3379_v38 = vsel %vm11552_vm2, %v10022_v28, %v10054_v44  ;;  %v3793_v37 = vsel %vm11553_vm1, %v3788_v52, %v10050_v43  ;;  %v3761_v14 = vunpack.c.l.b16 %v3710_v39  ;;  %v7995_v39 = vld [vmem:[#allocation9 + $0x38] sm:$0xff] }
 0x1e4   : > { %v3308_v48 = vpack.c.b16 %v3299_v58, %v3299_v58  ;;  %4394 = vmatpush.bf16.msrb.mxu0 %v8015_v45  ;;  %v10074_v6 = vpack.c.b16 %v3015_v9, %v3014_v40  ;;  %v3078_v45 = vshrl.u32 %v10033_v26, 16  ;;  %4099 = vmatpush.bf16.msrb.mxu3 %v7995_v39  ;;  %vm11554_vm2 = vnez %v11501_v5  ;;  %v8012_v39 = vld [vmem:[#allocation8 + $0x40] sm:$0xff]  ;;  %v4667_v5 = vld [vmem:[#allocation2 + $0x48] sm:$0xf] }
 0x1e5   : > { %v10076_v52 = vpack.c.b16 %v3761_v14, %v3760_v27  ;;  %4619 = vmatpush.bf16.msrb.mxu1 %v8010_v34  ;;  %v3695_v14 = vld [vmem:[#allocation2 + $0x34] sm:$0xf]  ;;  %vm11555_vm7 = vsmask.f32 4352 }
 0x1e6   : > { %v10060_v50 = vpop.f32.mrf.mxu2  ;;  %v3381_v28 = vshrl.u32 %v3308_v48, 16  ;;  %v3384_v1 = vshll.u32 %v3308_v48, 16  ;;  %v3082_v40 = vshll.u32 %v10074_v6, 16  ;;  %v2948_v48 = vld [vmem:[#allocation2 + $0x50] sm:$0x1] }
 0x1eb   : > { %v10064_v23 = vpop.f32.mrf.mxu0  ;;  %3914 = vmatmul.bf16.vlgmr.msrb.gmra.mxu2 %v3793_v37  ;;  %v3798_v37 = vshll.u32 %v10076_v52, 16 }
 0x1ed   : > { %v2723_v29 = vpop.f32.mrf.mxu1  ;;  %v1831_v55 = vpop.f32.mrf.mxu3 }
 0x1ee   : > { %3183 = vmatmul.bf16.gmra.mxu3 %v3077_v2  ;;  %v1832_v20 = vadd.f32 %v1831_v55, %v9969_v56  ;;  %v2876_v36 = vpop.f32.mrf.mxu2  ;;  %v8014_v2 = vld [vmem:[#allocation8 + $0x50] sm:$0xff] }
 0x1ef   : > { %3483 = vmatmul.bf16.gmra.mxu0 %v3379_v38  ;;  %v10081_v56 = vadd.f32 %v2876_v36, %v9909_v22  ;;  %v8009_v38 = vld [vmem:[#allocation8 + $0x28] sm:$0xff]  ;;  %v2965_v36 = vsel %vm11554_vm2, %v2948_v48, 0 }
 0x1f0   : > { %3656 = vmatmul.bf16.gmra.mxu1 %v7961_v16  ;;  %v2453_v18 = vadd.f32 %v10007_v35, %v1832_v20  ;;  %4395 = vmatpush.bf16.msrb.mxu0 %v8014_v2  ;;  %v8013_v35 = vld [vmem:[#allocation8 + $0x48] sm:$0xff]  ;;  %v3383_v16 = vrot.slane %v3381_v28, 3  ;;  %v3080_v20 = vor.u32 %v3078_v45, %v3076_v49  ;;  %v3800_v2 = vrot.slane %v3798_v37, 1 }
 0x1f1   : > { %4620 = vmatpush.bf16.msrb.mxu1 %v8009_v38  ;;  %v3711_v49 = vsel %vm9417_vm3, %v3694_v30, 0  ;;  %vm11556_vm3 = vmmov %vm11553_vm1 }
 0x1f2   : > { %v10078_v58 = vadd.f32 %v2723_v29, %v2453_v18  ;;  %v3386_v29 = vrot.slane %v3384_v1, 4  ;;  %v10089_v18 = vrot.slane %v3082_v40, 1  ;;  %v3794_v1 = vshrl.u32 %v10035_v8, 16 }
 0x1f3   : > { %v10083_v55 = vpop.f32.mrf.mxu0 }
 0x1f4   : > { %4396 = vmatpush.bf16.msrb.mxu0 %v8013_v35  ;;  %v3387_v34 = vor.u32 %v3386_v29, %v3383_v16  ;;  %v3796_v40 = vor.u32 %v3794_v1, %v10050_v43  ;;  %v3085_v8 = vsel %vm11553_vm1, %v3080_v20, %v10089_v18  ;;  %v8007_v16 = vld [vmem:[#allocation8 + $0x18] sm:$0xff]  ;;  %v7962_v29 = vld [vmem:[#allocation2 + $0x48] sm:$0xff]  ;;  %vm11558_vm1 = vnez %v11344_v31 }
 0x1f5   : > { %v2725_v9 = vpop.f32.mrf.mxu1  ;;  %v1833_v27 = vpop.f32.mrf.mxu3 }
 0x1f6   : > { %v1834_v22 = vadd.f32 %v1833_v27, %v9988_v4  ;;  %v2878_v28 = vpop.f32.mrf.mxu2  ;;  %v8008_v4 = vld [vmem:[#allocation8 + $0x20] sm:$0xff]  ;;  %v3801_v37 = vsel %vm11556_vm3, %v3796_v40, %v3800_v2  ;;  %v3086_v40 = vshrl.u32 %v10074_v6, 16  ;;  %vm11557_vm3 = vnez %v11341_v25 }
 0x1f7   : > { %v10098_v35 = vadd.f32 %v2878_v28, %v9919_v0  ;;  %4621 = vmatpush.bf16.msrb.mxu1 %v8008_v4  ;;  %v3388_v0 = vsel %vm11555_vm7, %v10054_v44, %v3387_v34  ;;  %v7994_v28 = vld [vmem:[#allocation9 + $0x30] sm:$0xff]  ;;  %v3696_v34 = vld [vmem:[#allocation2 + $0x38] sm:$0xf]  ;;  %v4228_v4 = vld [vmem:[#allocation2 + $0x44] sm:$0x8] }
 0x1f8   : > { %v2454_v26 = vadd.f32 %v10038_v51, %v1834_v22  ;;  %v3712_v51 = vsel %vm11528_vm11, %v3695_v14, 0  ;;  %4397 = vmatpush.bf16.msrb.mxu0 %v8012_v39  ;;  %v3762_v22 = vunpack.c.l.b16 %v3711_v49  ;;  %4100 = vmatpush.bf16.msrb.mxu3 %v7994_v28  ;;  %v4229_v49 = vld [vmem:[#allocation2 + $0x48] sm:$0xf] }
 0x1f9   : > { %v3763_v48 = vunpack.c.l.b16 %v3712_v51  ;;  %v4230_v51 = vld [vmem:[#allocation2 + $0x4c] sm:$0xf] }
 0x1fa   : > { %v10095_v27 = vadd.f32 %v2725_v9, %v2454_v26  ;;  %v3016_v9 = vunpack.c.l.b16 %v2965_v36  ;;  %v8006_v26 = vld [vmem:[#allocation8 + $0x10] sm:$0xff] }
 0x1fb   : > { %3919 = vmatmul.bf16.gmra.mxu2 %v3801_v37  ;;  %4622 = vmatpush.bf16.msrb.mxu1 %v8007_v16  ;;  %v10113_v36 = vpack.c.b16 %v3763_v48, %v3762_v22  ;;  %v4231_v16 = vld [vmem:[#allocation2 + $0x50] sm:$0xf]  ;;  %v4245_v37 = vsel %vm11557_vm3, %v4228_v4, 0  ;;  %v4246_v22 = vsel %vm11558_vm1, %v4229_v49, 0  ;;  %v11559_v48 = vld [vmem:[#allocation20_spill] sm:$0xff]  ;;  %vm11616_vm3 = vnez %v11400_v63 }
 0x1fc   : > { %v10104_v45 = vpop.f32.mrf.mxu0  ;;  %v3025_v30 = vpack.c.b16 %v3016_v9, %v3016_v9  ;;  %v8005_v9 = vld [vmem:[#allocation8 + $0x8] sm:$0xff]  ;;  %vm11560_vm7 = vnez %v11559_v48  ;;  %v4456_v48 = vunpack.c.l.b16 %v4245_v37  ;;  %vm11608_vm1 = vsmask.f32 4352 }
 0x1fd   : > { %v2728_v38 = vpop.f32.mrf.mxu1  ;;  %v4247_v6 = vsel %vm11560_vm7, %v4230_v51, 0  ;;  %v8004_v51 = vld [vmem:[#allocation8] sm:$0xff] }
 0x1fe   : > { %3188 = vmatmul.bf16.gmra.mxu3 %v3085_v8  ;;  %v2881_v20 = vpop.f32.mrf.mxu2 }
 0x1ff   : > { %3488 = vmatmul.bf16.gmra.mxu0 %v3388_v0  ;;  %v10116_v44 = vadd.f32 %v2881_v20, %v9934_v32  ;;  %4623 = vmatpush.bf16.msrb.mxu1 %v8006_v26  ;;  %v3806_v32 = vshll.u32 %v10113_v36, 16  ;;  %v3088_v20 = vor.u32 %v3086_v40, %v10089_v18 }
 0x200   : > { %3661 = vmatmul.bf16.gmra.mxu1 %v7962_v29  ;;  %v3697_v29 = vld [vmem:[#allocation2 + $0x3c] sm:$0xf] }
 0x201   : > { %v1836_v43 = vpop.f32.mrf.mxu3  ;;  %v3714_v28 = vsel %vm11532_vm14, %v3697_v29, 0  ;;  %v3808_v49 = vrot.slane %v3806_v32, 1 }
 0x202   : > { %v1837_v14 = vadd.f32 %v1836_v43, %v9999_v59  ;;  %v3090_v59 = vshll.u32 %v3025_v30, 16  ;;  %v11561_v43 = vld [vmem:[#allocation23_spill] sm:$0xff]  ;;  %v3765_v29 = vunpack.c.l.b16 %v3714_v28 }
 0x203   : > { %vm11562_vm11 = vnez %v11561_v43  ;;  %4624 = vmatpush.bf16.msrb.mxu1 %v8005_v9  ;;  %v4457_v43 = vunpack.c.l.b16 %v4246_v22  ;;  %v7996_v9 = vld [vmem:[#allocation2 + $0x48] sm:$0xff] }
 0x204   : > { %v2455_v1 = vadd.f32 %v10064_v23, %v1837_v14  ;;  %v10119_v39 = vpop.f32.mrf.mxu0  ;;  %v3802_v23 = vshrl.u32 %v10076_v52, 16  ;;  %v4248_v30 = vsel %vm11562_vm11, %v4231_v16, 0  ;;  %v3092_v26 = vrot.slane %v3090_v59, 1 }
 0x205   : > { %v2730_v8 = vpop.f32.mrf.mxu1  ;;  %v4459_v31 = vunpack.c.l.b16 %v4248_v30  ;;  %vm11563_vm11 = vsmask.f32 7424  ;;  %v4473_v37 = vpack.c.b16 %v4457_v43, %v4456_v48 }
 0x206   : > { %v10122_v0 = vadd.f32 %v2728_v38, %v2455_v1  ;;  %v3713_v38 = vsel %vm11531_vm9, %v3696_v34, 0  ;;  %v3804_v52 = vor.u32 %v3802_v23, %v3800_v2  ;;  %v2883_v4 = vpop.f32.mrf.mxu2  ;;  %v4458_v34 = vunpack.c.l.b16 %v4247_v6  ;;  %v7963_v23 = vld [vmem:[#allocation2 + $0x50] sm:$0xff]  ;;  %vm11564_vm7 = vmmov %vm11563_vm11 }
 0x207   : > { %v10141_v16 = vadd.f32 %v2883_v4, %v9943_v46  ;;  %v3093_v2 = vsel %vm11563_vm11, %v3088_v20, %v3092_v26  ;;  %4625 = vmatpush.bf16.msrb.mxu1 %v8004_v51  ;;  %v4483_v20 = vshrl.u32 %v4473_v37, 16  ;;  %v7993_v26 = vld [vmem:[#allocation9 + $0x28] sm:$0xff]  ;;  %v4233_v51 = vld [vmem:[#allocation2 + $0x58] sm:$0xf]  ;;  %vm11565_vm11 = vnez %v11391_v3 }
 0x208   : > { %v3809_v46 = vsel %vm11564_vm7, %v3804_v52, %v3808_v49  ;;  %v4474_v22 = vpack.c.b16 %v4459_v31, %v4458_v34  ;;  %4101 = vmatpush.bf16.msrb.mxu3 %v7993_v26  ;;  %v3810_v52 = vshrl.u32 %v10113_v36, 16  ;;  %vm11566_vm7 = vnez %v11402_v62 }
 0x209   : > { %v1838_v14 = vpop.f32.mrf.mxu3 }
 0x20a   : > { %v1839_v1 = vadd.f32 %v1838_v14, %v10024_v7  ;;  %v3764_v7 = vunpack.c.l.b16 %v3713_v38  ;;  %v4486_v38 = vshll.u32 %v4473_v37, 16  ;;  %v4491_v28 = vshrl.u32 %v4474_v22, 16 }
 0x20b   : > { %3924 = vmatmul.bf16.gmra.mxu2 %v3809_v46  ;;  %v3812_v36 = vor.u32 %v3810_v52, %v3808_v49 }
 0x20c   : > { %v2456_v18 = vadd.f32 %v10083_v55, %v1839_v1  ;;  %v10144_v40 = vpop.f32.mrf.mxu0  ;;  %v10150_v6 = vpack.c.b16 %v3765_v29, %v3764_v7  ;;  %v4494_v1 = vshll.u32 %v4474_v22, 16  ;;  %v3698_v7 = vld [vmem:[#allocation2 + $0x40] sm:$0xf]  ;;  %v3699_v29 = vld [vmem:[#allocation2 + $0x44] sm:$0xf] }
 0x20d   : > { %v2733_v59 = vpop.f32.mrf.mxu1 }
 0x20e   : > { %3193 = vmatmul.bf16.gmra.mxu3 %v3093_v2  ;;  %v10147_v32 = vadd.f32 %v2730_v8, %v2456_v18  ;;  %v2886_v14 = vpop.f32.mrf.mxu2  ;;  %v3814_v4 = vshll.u32 %v10150_v6, 16  ;;  %v4485_v18 = vrot.slane %v4483_v20, 3  ;;  %v4488_v2 = vrot.slane %v4486_v38, 4 }
 0x20f   : > { %4398 = vmatmul.bf16.vlgmr.msrb.gmra.mxu0 %v7996_v9  ;;  %v10154_v8 = vadd.f32 %v2886_v14, %v9958_v53  ;;  %v4493_v53 = vrot.slane %v4491_v28, 3  ;;  %v4496_v9 = vrot.slane %v4494_v1, 4  ;;  %v3716_v14 = vsel %vm11536_vm8, %v3699_v29, 0 }
 0x210   : > { %3666 = vmatmul.bf16.gmra.mxu1 %v7963_v23  ;;  %v4250_v23 = vsel %vm11566_vm7, %v4233_v51, 0  ;;  %v3816_v37 = vrot.slane %v3814_v4, 1  ;;  %v3767_v4 = vunpack.c.l.b16 %v3716_v14  ;;  %vm11567_vm7 = vsmask.f32 7424 }
 0x211   : > { %v1841_v55 = vpop.f32.mrf.mxu3  ;;  %v4497_v20 = vor.u32 %v4496_v9, %v4493_v53  ;;  %v4461_v28 = vunpack.c.l.b16 %v4250_v23  ;;  %v3818_v23 = vshrl.u32 %v10150_v6, 16 }
 0x212   : > { %v1842_v30 = vadd.f32 %v1841_v55, %v10040_v24  ;;  %v4232_v24 = vld [vmem:[#allocation2 + $0x54] sm:$0xf]  ;;  %v4489_v55 = vor.u32 %v4488_v2, %v4485_v18  ;;  %v3817_v51 = vsel %vm11567_vm7, %v3812_v36, %v3816_v37 }
 0x214   : > { %v2457_v48 = vadd.f32 %v10104_v45, %v1842_v30  ;;  %v10157_v43 = vpop.f32.mrf.mxu0  ;;  %v4249_v45 = vsel %vm11565_vm11, %v4232_v24, 0  ;;  %v3715_v30 = vsel %vm11535_vm13, %v3698_v7, 0  ;;  %vm11568_vm11 = vsmask.f32 4352 }
 0x215   : > { %v2735_v31 = vpop.f32.mrf.mxu1  ;;  %v4460_v26 = vunpack.c.l.b16 %v4249_v45  ;;  %v3766_v52 = vunpack.c.l.b16 %v3715_v30  ;;  %v4498_v18 = vsel %vm11568_vm11, %v4489_v55, %v4497_v20  ;;  %v3700_v55 = vld [vmem:[#allocation2 + $0x48] sm:$0xf]  ;;  %v3820_v30 = vor.u32 %v3818_v23, %v3816_v37 }
 0x216   : > { %v10161_v34 = vadd.f32 %v2733_v59, %v2457_v48  ;;  %v2888_v59 = vpop.f32.mrf.mxu2  ;;  %vm11569_vm11 = vnez %v11434_v60 }
 0x217   : > { %v10173_v38 = vadd.f32 %v2888_v59, %v9967_v61  ;;  %v4475_v61 = vpack.c.b16 %v4461_v28, %v4460_v26  ;;  %v3778_v2 = vpack.c.b16 %v3767_v4, %v3766_v52  ;;  %v3701_v59 = vld [vmem:[#allocation2 + $0x4c] sm:$0xf]  ;;  %v4234_v26 = vld [vmem:[#allocation2 + $0x5c] sm:$0xf]  ;;  %v4235_v28 = vld [vmem:[#allocation2 + $0x60] sm:$0xf] }
 0x218   : > { %v3717_v52 = vsel %vm11542_vm12, %v3700_v55, 0  ;;  %v3718_v4 = vsel %vm11544_vm10, %v3701_v59, 0 }
 0x219   : > { %v1843_v46 = vpop.f32.mrf.mxu3  ;;  %v4500_v7 = vshrl.u32 %v4475_v61, 16  ;;  %v4503_v29 = vshll.u32 %v4475_v61, 16 }
 0x21a   : > { %v1844_v22 = vadd.f32 %v1843_v46, %v10060_v50  ;;  %v7997_v50 = vld [vmem:[#allocation2 + $0x50] sm:$0xff]  ;;  %v3822_v46 = vshll.u32 %v3778_v2, 16 }
 0x21b   : > { %3929 = vmatmul.bf16.gmra.mxu2 %v3817_v51  ;;  %v4502_v36 = vrot.slane %v4500_v7, 3 }
 0x21c   : > { %v2458_v1 = vadd.f32 %v10119_v39, %v1844_v22  ;;  %v10176_v49 = vpop.f32.mrf.mxu0  ;;  %v7992_v39 = vld [vmem:[#allocation9 + $0x20] sm:$0xff]  ;;  %v4505_v22 = vrot.slane %v4503_v29, 4  ;;  %v3824_v14 = vrot.slane %v3822_v46, 1  ;;  %v7998_v29 = vld [vmem:[#allocation2 + $0x58] sm:$0xff]  ;;  %v3768_v46 = vunpack.c.l.b16 %v3717_v52 }
 0x21d   : > { %v10178_v48 = vpop.f32.mrf.mxu1  ;;  %4102 = vmatpush.bf16.msrb.mxu3 %v7992_v39  ;;  %v3826_v52 = vshrl.u32 %v3778_v2, 16 }
 0x21e   : > { %v10180_v24 = vadd.f32 %v2735_v31, %v2458_v1  ;;  %v2891_v53 = vpop.f32.mrf.mxu2  ;;  %v4251_v1 = vsel %vm9395_vm6, %v4234_v26, 0  ;;  %v4506_v51 = vor.u32 %v4505_v22, %v4502_v36  ;;  %v3825_v23 = vsel %vm11567_vm7, %v3820_v30, %v3824_v14 }
 0x21f   : > { %4403 = vmatmul.bf16.gmra.mxu0 %v7997_v50  ;;  %v10185_v9 = vadd.f32 %v2891_v53, %v9984_v33  ;;  %v4252_v50 = vsel %vm11569_vm11, %v4235_v28, 0  ;;  %v4462_v37 = vunpack.c.l.b16 %v4251_v1  ;;  %v3769_v26 = vunpack.c.l.b16 %v3718_v4  ;;  %v7991_v28 = vld [vmem:[#allocation9 + $0x18] sm:$0xff] }
 0x220   : > { %4626 = vmatmul.bf16.vlgmr.msrb.gmra.mxu1 %v4498_v18  ;;  %v11571_v18 = vld [vmem:[#allocation44_spill] sm:$0xff]  ;;  %v4463_v53 = vunpack.c.l.b16 %v4252_v50  ;;  %vm11572_vm11 = vsmask.f32 4352  ;;  %vm11607_vm6 = vsmask.f32 7424 }
 0x221   : > { %v4507_v55 = vsel %vm11572_vm11, %v4497_v20, %v4506_v51  ;;  %v3779_v22 = vpack.c.b16 %v3769_v26, %v3768_v46  ;;  %4103 = vmatpush.bf16.msrb.mxu3 %v7991_v28  ;;  %v3828_v26 = vor.u32 %v3826_v52, %v3824_v14  ;;  %v7999_v52 = vld [vmem:[#allocation2 + $0x60] sm:$0xff] }
 0x222   : > { %v4476_v59 = vpack.c.b16 %v4463_v53, %v4462_v37  ;;  %v4237_v37 = vld [vmem:[#allocation2 + $0x68] sm:$0xf]  ;;  %v3702_v53 = vld [vmem:[#allocation2 + $0x50] sm:$0xf] }
 0x223   : > { %v3830_v4 = vshll.u32 %v3779_v22, 16  ;;  %v3719_v2 = vsel %vm11549_vm4, %v3702_v53, 0  ;;  %vm11624_vm4 = vsmask.f32 4352 }
 0x224   : > { %v10187_v45 = vpop.f32.mrf.mxu0  ;;  %v4509_v1 = vshrl.u32 %v4476_v59, 16  ;;  %v4512_v50 = vshll.u32 %v4476_v59, 16  ;;  %v11576_v59 = vld [vmem:[#allocation30_spill] sm:$0xff] }
 0x225   : > { %v10189_v31 = vpop.f32.mrf.mxu1  ;;  %v3832_v60 = vrot.slane %v3830_v4, 1  ;;  %vm11577_vm7 = vnez %v11576_v59 }
 0x226   : > { %v2893_v33 = vpop.f32.mrf.mxu2  ;;  %v4514_v20 = vrot.slane %v4512_v50, 4  ;;  %v4254_v21 = vsel %vm11577_vm7, %v4237_v37, 0  ;;  %v3770_v37 = vunpack.c.l.b16 %v3719_v2  ;;  %vm11580_vm7 = vsmask.f32 4352 }
 0x227   : > { %v10201_v61 = vadd.f32 %v2893_v33, %v11571_v18 }
 0x22b   : > { %3934 = vmatmul.bf16.gmra.mxu2 %v3825_v23  ;;  %v4236_v23 = vld [vmem:[#allocation2 + $0x64] sm:$0xf] }
 0x22c   : > { %v10203_v39 = vpop.f32.mrf.mxu0 }
 0x22d   : > { %v10205_v7 = vpop.f32.mrf.mxu1 }
 0x22e   : > { %v2896_v36 = vpop.f32.mrf.mxu2 }
 0x22f   : > { %4408 = vmatmul.bf16.gmra.mxu0 %v7998_v29  ;;  %v10210_v33 = vadd.f32 %v2896_v36, %v10028_v10  ;;  %v4511_v29 = vrot.slane %v4509_v1, 3  ;;  %v11574_v10 = vld [vmem:[#allocation29_spill] sm:$0xff] }
 0x230   : > { %4631 = vmatmul.bf16.gmra.mxu1 %v4507_v55  ;;  %v3703_v55 = vld [vmem:[#allocation2 + $0x54] sm:$0xf]  ;;  %vm11575_vm11 = vnez %v11574_v10 }
 0x231   : > { %11573 = vst [vmem:[#allocation44_spill] sm:$0xff] %v10210_v33  ;;  %v4253_v36 = vsel %vm11575_vm11, %v4236_v23, 0  ;;  %v4515_v28 = vor.u32 %v4514_v20, %v4511_v29  ;;  %v3720_v1 = vsel %vm11550_vm15, %v3703_v55, 0  ;;  %v4465_v23 = vunpack.c.l.b16 %v4254_v21  ;;  %v8027_v55 = vld [vmem:[#allocation8 + $0xb8] sm:$0xff]  ;;  %v7990_v10 = vld [vmem:[#allocation9 + $0x10] sm:$0xff] }
 0x232   : > { %v4464_v4 = vunpack.c.l.b16 %v4253_v36  ;;  %vm11579_vm11 = vsmask.f32 7424  ;;  %v3771_v29 = vunpack.c.l.b16 %v3720_v1  ;;  %4884 = vmatpush.bf16.msra.mxu2 %v8027_v55  ;;  %4104 = vmatpush.bf16.msrb.mxu3 %v7990_v10  ;;  %v3834_v1 = vshrl.u32 %v3779_v22, 16  ;;  %v10247_v55 = vpop.f32.mrf.mxu3  ;;  %v4670_v33 = vld [vmem:[#allocation2 + $0x54] sm:$0xf] }
 0x233   : > { %v3833_v59 = vsel %vm11579_vm11, %v3828_v26, %v3832_v60  ;;  %vm11623_vm15 = vsmask.f32 7424 }
 0x234   : > { %v10212_v18 = vpop.f32.mrf.mxu0  ;;  %v4477_v20 = vpack.c.b16 %v4465_v23, %v4464_v4  ;;  %v11583_v4 = vld [vmem:[#allocation32_spill] sm:$0xff]  ;;  %v3836_v25 = vor.u32 %v3834_v1, %v3832_v60 }
 0x235   : > { %v10214_v30 = vpop.f32.mrf.mxu1  ;;  %vm11584_vm11 = vnez %v11583_v4 }
 0x236   : > { %v2898_v46 = vpop.f32.mrf.mxu2  ;;  %v4518_v26 = vshrl.u32 %v4477_v20, 16  ;;  %v4521_v2 = vshll.u32 %v4477_v20, 16  ;;  %v8026_v20 = vld [vmem:[#allocation8 + $0xb0] sm:$0xff] }
 0x237   : > { %v10221_v62 = vadd.f32 %v2898_v46, %v10046_v19  ;;  %v4516_v19 = vsel %vm11580_vm7, %v4506_v51, %v4515_v28  ;;  %v10233_v46 = vpack.c.b16 %v3771_v29, %v3770_v37  ;;  %v4238_v51 = vld [vmem:[#allocation2 + $0x6c] sm:$0xf]  ;;  %v3704_v29 = vld [vmem:[#allocation2 + $0x58] sm:$0x1]  ;;  %4885 = vmatpush.bf16.msra.mxu2 %v8026_v20 }
 0x238   : > { %v4255_v23 = vsel %vm11584_vm11, %v4238_v51, 0  ;;  %v11585_v37 = vld [vmem:[#allocation33_spill] sm:$0xff]  ;;  %v3721_v51 = vsel %vm11554_vm2, %v3704_v29, 0  ;;  %vm11591_vm11 = vsmask.f32 4352 }
 0x239   : > { %11578 = vst [vmem:[#allocation45_spill] sm:$0xff] %v10221_v62  ;;  %vm11586_vm7 = vnez %v11585_v37  ;;  %v4466_v22 = vunpack.c.l.b16 %v4255_v23  ;;  %v3772_v1 = vunpack.c.l.b16 %v3721_v51  ;;  %v4669_v62 = vld [vmem:[#allocation2 + $0x50] sm:$0xf]  ;;  %vm11618_vm2 = vsmask.f32 4352 }
 0x23a   : > { %v10266_v51 = vpop.f32.mrf.mxu3 }
 0x23b   : > { %3939 = vmatmul.bf16.gmra.mxu2 %v3833_v59  ;;  %v4239_v59 = vld [vmem:[#allocation2 + $0x70] sm:$0xf]  ;;  %v3781_v29 = vpack.c.b16 %v3772_v1, %v3772_v1 }
 0x23c   : > { %v10227_v50 = vpop.f32.mrf.mxu0 }
 0x23d   : > { %v10229_v14 = vpop.f32.mrf.mxu1  ;;  %v3846_v1 = vshll.u32 %v3781_v29, 16 }
 0x23e   : > { %v2901_v53 = vpop.f32.mrf.mxu2 }
 0x23f   : > { %4413 = vmatmul.bf16.gmra.mxu0 %v7999_v52  ;;  %v10236_v3 = vadd.f32 %v2901_v53, %v10078_v58  ;;  %v3838_v52 = vshll.u32 %v10233_v46, 16  ;;  %v4256_v58 = vsel %vm11586_vm7, %v4239_v59, 0  ;;  %v4523_v53 = vrot.slane %v4521_v2, 4  ;;  %v8025_v59 = vld [vmem:[#allocation8 + $0xa8] sm:$0xff] }
 0x240   : > { %4636 = vmatmul.bf16.gmra.mxu1 %v4516_v19  ;;  %v4520_v19 = vrot.slane %v4518_v26, 3  ;;  %v4467_v41 = vunpack.c.l.b16 %v4256_v58  ;;  %v8000_v2 = vld [vmem:[#allocation2 + $0x68] sm:$0xff]  ;;  %vm11590_vm7 = vsmask.f32 7424  ;;  %4886 = vmatpush.bf16.msra.mxu2 %v8025_v59  ;;  %v8024_v58 = vld [vmem:[#allocation8 + $0xa0] sm:$0xff] }
 0x241   : > { %11581 = vst [vmem:[#allocation46_spill] sm:$0xff] %v10236_v3  ;;  %v3840_v3 = vrot.slane %v3838_v52, 1 }
 0x242   : > { %v10258_v37 = vor.u32 %v4523_v53, %v4520_v19  ;;  %v4478_v52 = vpack.c.b16 %v4467_v41, %v4466_v22  ;;  %v4240_v41 = vld [vmem:[#allocation2 + $0x74] sm:$0xf]  ;;  %v4241_v22 = vld [vmem:[#allocation2 + $0x78] sm:$0xf] }
 0x243   : > { %v3841_v60 = vsel %vm11590_vm7, %v3836_v25, %v3840_v3  ;;  %v4668_v25 = vld [vmem:[#allocation2 + $0x4c] sm:$0xf] }
 0x244   : > { %v10238_v36 = vpop.f32.mrf.mxu0  ;;  %v4527_v19 = vshrl.u32 %v4478_v52, 16  ;;  %v4530_v53 = vshll.u32 %v4478_v52, 16  ;;  %4887 = vmatpush.bf16.msra.mxu2 %v8024_v58 }
 0x245   : > { %11582 = vst [vmem:[#allocation47_spill] sm:$0xff] %v10238_v36  ;;  %v10240_v21 = vpop.f32.mrf.mxu1  ;;  %v8051_v36 = vld [vmem:[#allocation8 + $0x138] sm:$0xff] }
 0x246   : > { %v2903_v10 = vpop.f32.mrf.mxu2  ;;  %5355 = vmatpush.bf16.msra.mxu0 %v8051_v36 }
 0x247   : > { %v10250_v54 = vadd.f32 %v2903_v10, %v10095_v27  ;;  %v4525_v27 = vsel %vm11591_vm11, %v4515_v28, %v10258_v37  ;;  %v7989_v10 = vld [vmem:[#allocation9 + $0x8] sm:$0xff]  ;;  %v8023_v28 = vld [vmem:[#allocation8 + $0x98] sm:$0xff] }
 0x248   : > { %4105 = vmatpush.bf16.msrb.mxu3 %v7989_v10  ;;  %4888 = vmatpush.bf16.msra.mxu2 %v8023_v28  ;;  %v11604_v28 = vld [vmem:[#allocation22_spill] sm:$0xff] }
 0x249   : > { %11587 = vst [vmem:[#allocation48_spill] sm:$0xff] %v10250_v54  ;;  %v4532_v54 = vrot.slane %v4530_v53, 4 }
 0x24b   : > { %3944 = vmatmul.bf16.gmra.mxu2 %v3841_v60  ;;  %v3842_v60 = vshrl.u32 %v10233_v46, 16 }
 0x24c   : > { %v10254_v4 = vpop.f32.mrf.mxu0 }
 0x24d   : > { %11588 = vst [vmem:[#allocation49_spill] sm:$0xff] %v10254_v4  ;;  %v10256_v26 = vpop.f32.mrf.mxu1  ;;  %v11597_v4 = vld [vmem:[#allocation36_spill] sm:$0xff]  ;;  %v3844_v13 = vor.u32 %v3842_v60, %v3840_v3  ;;  %v8021_v3 = vld [vmem:[#allocation8 + $0x88] sm:$0xff] }
 0x24e   : > { %11589 = vst [vmem:[#allocation50_spill] sm:$0xff] %v10256_v26  ;;  %v2906_v23 = vpop.f32.mrf.mxu2  ;;  %vm11598_vm11 = vnez %v11597_v4 }
 0x24f   : > { %4418 = vmatmul.bf16.gmra.mxu0 %v8000_v2  ;;  %v10264_v20 = vadd.f32 %v2906_v23, %v10122_v0  ;;  %v4685_v23 = vsel %vm11517_vm5, %v4668_v25, 0  ;;  %v4257_v58 = vsel %vm11598_vm11, %v4240_v41, 0  ;;  %v11602_v41 = vld [vmem:[#allocation21_spill] sm:$0xff] }
 0x250   : > { %4641 = vmatmul.bf16.gmra.mxu1 %v4525_v27  ;;  %v4684_v27 = vsel %vm11516_vm0, %v4667_v5, 0  ;;  %v4735_v46 = vunpack.c.l.b16 %v4685_v23  ;;  %v8022_v5 = vld [vmem:[#allocation8 + $0x90] sm:$0xff]  ;;  %v4468_v26 = vunpack.c.l.b16 %v4257_v58  ;;  %vm11603_vm11 = vnez %v11602_v41 }
 0x251   : > { %11592 = vst [vmem:[#allocation51_spill] sm:$0xff] %v10264_v20  ;;  %v4529_v20 = vrot.slane %v4527_v19, 3  ;;  %v4734_v6 = vunpack.c.l.b16 %v4684_v27  ;;  %4889 = vmatpush.bf16.msra.mxu2 %v8022_v5  ;;  %v8020_v5 = vld [vmem:[#allocation8 + $0x80] sm:$0xff] }
 0x253   : > { %v10281_v19 = vor.u32 %v4532_v54, %v4529_v20  ;;  %v4751_v23 = vpack.c.b16 %v4735_v46, %v4734_v6  ;;  %v10294_v54 = vpop.f32.mrf.mxu3  ;;  %v8050_v6 = vld [vmem:[#allocation8 + $0x130] sm:$0xff] }
 0x254   : > { %v10268_v2 = vpop.f32.mrf.mxu0  ;;  %5356 = vmatpush.bf16.msra.mxu0 %v8050_v6  ;;  %v4671_v6 = vld [vmem:[#allocation2 + $0x58] sm:$0xf] }
 0x255   : > { %11593 = vst [vmem:[#allocation52_spill] sm:$0xff] %v10268_v2  ;;  %v10270_v59 = vpop.f32.mrf.mxu1  ;;  %v11599_v2 = vld [vmem:[#allocation37_spill] sm:$0xff]  ;;  %4890 = vmatpush.bf16.msra.mxu2 %v8021_v3  ;;  %v4763_v4 = vshll.u32 %v4751_v23, 16  ;;  %v4243_v3 = vld [vmem:[#allocation2 + $0x80] sm:$0xf] }
 0x256   : > { %11594 = vst [vmem:[#allocation53_spill] sm:$0xff] %v10270_v59  ;;  %vm11600_vm7 = vnez %v11599_v2  ;;  %v2908_v29 = vpop.f32.mrf.mxu2  ;;  %v3848_v59 = vrot.slane %v3846_v1, 1  ;;  %v8001_v1 = vld [vmem:[#allocation2 + $0x70] sm:$0xff] }
 0x257   : > { %v4258_v10 = vsel %vm11600_vm7, %v4241_v22, 0  ;;  %v10284_v53 = vadd.f32 %v2908_v29, %v10147_v32  ;;  %v4686_v22 = vsel %vm11603_vm11, %v4669_v62, 0  ;;  %vm11605_vm7 = vnez %v11604_v28 }
 0x258   : > { %v4469_v25 = vunpack.c.l.b16 %v4258_v10  ;;  %v4687_v2 = vsel %vm11605_vm7, %v4670_v33, 0  ;;  %v3849_v32 = vsel %vm11607_vm6, %v3844_v13, %v3848_v59  ;;  %v4736_v58 = vunpack.c.l.b16 %v4686_v22  ;;  %v4242_v59 = vld [vmem:[#allocation2 + $0x7c] sm:$0xf] }
 0x259   : > { %11601 = vst [vmem:[#allocation16_spill] sm:$0xff] %v10284_v53  ;;  %v4737_v10 = vunpack.c.l.b16 %v4687_v2  ;;  %v4534_v62 = vsel %vm11608_vm1, %v10258_v37, %v10281_v19  ;;  %4891 = vmatpush.bf16.msra.mxu2 %v8020_v5  ;;  %v8049_v37 = vld [vmem:[#allocation8 + $0x128] sm:$0xff]  ;;  %v4761_v22 = vshrl.u32 %v4751_v23, 16 }
 0x25a   : > { %v4479_v20 = vpack.c.b16 %v4469_v25, %v4468_v26  ;;  %v7988_v26 = vld [vmem:[#allocation9] sm:$0xff]  ;;  %5357 = vmatpush.bf16.msra.mxu0 %v8049_v37 }
 0x25b   : > { %3949 = vmatmul.bf16.gmra.mxu2 %v3849_v32  ;;  %v10300_v46 = vpack.c.b16 %v4737_v10, %v4736_v58  ;;  %4106 = vmatpush.bf16.msrb.mxu3 %v7988_v26  ;;  %v11611_v10 = vld [vmem:[#allocation40_spill] sm:$0xff] }
 0x25c   : > { %v10290_v27 = vpop.f32.mrf.mxu0  ;;  %v4536_v36 = vshrl.u32 %v4479_v20, 16  ;;  %v4539_v29 = vshll.u32 %v4479_v20, 16  ;;  %v4765_v20 = vrot.slane %v4763_v4, 1  ;;  %vm11612_vm6 = vnez %v11611_v10 }
 0x25d   : > { %11606 = vst [vmem:[#allocation21_spill] sm:$0xff] %v10290_v27  ;;  %v10292_v60 = vpop.f32.mrf.mxu1  ;;  %v4768_v58 = vshll.u32 %v10300_v46, 16 }
 0x25e   : > { %v2911_v33 = vpop.f32.mrf.mxu2  ;;  %v4541_v32 = vrot.slane %v4539_v29, 4  ;;  %v4766_v26 = vor.u32 %v4765_v20, %v4761_v22  ;;  %v8048_v29 = vld [vmem:[#allocation8 + $0x120] sm:$0xff] }
 0x25f   : > { %4423 = vmatmul.bf16.gmra.mxu0 %v8001_v1  ;;  %v10303_v13 = vadd.f32 %v2911_v33, %v10161_v34  ;;  %v4538_v1 = vrot.slane %v4536_v36, 3  ;;  %v4259_v34 = vsel %vm11612_vm6, %v4242_v59, 0  ;;  %v11613_v33 = vld [vmem:[#allocation42_spill] sm:$0xff]  ;;  %v4770_v36 = vrot.slane %v4768_v58, 1 }
 0x260   : > { %4646 = vmatmul.bf16.gmra.mxu1 %v4534_v62  ;;  %v10312_v62 = vpop.f32.mrf.mxu3  ;;  %vm11614_vm1 = vnez %v11613_v33  ;;  %v4470_v4 = vunpack.c.l.b16 %v4259_v34  ;;  %vm11615_vm6 = vnez %v11398_v17  ;;  %5358 = vmatpush.bf16.msra.mxu0 %v8048_v29  ;;  %v3199_v34 = vadd.f32 %v10247_v55, %v10081_v56  ;;  %v8058_v29 = vld [vmem:[#allocation8 + $0x170] sm:$0xff] }
 0x261   : > { %11609 = vst [vmem:[#allocation22_spill] sm:$0xff] %v10303_v13  ;;  %v4260_v5 = vsel %vm11614_vm1, %v4243_v3, 0  ;;  %v4672_v13 = vld [vmem:[#allocation2 + $0x5c] sm:$0xf]  ;;  %v10316_v53 = vor.u32 %v4541_v32, %v4538_v1  ;;  %v4688_v37 = vsel %vm11615_vm6, %v4671_v6, 0 }
 0x262   : > { %v4471_v59 = vunpack.c.l.b16 %v4260_v5  ;;  %v4689_v3 = vsel %vm11616_vm3, %v4672_v13, 0  ;;  %v8047_v1 = vld [vmem:[#allocation8 + $0x118] sm:$0xff]  ;;  %vm11617_vm1 = vsmask.f32 7424  ;;  %v4738_v58 = vunpack.c.l.b16 %v4688_v37 }
 0x263   : > { %v8002_v32 = vld [vmem:[#allocation2 + $0x78] sm:$0xff]  ;;  %v4771_v20 = vsel %vm11617_vm1, %v4766_v26, %v4770_v36  ;;  %v4543_v13 = vsel %vm11618_vm2, %v10281_v19, %v10316_v53  ;;  %v3200_v37 = vadd.f32 %v10266_v51, %v10098_v35  ;;  %v3494_v56 = vadd.f32 %v10144_v40, %v3199_v34  ;;  %v4244_v19 = vld [vmem:[#allocation2 + $0x84] sm:$0xf] }
 0x264   : > { %v10305_v2 = vpop.f32.mrf.mxu0  ;;  %v4480_v5 = vpack.c.b16 %v4471_v59, %v4470_v4  ;;  %5359 = vmatpush.bf16.msra.mxu0 %v8047_v1  ;;  %v8045_v4 = vld [vmem:[#allocation8 + $0x108] sm:$0xff]  ;;  %v11619_v40 = vld [vmem:[#allocation43_spill] sm:$0xff]  ;;  %vm11621_vm1 = vnez %v11425_v11 }
 0x265   : > { %11610 = vst [vmem:[#allocation54_spill] sm:$0xff] %v10305_v2  ;;  %v10307_v25 = vpop.f32.mrf.mxu1  ;;  %v8059_v2 = vld [vmem:[#allocation8 + $0x178] sm:$0xff]  ;;  %v8057_v59 = vld [vmem:[#allocation8 + $0x168] sm:$0xff]  ;;  %v3672_v1 = vadd.f32 %v10178_v48, %v3494_v56  ;;  %vm11620_vm2 = vnez %v11619_v40  ;;  %v4674_v56 = vld [vmem:[#allocation2 + $0x64] sm:$0xf] }
 0x266   : > { %v2913_v23 = vpop.f32.mrf.mxu2  ;;  %5637 = vmatpush.bf16.msra.mxu1 %v8059_v2  ;;  %v4545_v55 = vshrl.u32 %v4480_v5, 16  ;;  %v4261_v51 = vsel %vm11620_vm2, %v4244_v19, 0  ;;  %v8044_v19 = vld [vmem:[#allocation8 + $0x100] sm:$0xff]  ;;  %vm11622_vm2 = vnez %v11432_v15 }
 0x267   : > { %v10319_v27 = vadd.f32 %v2913_v23, %v10180_v24  ;;  %v4739_v24 = vunpack.c.l.b16 %v4689_v3  ;;  %v8046_v23 = vld [vmem:[#allocation8 + $0x110] sm:$0xff]  ;;  %v4548_v3 = vshll.u32 %v4480_v5, 16  ;;  %v10355_v5 = vld [vmem:[%s11151_s4] ss:$0 sm:$0xff] }
 0x268   : > { %v10335_v2 = vpop.f32.mrf.mxu3  ;;  %5360 = vmatpush.bf16.msra.mxu0 %v8046_v23  ;;  %v4547_v23 = vrot.slane %v4545_v55, 3 }
 0x269   : > { %v10337_v26 = vpack.c.b16 %v4739_v24, %v4738_v58  ;;  %v4772_v58 = vshrl.u32 %v10300_v46, 16  ;;  %v3495_v24 = vadd.f32 %v10157_v43, %v3200_v37  ;;  %v4550_v48 = vrot.slane %v4548_v3, 4  ;;  %v8056_v43 = vld [vmem:[#allocation8 + $0x160] sm:$0xff] }
 0x26a   : > { %5638 = vmatpush.bf16.msra.mxu1 %v8058_v29  ;;  %v4673_v29 = vld [vmem:[#allocation2 + $0x60] sm:$0xf] }
 0x26b   : > { %4892 = vmatmul.bf16.vlgmr.msra.gmra.mxu2 %v4771_v20  ;;  %v4776_v35 = vshll.u32 %v10337_v26, 16  ;;  %v3673_v46 = vadd.f32 %v10189_v31, %v3495_v24  ;;  %v4774_v10 = vor.u32 %v4772_v58, %v4770_v36  ;;  %v4690_v37 = vsel %vm11621_vm1, %v4673_v29, 0  ;;  %v8003_v58 = vld [vmem:[#allocation2 + $0x80] sm:$0xff]  ;;  %v8042_v29 = vld [vmem:[#allocation8 + $0xf0] sm:$0xff] }
 0x26c   : > { %v10325_v33 = vpop.f32.mrf.mxu0  ;;  %5361 = vmatpush.bf16.msra.mxu0 %v8045_v4  ;;  %v10363_v55 = vor.u32 %v4550_v48, %v4547_v23  ;;  %v4691_v4 = vsel %vm11622_vm2, %v4674_v56, 0  ;;  %v3201_v24 = vadd.f32 %v10294_v54, %v10116_v44  ;;  %v4740_v23 = vunpack.c.l.b16 %v4690_v37  ;;  %v8054_v44 = vld [vmem:[#allocation8 + $0x150] sm:$0xff] }
 0x26d   : > { %v10327_v22 = vpop.f32.mrf.mxu1  ;;  %v10358_v40 = vrot.slane %v4776_v35, 1  ;;  %v4741_v48 = vunpack.c.l.b16 %v4691_v4 }
 0x26e   : > { %v3915_v6 = vpop.f32.mrf.mxu2  ;;  %5639 = vmatpush.bf16.msra.mxu1 %v8057_v59  ;;  %v3496_v37 = vadd.f32 %v10176_v49, %v3201_v24  ;;  %v5422_v49 = vld [vmem:[#allocation2 + $0x58] sm:$0xf] }
 0x26f   : > { %4428 = vmatmul.bf16.gmra.mxu0 %v8002_v32  ;;  %v8043_v32 = vld [vmem:[#allocation8 + $0xf8] sm:$0xff]  ;;  %v3955_v34 = vadd.f32 %v3915_v6, %v3672_v1  ;;  %v4472_v6 = vunpack.c.l.b16 %v4261_v51 }
 0x270   : > { %4651 = vmatmul.bf16.gmra.mxu1 %v4543_v13  ;;  %5178 = vmatpush.bf16.msra.mxu3 %v8043_v32  ;;  %v10367_v59 = vpop.f32.mrf.mxu3  ;;  %v8055_v51 = vld [vmem:[#allocation8 + $0x158] sm:$0xff] }
 0x271   : > { %v3975_v1 = vadd.f32 %v10355_v5, %v3955_v34  ;;  %5362 = vmatpush.bf16.msra.mxu0 %v8044_v19  ;;  %v4779_v34 = vsel %vm11623_vm15, %v4774_v10, %v10358_v40  ;;  %v4481_v19 = vpack.c.b16 %v4472_v6, %v4472_v6  ;;  %v3202_v10 = vadd.f32 %v10312_v62, %v10141_v16 }
 0x272   : > { %5640 = vmatpush.bf16.msra.mxu1 %v8056_v43  ;;  %v3674_v6 = vadd.f32 %v10205_v7, %v3496_v37 }
 0x273   : > { %v3991_v56 = vmax.f32 %v3975_v1, 0.0  ;;  %v4554_v1 = vshrl.u32 %v4481_v19, 16  ;;  %v4557_v4 = vshll.u32 %v4481_v19, 16  ;;  %v3497_v24 = vadd.f32 %v10187_v45, %v3202_v10 }
 0x274   : > { %v10342_v20 = vpop.f32.mrf.mxu0  ;;  %5179 = vmatpush.bf16.msra.mxu3 %v8042_v29 }
 0x275   : > { %v10345_v13 = vpop.f32.mrf.mxu1  ;;  %v4559_v7 = vrot.slane %v4557_v4, 4  ;;  %v4676_v4 = vld [vmem:[#allocation2 + $0x6c] sm:$0xf] }
 0x276   : > { %v3917_v32 = vpop.f32.mrf.mxu2  ;;  %5641 = vmatpush.bf16.msra.mxu1 %v8055_v51  ;;  %v8053_v51 = vld [vmem:[#allocation8 + $0x148] sm:$0xff] }
 0x277   : > { %v3956_v3 = vadd.f32 %v3917_v32, %v3673_v46  ;;  %v4552_v46 = vsel %vm11624_vm4, %v10316_v53, %v10363_v55  ;;  %v5420_v53 = vld [vmem:[#allocation2 + $0x50] sm:$0xf] }
 0x278   : > { %v5437_v62 = vsel %vm11516_vm0, %v5420_v53, 0 }
 0x279   : > { %v3976_v35 = vadd.f32 %v10355_v5, %v3956_v3  ;;  %v10381_v3 = vpack.c.b16 %v4741_v48, %v4740_v23  ;;  %v10391_v23 = vpop.f32.mrf.mxu3  ;;  %v4780_v48 = vshrl.u32 %v10337_v26, 16  ;;  %v8052_v26 = vld [vmem:[#allocation8 + $0x140] sm:$0xff]  ;;  %v5487_v10 = vunpack.c.l.b16 %v5437_v62 }
 0x27a   : > { %5642 = vmatpush.bf16.msra.mxu1 %v8054_v44  ;;  %v5439_v44 = vsel %vm11603_vm11, %v5422_v49, 0  ;;  %v8028_v49 = vld [vmem:[#allocation2 + $0x50] sm:$0xff] }
 0x27b   : > { %v3992_v32 = vmax.f32 %v3976_v35, 0.0  ;;  %4897 = vmatmul.bf16.gmra.mxu2 %v4779_v34  ;;  %v5421_v34 = vld [vmem:[#allocation2 + $0x54] sm:$0xf]  ;;  %v4784_v16 = vshll.u32 %v10381_v3, 16  ;;  %v4782_v53 = vor.u32 %v4780_v48, %v10358_v40  ;;  %v4693_v48 = vsel %vm11532_vm14, %v4676_v4, 0 }
 0x27c   : > { %v10369_v31 = vpop.f32.mrf.mxu0  ;;  %v5438_v19 = vsel %vm11517_vm5, %v5421_v34, 0 }
 0x27d   : > { %v10371_v36 = vpop.f32.mrf.mxu1  ;;  %v4007_v43 = vpack.c.bf16 %v3992_v32, %v3991_v56  ;;  %v4556_v56 = vrot.slane %v4554_v1, 3  ;;  %v8041_v32 = vld [vmem:[#allocation8 + $0xe8] sm:$0xff]  ;;  %v4786_v45 = vrot.slane %v4784_v16, 1  ;;  %v3203_v16 = vadd.f32 %v10335_v2, %v10154_v8 }
 0x27e   : > { %v3920_v54 = vpop.f32.mrf.mxu2  ;;  %5643 = vmatpush.bf16.msra.mxu1 %v8053_v51  ;;  %5180 = vmatpush.bf16.msra.mxu3 %v8041_v32  ;;  %v4675_v1 = vld [vmem:[#allocation2 + $0x68] sm:$0xf]  ;;  %v5488_v51 = vunpack.c.l.b16 %v5438_v19  ;;  %v3204_v8 = vadd.f32 %v10367_v59, %v10173_v38 }
 0x27f   : > { %4433 = vmatmul.bf16.gmra.mxu0 %v8003_v58  ;;  %4107 = vmatmul.bf16.vlgmr.msrb.gmra.mxu3 %v4007_v43  ;;  %v3957_v29 = vadd.f32 %v3920_v54, %v3674_v6  ;;  %v3675_v43 = vadd.f32 %v10214_v30, %v3497_v24  ;;  %v4560_v34 = vor.u32 %v4559_v7, %v4556_v56  ;;  %v4692_v40 = vsel %vm11531_vm9, %v4675_v1, 0 }
 0x280   : > { %4656 = vmatmul.bf16.gmra.mxu1 %v4552_v46  ;;  %v5423_v46 = vld [vmem:[#allocation2 + $0x5c] sm:$0xf]  ;;  %v4787_v62 = vsel %vm11623_vm15, %v4782_v53, %v4786_v45  ;;  %v4743_v1 = vunpack.c.l.b16 %v4693_v48  ;;  %v3498_v2 = vadd.f32 %v10203_v39, %v3203_v16  ;;  %v8040_v48 = vld [vmem:[#allocation8 + $0xe0] sm:$0xff] }
 0x281   : > { %v5440_v54 = vsel %vm11605_vm7, %v5423_v46, 0  ;;  %v3977_v6 = vadd.f32 %v10355_v5, %v3957_v29  ;;  %v5489_v29 = vunpack.c.l.b16 %v5439_v44  ;;  %v4561_v46 = vsel %vm11624_vm4, %v10363_v55, %v4560_v34  ;;  %vm11625_vm4 = vmmov %vm11623_vm15 }
 0x282   : > { %5644 = vmatpush.bf16.msra.mxu1 %v8052_v26  ;;  %v5490_v56 = vunpack.c.l.b16 %v5440_v54  ;;  %v3176_v26 = vpop.f32.mrf.mxu3  ;;  %5181 = vmatpush.bf16.msra.mxu3 %v8040_v48 }
 0x283   : > { %v3993_v7 = vmax.f32 %v3977_v6, 0.0 }
 0x284   : > { %v10386_v58 = vpop.f32.mrf.mxu0  ;;  %v10422_v44 = vpack.c.b16 %v5490_v56, %v5489_v29 }
 0x285   : > { %v10389_v35 = vpop.f32.mrf.mxu1 }
 0x286   : > { %v3922_v37 = vpop.f32.mrf.mxu2  ;;  %v5521_v39 = vshll.u32 %v10422_v44, 16 }
 0x287   : > { %v3958_v30 = vadd.f32 %v3922_v37, %v3675_v43  ;;  %v5504_v43 = vpack.c.b16 %v5488_v51, %v5487_v10  ;;  %v4742_v37 = vunpack.c.l.b16 %v4692_v40  ;;  %v3676_v10 = vadd.f32 %v10229_v14, %v3498_v2  ;;  %v5425_v40 = vld [vmem:[#allocation2 + $0x64] sm:$0xf] }
 0x288   : > { %v4788_v51 = vshrl.u32 %v10381_v3, 16 }
 0x289   : > { %v3978_v32 = vadd.f32 %v10355_v5, %v3958_v30  ;;  %v5516_v53 = vshll.u32 %v5504_v43, 16  ;;  %v10424_v55 = vpack.c.b16 %v4743_v1, %v4742_v37  ;;  %v5514_v34 = vshrl.u32 %v5504_v43, 16 }
 0x28a   : > { %v10434_v14 = vpop.f32.mrf.mxu3  ;;  %v4790_v56 = vor.u32 %v4788_v51, %v4786_v45  ;;  %v5523_v37 = vrot.slane %v5521_v39, 1 }
 0x28b   : > { %v3994_v19 = vmax.f32 %v3978_v32, 0.0  ;;  %4902 = vmatmul.bf16.gmra.mxu2 %v4787_v62  ;;  %v3499_v32 = vadd.f32 %v10212_v18, %v3204_v8  ;;  %v5518_v59 = vrot.slane %v5516_v53, 1  ;;  %v4792_v16 = vshll.u32 %v10424_v55, 16  ;;  %v8029_v8 = vld [vmem:[#allocation2 + $0x58] sm:$0xff] }
 0x28c   : > { %v4399_v24 = vpop.f32.mrf.mxu0  ;;  %v5442_v18 = vsel %vm11616_vm3, %v5425_v40, 0 }
 0x28d   : > { %v10407_v52 = vpop.f32.mrf.mxu1  ;;  %v4008_v4 = vpack.c.bf16 %v3994_v19, %v3993_v7  ;;  %v3677_v62 = vadd.f32 %v10240_v21, %v3499_v32  ;;  %v4677_v7 = vld [vmem:[#allocation2 + $0x70] sm:$0xf]  ;;  %v5519_v43 = vor.u32 %v5518_v59, %v5514_v34  ;;  %v4794_v21 = vrot.slane %v4792_v16, 1 }
 0x28e   : > { %v3925_v30 = vpop.f32.mrf.mxu2  ;;  %v4694_v45 = vsel %vm11535_vm13, %v4677_v7, 0  ;;  %v5492_v34 = vunpack.c.l.b16 %v5442_v18  ;;  %v3205_v32 = vadd.f32 %v10391_v23, %v10185_v9  ;;  %v11626_v18 = vld [vmem:[#allocation50_spill] sm:$0xff] }
 0x28f   : > { %5363 = vmatmul.bf16.vlgmr.msra.gmra.mxu0 %v8028_v49  ;;  %4112 = vmatmul.bf16.gmra.mxu3 %v4008_v4  ;;  %v5424_v49 = vld [vmem:[#allocation2 + $0x60] sm:$0xf]  ;;  %v3959_v38 = vadd.f32 %v3925_v30, %v3676_v10  ;;  %v4795_v51 = vsel %vm11623_vm15, %v4790_v56, %v4794_v21  ;;  %v5524_v59 = vsel %vm11625_vm4, %v5519_v43, %v5523_v37  ;;  %v4744_v40 = vunpack.c.l.b16 %v4694_v45  ;;  %vm11631_vm15 = vmmov %vm11625_vm4 }
 0x290   : > { %4661 = vmatmul.bf16.gmra.mxu1 %v4561_v46  ;;  %v5441_v3 = vsel %vm11615_vm6, %v5424_v49, 0  ;;  %v4678_v46 = vld [vmem:[#allocation2 + $0x74] sm:$0xf]  ;;  %v5525_v43 = vshrl.u32 %v10422_v44, 16  ;;  %v5427_v44 = vld [vmem:[#allocation2 + $0x6c] sm:$0xf] }
 0x291   : > { %v3979_v19 = vadd.f32 %v10355_v5, %v3959_v38  ;;  %v4695_v53 = vsel %vm11536_vm8, %v4678_v46, 0  ;;  %v5491_v49 = vunpack.c.l.b16 %v5441_v3 }
 0x292   : > { %v4745_v48 = vunpack.c.l.b16 %v4695_v53  ;;  %v3181_v3 = vpop.f32.mrf.mxu3  ;;  %v4680_v53 = vld [vmem:[#allocation2 + $0x7c] sm:$0xf] }
 0x293   : > { %v3995_v38 = vmax.f32 %v3979_v19, 0.0  ;;  %v10454_v56 = vpack.c.b16 %v5492_v34, %v5491_v49  ;;  %v5527_v34 = vor.u32 %v5525_v43, %v5523_v37 }
 0x294   : > { %v4401_v54 = vpop.f32.mrf.mxu0  ;;  %v10456_v23 = vpack.c.b16 %v4745_v48, %v4744_v40 }
 0x295   : > { %v10427_v6 = vpop.f32.mrf.mxu1 }
 0x296   : > { %v3927_v29 = vpop.f32.mrf.mxu2  ;;  %v4800_v45 = vshll.u32 %v10456_v23, 16 }
 0x297   : > { %v3960_v1 = vadd.f32 %v3927_v29, %v3677_v62  ;;  %v3500_v29 = vadd.f32 %v10227_v50, %v3205_v32  ;;  %v5529_v50 = vshll.u32 %v10454_v56, 16 }
 0x299   : > { %v3980_v2 = vadd.f32 %v10355_v5, %v3960_v1  ;;  %v3678_v7 = vadd.f32 %v11626_v18, %v3500_v29  ;;  %v4796_v1 = vshrl.u32 %v10424_v55, 16  ;;  %v5531_v40 = vrot.slane %v5529_v50, 1  ;;  %v11632_v50 = vld [vmem:[#allocation44_spill] sm:$0xff] }
 0x29a   : > { %v4802_v29 = vrot.slane %v4800_v45, 1  ;;  %v3184_v43 = vpop.f32.mrf.mxu3 }
 0x29b   : > { %v3996_v39 = vmax.f32 %v3980_v2, 0.0  ;;  %4907 = vmatmul.bf16.gmra.mxu2 %v4795_v51  ;;  %v8039_v2 = vld [vmem:[#allocation8 + $0xd8] sm:$0xff]  ;;  %v11628_v51 = vld [vmem:[#allocation53_spill] sm:$0xff]  ;;  %v4798_v32 = vor.u32 %v4796_v1, %v4794_v21  ;;  %v5532_v45 = vsel %vm11625_vm4, %v5527_v34, %v5531_v40 }
 0x29c   : > { %v4404_v4 = vpop.f32.mrf.mxu0  ;;  %5182 = vmatpush.bf16.msra.mxu3 %v8039_v2 }
 0x29d   : > { %v4627_v30 = vpop.f32.mrf.mxu1  ;;  %v4009_v16 = vpack.c.bf16 %v3996_v39, %v3995_v38  ;;  %v5426_v38 = vld [vmem:[#allocation2 + $0x68] sm:$0xf] }
 0x29e   : > { %v10446_v10 = vadd.f32 %v4627_v30, %v4399_v24  ;;  %v3930_v62 = vpop.f32.mrf.mxu2  ;;  %v3206_v24 = vadd.f32 %v3176_v26, %v10201_v61  ;;  %v11627_v30 = vld [vmem:[#allocation47_spill] sm:$0xff]  ;;  %v5443_v21 = vsel %vm11621_vm1, %v5426_v38, 0 }
 0x29f   : > { %5368 = vmatmul.bf16.gmra.mxu0 %v8029_v8  ;;  %4117 = vmatmul.bf16.gmra.mxu3 %v4009_v16  ;;  %v3961_v26 = vadd.f32 %v3930_v62, %v3678_v7  ;;  %v4679_v8 = vld [vmem:[#allocation2 + $0x78] sm:$0xf]  ;;  %v4697_v62 = vsel %vm11544_vm10, %v4680_v53, 0  ;;  %v8030_v7 = vld [vmem:[#allocation2 + $0x60] sm:$0xff] }
 0x2a0   : > { %5645 = vmatmul.bf16.vlgmr.msra.gmra.mxu1 %v5524_v59  ;;  %v3501_v61 = vadd.f32 %v11627_v30, %v3206_v24  ;;  %v11629_v59 = vld [vmem:[#allocation34_spill] sm:$0xff]  ;;  %v4696_v55 = vsel %vm11542_vm12, %v4679_v8, 0  ;;  %v4803_v30 = vsel %vm11631_vm15, %v4798_v32, %v4802_v29  ;;  %v3207_v8 = vadd.f32 %v10434_v14, %v11632_v50 }
 0x2a1   : > { %v3981_v39 = vadd.f32 %v10355_v5, %v3961_v26  ;;  %v4747_v26 = vunpack.c.l.b16 %v4697_v62  ;;  %v8038_v50 = vld [vmem:[#allocation8 + $0xd0] sm:$0xff] }
 0x2a2   : > { %v3679_v49 = vadd.f32 %v11628_v51, %v3501_v61  ;;  %v4746_v61 = vunpack.c.l.b16 %v4696_v55  ;;  %v11634_v55 = vld [vmem:[#allocation49_spill] sm:$0xff]  ;;  %5183 = vmatpush.bf16.msra.mxu3 %v8038_v50 }
 0x2a3   : > { %v3997_v2 = vmax.f32 %v3981_v39, 0.0 }
 0x2a4   : > { %v4406_v9 = vpop.f32.mrf.mxu0 }
 0x2a5   : > { %v4629_v46 = vpop.f32.mrf.mxu1 }
 0x2a6   : > { %v10459_v19 = vadd.f32 %v4629_v46, %v4401_v54  ;;  %v3932_v54 = vpop.f32.mrf.mxu2  ;;  %v5444_v46 = vsel %vm11622_vm2, %v5427_v44, 0  ;;  %v11633_v44 = vld [vmem:[#allocation45_spill] sm:$0xff]  ;;  %vm11640_vm2 = vsmask.f32 7424 }
 0x2a7   : > { %v3962_v48 = vadd.f32 %v3932_v54, %v3679_v49  ;;  %v5493_v49 = vunpack.c.l.b16 %v5443_v21  ;;  %v5494_v54 = vunpack.c.l.b16 %v5444_v46  ;;  %v3208_v32 = vadd.f32 %v3181_v3, %v11633_v44  ;;  %v8075_v21 = vld [vmem:[#allocation8 + $0x1b8] sm:$0xff]  ;;  %v11635_v46 = vld [vmem:[#allocation52_spill] sm:$0xff]  ;;  %vm11642_vm1 = vmmov %vm11640_vm2 }
 0x2a8   : > { %5931 = vmatpush.bf16.msrb.mxu2 %v8075_v21  ;;  %v8031_v21 = vld [vmem:[#allocation2 + $0x68] sm:$0xff] }
 0x2a9   : > { %v3982_v37 = vadd.f32 %v10355_v5, %v3962_v48  ;;  %v3502_v48 = vadd.f32 %v11634_v55, %v3207_v8  ;;  %v10492_v34 = vpack.c.b16 %v5494_v54, %v5493_v49  ;;  %v3186_v8 = vpop.f32.mrf.mxu3  ;;  %v5429_v49 = vld [vmem:[#allocation2 + $0x74] sm:$0xf]  ;;  %v11638_v55 = vld [vmem:[#allocation39_spill] sm:$0xff] }
 0x2aa   : > { %v11636_v54 = vld [vmem:[#allocation38_spill] sm:$0xff]  ;;  %vm11639_vm4 = vnez %v11638_v55 }
 0x2ab   : > { %v3998_v53 = vmax.f32 %v3982_v37, 0.0  ;;  %4912 = vmatmul.bf16.gmra.mxu2 %v4803_v30  ;;  %v3680_v14 = vadd.f32 %v10292_v60, %v3502_v48  ;;  %v3503_v30 = vadd.f32 %v11635_v46, %v3208_v32  ;;  %vm11637_vm15 = vnez %v11636_v54 }
 0x2ac   : > { %v10472_v24 = vpop.f32.mrf.mxu0 }
 0x2ad   : > { %v4632_v18 = vpop.f32.mrf.mxu1  ;;  %v4010_v51 = vpack.c.bf16 %v3998_v53, %v3997_v2  ;;  %v4682_v2 = vld [vmem:[#allocation2 + $0x84] sm:$0xf]  ;;  %v3681_v60 = vadd.f32 %v10307_v25, %v3503_v30 }
 0x2ae   : > { %v10479_v1 = vadd.f32 %v4632_v18, %v4404_v4  ;;  %v3935_v38 = vpop.f32.mrf.mxu2  ;;  %v10485_v4 = vpack.c.b16 %v4747_v26, %v4746_v61  ;;  %v5533_v61 = vshrl.u32 %v10454_v56, 16  ;;  %v4681_v26 = vld [vmem:[#allocation2 + $0x80] sm:$0xf]  ;;  %v4699_v48 = vsel %vm11639_vm4, %v4682_v2, 0 }
 0x2af   : > { %5373 = vmatmul.bf16.gmra.mxu0 %v8030_v7  ;;  %4122 = vmatmul.bf16.gmra.mxu3 %v4010_v51  ;;  %v4804_v7 = vshrl.u32 %v10456_v23, 16  ;;  %v3963_v3 = vadd.f32 %v3935_v38, %v3680_v14  ;;  %v5428_v51 = vld [vmem:[#allocation2 + $0x70] sm:$0xf]  ;;  %v4698_v38 = vsel %vm11637_vm15, %v4681_v26, 0 }
 0x2b0   : > { %5650 = vmatmul.bf16.gmra.mxu1 %v5532_v45  ;;  %v4808_v37 = vshll.u32 %v10485_v4, 16  ;;  %v5535_v44 = vor.u32 %v5533_v61, %v5531_v40  ;;  %v8074_v14 = vld [vmem:[#allocation8 + $0x1b0] sm:$0xff]  ;;  %v4749_v61 = vunpack.c.l.b16 %v4699_v48  ;;  %v11644_v48 = vld [vmem:[#allocation21_spill] sm:$0xff] }
 0x2b1   : > { %v4806_v23 = vor.u32 %v4804_v7, %v4802_v29  ;;  %v3983_v56 = vadd.f32 %v10355_v5, %v3963_v3  ;;  %v5445_v7 = vsel %vm11531_vm9, %v5428_v51, 0  ;;  %v4748_v3 = vunpack.c.l.b16 %v4698_v38  ;;  %5932 = vmatpush.bf16.msrb.mxu2 %v8074_v14  ;;  %v11641_v26 = vld [vmem:[#allocation46_spill] sm:$0xff] }
 0x2b2   : > { %v4810_v53 = vrot.slane %v4808_v37, 1  ;;  %v5446_v37 = vsel %vm11532_vm14, %v5429_v49, 0  ;;  %v3209_v50 = vadd.f32 %v3184_v43, %v11641_v26  ;;  %v5495_v49 = vunpack.c.l.b16 %v5445_v7 }
 0x2b3   : > { %v3999_v2 = vmax.f32 %v3983_v56, 0.0  ;;  %v10520_v42 = vpack.c.b16 %v4749_v61, %v4748_v3  ;;  %v8072_v56 = vld [vmem:[#allocation8 + $0x1a0] sm:$0xff]  ;;  %v5541_v7 = vshrl.u32 %v10492_v34, 16  ;;  %v11645_v3 = vld [vmem:[#allocation54_spill] sm:$0xff] }
 0x2b4   : > { %v10489_v62 = vpop.f32.mrf.mxu0  ;;  %v4811_v30 = vsel %vm11640_vm2, %v4806_v23, %v4810_v53  ;;  %v11643_v23 = vld [vmem:[#allocation48_spill] sm:$0xff]  ;;  %v3504_v43 = vadd.f32 %v11644_v48, %v3209_v50 }
 0x2b5   : > { %v4634_v39 = vpop.f32.mrf.mxu1  ;;  %v3210_v38 = vadd.f32 %v3186_v8, %v11643_v23  ;;  %v8071_v8 = vld [vmem:[#allocation8 + $0x198] sm:$0xff] }
 0x2b6   : > { %v10494_v18 = vadd.f32 %v4634_v39, %v4406_v9  ;;  %v5537_v9 = vshll.u32 %v10492_v34, 16  ;;  %v3937_v45 = vpop.f32.mrf.mxu2 }
 0x2b7   : > { %v3964_v32 = vadd.f32 %v3937_v45, %v3681_v60  ;;  %v8073_v45 = vld [vmem:[#allocation8 + $0x1a8] sm:$0xff]  ;;  %v3505_v61 = vadd.f32 %v11645_v3, %v3210_v38 }
 0x2b8   : > { %v5539_v46 = vrot.slane %v5537_v9, 1  ;;  %5933 = vmatpush.bf16.msrb.mxu2 %v8073_v45 }
 0x2b9   : > { %v3984_v29 = vadd.f32 %v10355_v5, %v3964_v32  ;;  %v5496_v32 = vunpack.c.l.b16 %v5446_v37  ;;  %v4812_v37 = vshrl.u32 %v10485_v4, 16 }
 0x2ba   : > { %v5540_v60 = vsel %vm11642_vm1, %v5535_v44, %v5539_v46  ;;  %v3682_v44 = vadd.f32 %v10327_v22, %v3504_v43  ;;  %v4683_v22 = vld [vmem:[#allocation2 + $0x88] sm:$0x1]  ;;  %v5543_v34 = vor.u32 %v5541_v7, %v5539_v46 }
 0x2bb   : > { %v4000_v9 = vmax.f32 %v3984_v29, 0.0  ;;  %4917 = vmatmul.bf16.gmra.mxu2 %v4811_v30  ;;  %v4816_v30 = vshll.u32 %v10520_v42, 16 }
 0x2bc   : > { %v10507_v25 = vpop.f32.mrf.mxu0  ;;  %5934 = vmatpush.bf16.msrb.mxu2 %v8072_v56  ;;  %v8070_v56 = vld [vmem:[#allocation8 + $0x190] sm:$0xff] }
 0x2bd   : > { %v4637_v39 = vpop.f32.mrf.mxu1  ;;  %v4011_v51 = vpack.c.bf16 %v4000_v9, %v3999_v2  ;;  %v8037_v2 = vld [vmem:[#allocation8 + $0xc8] sm:$0xff]  ;;  %v5431_v9 = vld [vmem:[#allocation2 + $0x7c] sm:$0xf] }
 0x2be   : > { %v10515_v40 = vadd.f32 %v4637_v39, %v10472_v24  ;;  %v3189_v24 = vpop.f32.mrf.mxu3  ;;  %v3940_v39 = vpop.f32.mrf.mxu2  ;;  %5184 = vmatpush.bf16.msra.mxu3 %v8037_v2 }
 0x2bf   : > { %5378 = vmatmul.bf16.gmra.mxu0 %v8031_v21  ;;  %4127 = vmatmul.bf16.gmra.mxu3 %v4011_v51  ;;  %v10525_v21 = vpack.c.b16 %v5496_v32, %v5495_v49  ;;  %v3965_v50 = vadd.f32 %v3940_v39, %v3682_v44  ;;  %v4814_v51 = vor.u32 %v4812_v37, %v4810_v53  ;;  %v10538_v49 = vrot.slane %v4816_v30, 1  ;;  %v11646_v32 = vld [vmem:[#allocation41_spill] sm:$0xff]  ;;  %v8032_v44 = vld [vmem:[#allocation2 + $0x70] sm:$0xff] }
 0x2c0   : > { %5655 = vmatmul.bf16.gmra.mxu1 %v5540_v60  ;;  %v5430_v60 = vld [vmem:[#allocation2 + $0x78] sm:$0xf]  ;;  %vm11647_vm2 = vnez %v11646_v32  ;;  %5935 = vmatpush.bf16.msrb.mxu2 %v8071_v8 }
 0x2c1   : > { %v5545_v45 = vshll.u32 %v10525_v21, 16  ;;  %v4700_v23 = vsel %vm11647_vm2, %v4683_v22, 0  ;;  %v3985_v39 = vadd.f32 %v10355_v5, %v3965_v50  ;;  %v5447_v48 = vsel %vm11535_vm13, %v5430_v60, 0 }
 0x2c2   : > { %v4750_v7 = vunpack.c.l.b16 %v4700_v23  ;;  %v4819_v30 = vsel %vm11642_vm1, %v4814_v51, %v10538_v49  ;;  %v5497_v8 = vunpack.c.l.b16 %v5447_v48 }
 0x2c3   : > { %v10547_v53 = vrot.slane %v5545_v45, 1  ;;  %v4001_v22 = vmax.f32 %v3985_v39, 0.0 }
 0x2c4   : > { %v10534_v26 = vpop.f32.mrf.mxu0  ;;  %5936 = vmatpush.bf16.msrb.mxu2 %v8070_v56  ;;  %v5705_v56 = vld [vmem:[#allocation2 + $0x60] sm:$0xf] }
 0x2c5   : > { %v4639_v14 = vpop.f32.mrf.mxu1 }
 0x2c6   : > { %v10528_v29 = vadd.f32 %v4639_v14, %v10489_v62  ;;  %v3683_v62 = vadd.f32 %v10345_v13, %v3505_v61  ;;  %v3942_v4 = vpop.f32.mrf.mxu2  ;;  %v5448_v13 = vsel %vm11536_vm8, %v5431_v9, 0  ;;  %v3191_v43 = vpop.f32.mrf.mxu3  ;;  %v11648_v61 = vld [vmem:[#allocation51_spill] sm:$0xff]  ;;  %vm11649_vm8 = vmmov %vm11642_vm1  ;;  %v8069_v9 = vld [vmem:[#allocation8 + $0x188] sm:$0xff] }
 0x2c7   : > { %v5498_v3 = vunpack.c.l.b16 %v5448_v13  ;;  %v3211_v50 = vadd.f32 %v3189_v24, %v11648_v61  ;;  %v5548_v2 = vsel %vm11649_vm8, %v5543_v34, %v10547_v53  ;;  %v11650_v24 = vld [vmem:[#allocation16_spill] sm:$0xff]  ;;  %v5703_v34 = vld [vmem:[#allocation2 + $0x58] sm:$0xf]  ;;  %v5704_v13 = vld [vmem:[#allocation2 + $0x5c] sm:$0xf]  ;;  %v5549_v61 = vshrl.u32 %v10525_v21, 16 }
 0x2c8   : > { %v3966_v38 = vadd.f32 %v3942_v4, %v3683_v62  ;;  %v8091_v62 = vld [vmem:[#allocation8 + $0x238] sm:$0xff]  ;;  %v4759_v4 = vpack.c.b16 %v4750_v7, %v4750_v7  ;;  %5937 = vmatpush.bf16.msrb.mxu2 %v8069_v9  ;;  %v3212_v39 = vadd.f32 %v3191_v43, %v11650_v24  ;;  %v8036_v21 = vld [vmem:[#allocation8 + $0xc0] sm:$0xff] }
 0x2c9   : > { %6390 = vmatpush.bf16.msrb.mxu0 %v8091_v62  ;;  %v10558_v23 = vpack.c.b16 %v5498_v3, %v5497_v8  ;;  %v3506_v48 = vadd.f32 %v10325_v33, %v3211_v50  ;;  %v4820_v8 = vshrl.u32 %v10520_v42, 16  ;;  %v11651_v50 = vld [vmem:[#allocation18_spill] sm:$0xff]  ;;  %v11653_v9 = vld [vmem:[#allocation19_spill] sm:$0xff]  ;;  %v8089_v62 = vld [vmem:[#allocation8 + $0x228] sm:$0xff]  ;;  %5185 = vmatpush.bf16.msra.mxu3 %v8036_v21 }
 0x2ca   : > { %v3986_v14 = vadd.f32 %v10355_v5, %v3966_v38  ;;  %v5702_v38 = vld [vmem:[#allocation2 + $0x54] sm:$0x8]  ;;  %v4824_v3 = vshll.u32 %v4759_v4, 16  ;;  %vm11652_vm8 = vnez %v11651_v50  ;;  %vm11654_vm1 = vnez %v11653_v9  ;;  %v11655_v4 = vld [vmem:[#allocation20_spill] sm:$0xff] }
 0x2cb   : > { %4922 = vmatmul.bf16.gmra.mxu2 %v4819_v30  ;;  %v3684_v30 = vadd.f32 %v10371_v36, %v3506_v48  ;;  %v5553_v33 = vshll.u32 %v10558_v23, 16  ;;  %v5720_v36 = vsel %vm11654_vm1, %v5703_v34, 0  ;;  %v3507_v42 = vadd.f32 %v10342_v20, %v3212_v39 }
 0x2cc   : > { %v4002_v60 = vmax.f32 %v3986_v14, 0.0  ;;  %v8090_v14 = vld [vmem:[#allocation8 + $0x230] sm:$0xff]  ;;  %vm11656_vm13 = vnez %v11655_v4  ;;  %v4826_v34 = vrot.slane %v4824_v3, 1  ;;  %v5770_v39 = vunpack.c.l.b16 %v5720_v36  ;;  %v8033_v3 = vld [vmem:[#allocation2 + $0x78] sm:$0xff] }
 0x2cd   : > { %v4642_v46 = vpop.f32.mrf.mxu1  ;;  %6391 = vmatpush.bf16.msrb.mxu0 %v8090_v14  ;;  %v5721_v24 = vsel %vm11656_vm13, %v5704_v13, 0  ;;  %v4822_v14 = vor.u32 %v4820_v8, %v10538_v49  ;;  %v10588_v21 = vrot.slane %v5553_v33, 1  ;;  %v8088_v49 = vld [vmem:[#allocation8 + $0x220] sm:$0xff]  ;;  %v8083_v4 = vld [vmem:[#allocation8 + $0x1f8] sm:$0xff] }
 0x2ce   : > { %v10551_v37 = vadd.f32 %v4642_v46, %v10507_v25  ;;  %v4419_v25 = vpop.f32.mrf.mxu0  ;;  %v4012_v45 = vpack.c.bf16 %v4002_v60, %v4001_v22  ;;  %v3945_v51 = vpop.f32.mrf.mxu2  ;;  %v5432_v46 = vld [vmem:[#allocation2 + $0x80] sm:$0xf]  ;;  %v5433_v22 = vld [vmem:[#allocation2 + $0x84] sm:$0xf]  ;;  %v5719_v60 = vsel %vm11652_vm8, %v5702_v38, 0  ;;  %v3685_v38 = vadd.f32 %v10389_v35, %v3507_v42  ;;  %6108 = vmatpush.bf16.msrb.mxu3 %v8083_v4 }
 0x2cf   : > { %5383 = vmatmul.bf16.gmra.mxu0 %v8032_v44  ;;  %v8068_v44 = vld [vmem:[#allocation8 + $0x180] sm:$0xff] }
 0x2d0   : > { %5660 = vmatmul.bf16.gmra.mxu1 %v5548_v2  ;;  %4132 = vmatmul.bf16.gmra.mxu3 %v4012_v45  ;;  %v3194_v2 = vpop.f32.mrf.mxu3  ;;  %v3967_v45 = vadd.f32 %v3945_v51, %v3684_v30  ;;  %v5769_v51 = vunpack.c.l.b16 %v5719_v60  ;;  %v5771_v30 = vunpack.c.l.b16 %v5721_v24 }
 0x2d1   : > { %5938 = vmatpush.bf16.msrb.mxu2 %v8068_v44  ;;  %v5449_v44 = vsel %vm11542_vm12, %v5432_v46, 0  ;;  %6392 = vmatpush.bf16.msrb.mxu0 %v8089_v62  ;;  %v5551_v46 = vor.u32 %v5549_v61, %v10547_v53 }
 0x2d2   : > { %v5499_v42 = vunpack.c.l.b16 %v5449_v44  ;;  %v5786_v24 = vpack.c.b16 %v5770_v39, %v5769_v51 }
 0x2d4   : > { %v5799_v51 = vshll.u32 %v5786_v24, 16 }
 0x2d5   : > { %v4644_v7 = vpop.f32.mrf.mxu1  ;;  %6393 = vmatpush.bf16.msrb.mxu0 %v8088_v49  ;;  %v8086_v49 = vld [vmem:[#allocation8 + $0x210] sm:$0xff] }
 0x2d6   : > { %v10566_v43 = vadd.f32 %v4644_v7, %v10534_v26  ;;  %v11657_v26 = vld [vmem:[#allocation23_spill] sm:$0xff]  ;;  %v5450_v7 = vsel %vm11544_vm10, %v5433_v22, 0  ;;  %v3947_v20 = vpop.f32.mrf.mxu2  ;;  %v10584_v12 = vpop.f32.mrf.mxu0  ;;  %vm11659_vm10 = vsmask.f32 7424 }
 0x2d7   : > { %vm11658_vm14 = vnez %v11657_v26  ;;  %v3968_v35 = vadd.f32 %v3947_v20, %v3685_v38  ;;  %v5500_v60 = vunpack.c.l.b16 %v5450_v7  ;;  %v4827_v62 = vsel %vm11659_vm10, %v4822_v14, %v4826_v34  ;;  %vm11661_vm12 = vmmov %vm11659_vm10  ;;  %v8087_v38 = vld [vmem:[#allocation8 + $0x218] sm:$0xff]  ;;  %v4950_v7 = vld [vmem:[#allocation2 + $0x50] sm:$0xf] }
 0x2d8   : > { %v5722_v48 = vsel %vm11658_vm14, %v5705_v56, 0  ;;  %v3987_v56 = vadd.f32 %v10355_v5, %v3967_v45  ;;  %v11660_v45 = vld [vmem:[#allocation22_spill] sm:$0xff]  ;;  %v5556_v61 = vsel %vm11661_vm12, %v5551_v46, %v10588_v21  ;;  %v3196_v20 = vpop.f32.mrf.mxu3  ;;  %v5796_v34 = vshrl.u32 %v5786_v24, 16 }
 0x2d9   : > { %v5772_v13 = vunpack.c.l.b16 %v5722_v48  ;;  %v3988_v22 = vadd.f32 %v10355_v5, %v3968_v35  ;;  %v3213_v16 = vadd.f32 %v3194_v2, %v11660_v45  ;;  %v4951_v35 = vld [vmem:[#allocation2 + $0x54] sm:$0xf]  ;;  %6394 = vmatpush.bf16.msrb.mxu0 %v8087_v38  ;;  %v4952_v2 = vld [vmem:[#allocation2 + $0x58] sm:$0xf]  ;;  %v10599_v46 = vpack.c.b16 %v5500_v60, %v5499_v42  ;;  %v5434_v38 = vld [vmem:[#allocation2 + $0x88] sm:$0xf] }
 0x2da   : > { %v4003_v53 = vmax.f32 %v3987_v56, 0.0  ;;  %v4969_v42 = vsel %vm11658_vm14, %v4952_v2, 0  ;;  %v5798_v50 = vrot.slane %v5796_v34, 3  ;;  %v5801_v60 = vrot.slane %v5799_v51, 4  ;;  %v11664_v34 = vld [vmem:[#allocation25_spill] sm:$0xff] }
 0x2db   : > { %v5787_v48 = vpack.c.b16 %v5772_v13, %v5771_v30  ;;  %v4004_v33 = vmax.f32 %v3988_v22, 0.0  ;;  %4927 = vmatmul.bf16.gmra.mxu2 %v4827_v62  ;;  %v3214_v13 = vadd.f32 %v3196_v20, %v10319_v27  ;;  %v3508_v56 = vadd.f32 %v10369_v31, %v3213_v16  ;;  %v5706_v31 = vld [vmem:[#allocation2 + $0x64] sm:$0xf]  ;;  %v5707_v16 = vld [vmem:[#allocation2 + $0x68] sm:$0xf] }
 0x2dc   : > { %v4968_v22 = vsel %vm11656_vm13, %v4951_v35, 0  ;;  %v5557_v27 = vshrl.u32 %v10558_v23, 16  ;;  %vm11665_vm10 = vnez %v11664_v34  ;;  %vm11666_vm13 = vsmask.f32 4352 }
 0x2dd   : > { %v4647_v8 = vpop.f32.mrf.mxu1  ;;  %v4013_v44 = vpack.c.bf16 %v4004_v33, %v4003_v53  ;;  %v5804_v39 = vshrl.u32 %v5787_v48, 16  ;;  %v5807_v30 = vshll.u32 %v5787_v48, 16  ;;  %v3686_v62 = vadd.f32 %v10407_v52, %v3508_v56  ;;  %6395 = vmatpush.bf16.msrb.mxu0 %v8086_v49  ;;  %v8085_v53 = vld [vmem:[#allocation8 + $0x208] sm:$0xff] }
 0x2de   : > { %v10591_v36 = vadd.f32 %v4647_v8, %v4419_v25  ;;  %v4949_v25 = vld [vmem:[#allocation2 + $0x4c] sm:$0x8]  ;;  %v3950_v14 = vpop.f32.mrf.mxu2  ;;  %v4424_v24 = vpop.f32.mrf.mxu0  ;;  %v5561_v33 = vshll.u32 %v10599_v46, 16  ;;  %v5724_v51 = vsel %vm11665_vm10, %v5707_v16, 0  ;;  %v5451_v49 = vsel %vm11637_vm15, %v5434_v38, 0 }
 0x2df   : > { %5388 = vmatmul.bf16.gmra.mxu0 %v8033_v3  ;;  %v4966_v8 = vsel %vm11652_vm8, %v4949_v25, 0  ;;  %v4967_v3 = vsel %vm11654_vm1, %v4950_v7, 0  ;;  %v5806_v45 = vrot.slane %v5804_v39, 3  ;;  %v5809_v9 = vrot.slane %v5807_v30, 4  ;;  %v5435_v25 = vld [vmem:[#allocation2 + $0x8c] sm:$0xf] }
 0x2e0   : > { %5665 = vmatmul.bf16.gmra.mxu1 %v5556_v61  ;;  %4137 = vmatmul.bf16.gmra.mxu3 %v4013_v44  ;;  %v3509_v61 = vadd.f32 %v10386_v58, %v3214_v13  ;;  %v3969_v52 = vadd.f32 %v3950_v14, %v3686_v62  ;;  %v5016_v20 = vunpack.c.l.b16 %v4966_v8  ;;  %v5017_v23 = vunpack.c.l.b16 %v4967_v3  ;;  %v11662_v7 = vld [vmem:[#allocation24_spill] sm:$0xff] }
 0x2e1   : > { %v5018_v44 = vunpack.c.l.b16 %v4968_v22  ;;  %vm11663_vm14 = vnez %v11662_v7  ;;  %v5019_v39 = vunpack.c.l.b16 %v4969_v42  ;;  %v5559_v58 = vor.u32 %v5557_v27, %v10588_v21  ;;  %6396 = vmatpush.bf16.msrb.mxu0 %v8085_v53  ;;  %v8084_v21 = vld [vmem:[#allocation8 + $0x200] sm:$0xff] }
 0x2e2   : > { %v3687_v26 = vadd.f32 %v10427_v6, %v3509_v61  ;;  %v5723_v35 = vsel %vm11663_vm14, %v5706_v31, 0  ;;  %v5802_v30 = vor.u32 %v5801_v60, %v5798_v50  ;;  %v10621_v2 = vor.u32 %v5809_v9, %v5806_v45  ;;  %v8034_v31 = vld [vmem:[#allocation2 + $0x80] sm:$0xff] }
 0x2e3   : > { %v3989_v13 = vadd.f32 %v10355_v5, %v3969_v52  ;;  %v10624_v56 = vrot.slane %v5561_v33, 1  ;;  %v5452_v8 = vsel %vm11639_vm4, %v5435_v25, 0  ;;  %v5773_v3 = vunpack.c.l.b16 %v5723_v35 }
 0x2e4   : > { %v5774_v22 = vunpack.c.l.b16 %v5724_v51  ;;  %v5033_v62 = vpack.c.b16 %v5017_v23, %v5016_v20  ;;  %v5034_v42 = vpack.c.b16 %v5019_v39, %v5018_v44  ;;  %v5811_v60 = vsel %vm11666_vm13, %v5802_v30, %v10621_v2  ;;  %v6173_v51 = vld [vmem:[#allocation2 + $0x58] sm:$0xf]  ;;  %v6174_v39 = vld [vmem:[#allocation2 + $0x5c] sm:$0xf] }
 0x2e5   : > { %v10608_v48 = vpop.f32.mrf.mxu1  ;;  %v5501_v45 = vunpack.c.l.b16 %v5451_v49  ;;  %6397 = vmatpush.bf16.msrb.mxu0 %v8084_v21  ;;  %v4005_v53 = vmax.f32 %v3989_v13, 0.0  ;;  %v5564_v4 = vsel %vm11661_vm12, %v5559_v58, %v10624_v56  ;;  %v5502_v52 = vunpack.c.l.b16 %v5452_v8  ;;  %v5709_v58 = vld [vmem:[#allocation2 + $0x70] sm:$0xf] }
 0x2e6   : > { %v3952_v14 = vpop.f32.mrf.mxu2  ;;  %v10635_v9 = vpop.f32.mrf.mxu0  ;;  %v5043_v33 = vshrl.u32 %v5033_v62, 16  ;;  %v5046_v38 = vshll.u32 %v5033_v62, 16  ;;  %v5051_v20 = vshrl.u32 %v5034_v42, 16  ;;  %v5054_v23 = vshll.u32 %v5034_v42, 16 }
 0x2e7   : > { %v3970_v6 = vadd.f32 %v3952_v14, %v3687_v26  ;;  %v5708_v26 = vld [vmem:[#allocation2 + $0x6c] sm:$0xf]  ;;  %v10642_v35 = vpack.c.b16 %v5502_v52, %v5501_v45  ;;  %v5565_v49 = vshrl.u32 %v10599_v46, 16  ;;  %v6191_v21 = vsel %vm11517_vm5, %v6174_v39, 0  ;;  %v6175_v45 = vld [vmem:[#allocation2 + $0x60] sm:$0xf]  ;;  %vm11673_vm5 = vmmov %vm11661_vm12 }
 0x2e8   : > { %v5045_v13 = vrot.slane %v5043_v33, 3  ;;  %v5048_v8 = vrot.slane %v5046_v38, 4  ;;  %v8082_v46 = vld [vmem:[#allocation8 + $0x1f0] sm:$0xff]  ;;  %v4953_v52 = vld [vmem:[#allocation2 + $0x5c] sm:$0xf] }
 0x2e9   : > { %v3990_v16 = vadd.f32 %v10355_v5, %v3970_v6  ;;  %v5788_v5 = vpack.c.b16 %v5774_v22, %v5773_v3  ;;  %v5053_v3 = vrot.slane %v5051_v20, 3  ;;  %v5056_v22 = vrot.slane %v5054_v23, 4  ;;  %v5436_v38 = vld [vmem:[#allocation2 + $0x90] sm:$0x1]  ;;  %6109 = vmatpush.bf16.msrb.mxu3 %v8082_v46 }
 0x2ea   : > { %v5453_v41 = vsel %vm11647_vm2, %v5436_v38, 0 }
 0x2eb   : > { %v4006_v61 = vmax.f32 %v3990_v16, 0.0  ;;  %5939 = vmatmul.bf16.vlgmr.msrb.gmra.mxu2 %v5811_v60  ;;  %v5813_v14 = vshrl.u32 %v5788_v5, 16  ;;  %v5816_v30 = vshll.u32 %v5788_v5, 16  ;;  %v11670_v16 = vld [vmem:[#allocation27_spill] sm:$0xff]  ;;  %v5569_v60 = vshll.u32 %v10642_v35, 16 }
 0x2ec   : > { %vm11671_vm1 = vnez %v11670_v16  ;;  %v4954_v5 = vld [vmem:[#allocation2 + $0x60] sm:$0xf] }
 0x2ed   : > { %v4652_v27 = vpop.f32.mrf.mxu1  ;;  %v5726_v42 = vsel %vm11671_vm1, %v5709_v58, 0  ;;  %v5571_v58 = vrot.slane %v5569_v60, 1 }
 0x2ee   : > { %v10631_v50 = vadd.f32 %v4652_v27, %v4424_v24  ;;  %v4014_v24 = vpack.c.bf16 %v4006_v61, %v4005_v53  ;;  %v4893_v44 = vpop.f32.mrf.mxu2  ;;  %v11668_v27 = vld [vmem:[#allocation26_spill] sm:$0xff]  ;;  %v6176_v53 = vld [vmem:[#allocation2 + $0x64] sm:$0xf]  ;;  %v5818_v61 = vrot.slane %v5816_v30, 4  ;;  %v4429_v0 = vpop.f32.mrf.mxu0  ;;  %v5776_v23 = vunpack.c.l.b16 %v5726_v42 }
 0x2ef   : > { %5393 = vmatmul.bf16.gmra.mxu0 %v8034_v31  ;;  %v10640_v25 = vadd.f32 %v4893_v44, %v10446_v10  ;;  %v6190_v10 = vsel %vm11516_vm0, %v6173_v51, 0  ;;  %vm11669_vm8 = vnez %v11668_v27  ;;  %v5567_v44 = vor.u32 %v5565_v49, %v10624_v56  ;;  %vm11672_vm0 = vmmov %vm11666_vm13 }
 0x2f0   : > { %5670 = vmatmul.bf16.gmra.mxu1 %v5564_v4  ;;  %4142 = vmatmul.bf16.gmra.mxu3 %v4014_v24  ;;  %v5725_v31 = vsel %vm11669_vm8, %v5708_v26, 0  ;;  %v5815_v4 = vrot.slane %v5813_v14, 3  ;;  %v6240_v33 = vunpack.c.l.b16 %v6190_v10  ;;  %v6241_v24 = vunpack.c.l.b16 %v6191_v21  ;;  %v8035_v21 = vld [vmem:[#allocation2 + $0x88] sm:$0xff]  ;;  %vm11683_vm13 = vmmov %vm11672_vm0 }
 0x2f1   : > { %v5775_v20 = vunpack.c.l.b16 %v5725_v31  ;;  %v6192_v51 = vsel %vm11603_vm11, %v6175_v45, 0  ;;  %v6193_v39 = vsel %vm11605_vm7, %v6176_v53, 0  ;;  %v4970_v30 = vsel %vm11663_vm14, %v4953_v52, 0  ;;  %vm11674_vm11 = vmmov %vm11672_vm0 }
 0x2f2   : > { %v4971_v10 = vsel %vm11665_vm10, %v4954_v5, 0  ;;  %v10668_v62 = vor.u32 %v5818_v61, %v5815_v4  ;;  %v5049_v56 = vor.u32 %v5048_v8, %v5045_v13  ;;  %v10670_v49 = vor.u32 %v5056_v22, %v5053_v3  ;;  %vm11680_vm10 = vmmov %vm11673_vm5 }
 0x2f3   : > { %v6242_v31 = vunpack.c.l.b16 %v6192_v51  ;;  %v6243_v42 = vunpack.c.l.b16 %v6193_v39  ;;  %v5789_v60 = vpack.c.b16 %v5776_v23, %v5775_v20  ;;  %v5020_v34 = vunpack.c.l.b16 %v4970_v30  ;;  %v5711_v20 = vld [vmem:[#allocation2 + $0x78] sm:$0xf] }
 0x2f4   : > { %v5820_v7 = vsel %vm11672_vm0, %v10621_v2, %v10668_v62  ;;  %v5021_v53 = vunpack.c.l.b16 %v4971_v10  ;;  %v5572_v13 = vsel %vm11673_vm5, %v5567_v44, %v5571_v58  ;;  %v5503_v8 = vunpack.c.l.b16 %v5453_v41 }
 0x2f5   : > { %v10644_v6 = vpop.f32.mrf.mxu1  ;;  %v10680_v3 = vpack.c.b16 %v6243_v42, %v6242_v31  ;;  %v5822_v46 = vshrl.u32 %v5789_v60, 16  ;;  %v5825_v4 = vshll.u32 %v5789_v60, 16  ;;  %v5058_v52 = vsel %vm11674_vm11, %v5049_v56, %v10670_v49  ;;  %v11678_v42 = vld [vmem:[#allocation30_spill] sm:$0xff]  ;;  %v8081_v60 = vld [vmem:[#allocation8 + $0x1e8] sm:$0xff] }
 0x2f6   : > { %v4895_v26 = vpop.f32.mrf.mxu2  ;;  %v5035_v5 = vpack.c.b16 %v5021_v53, %v5020_v34  ;;  %v5573_v10 = vshrl.u32 %v10642_v35, 16  ;;  %vm11679_vm14 = vnez %v11678_v42  ;;  %6110 = vmatpush.bf16.msrb.mxu3 %v8081_v60 }
 0x2f7   : > { %v10662_v14 = vadd.f32 %v4895_v26, %v10459_v19  ;;  %v6257_v19 = vpack.c.b16 %v6241_v24, %v6240_v33  ;;  %v5512_v33 = vpack.c.b16 %v5503_v8, %v5503_v8  ;;  %v5710_v24 = vld [vmem:[#allocation2 + $0x74] sm:$0xf]  ;;  %v6274_v26 = vshll.u32 %v10680_v3, 16  ;;  %v6178_v8 = vld [vmem:[#allocation2 + $0x6c] sm:$0xf] }
 0x2f8   : > { %v5824_v51 = vrot.slane %v5822_v46, 3  ;;  %v5827_v39 = vrot.slane %v5825_v4, 4  ;;  %v5060_v56 = vshrl.u32 %v5035_v5, 16  ;;  %v5063_v41 = vshll.u32 %v5035_v5, 16 }
 0x2f9   : > { %v6269_v22 = vshll.u32 %v6257_v19, 16  ;;  %v6267_v38 = vshrl.u32 %v6257_v19, 16  ;;  %v5577_v31 = vshll.u32 %v5512_v33, 16  ;;  %v5728_v19 = vsel %vm11679_vm14, %v5711_v20, 0  ;;  %v4955_v33 = vld [vmem:[#allocation2 + $0x64] sm:$0xf] }
 0x2fa   : > { %v10703_v53 = vrot.slane %v6274_v26, 1  ;;  %v10705_v35 = vor.u32 %v5827_v39, %v5824_v51  ;;  %v5575_v46 = vor.u32 %v5573_v10, %v5571_v58  ;;  %v5778_v5 = vunpack.c.l.b16 %v5728_v19 }
 0x2fb   : > { %5944 = vmatmul.bf16.gmra.mxu2 %v5820_v7  ;;  %v6271_v44 = vrot.slane %v6269_v22, 1  ;;  %v8182_v7 = vld [vmem:[%s8849_s23] sm:$0xff]   ;;  %v6195_v26 = vsel %vm11616_vm3, %v6178_v8, 0  ;;  %vm11682_vm3 = vmmov %vm11673_vm5 }
 0x2fc   : > { %v8183_v32 = vunpack.c.l.bf16 %v8182_v7  ;;  %v8184_v10 = vunpack.c.h.bf16 %v8182_v7  ;;  %v6245_v60 = vunpack.c.l.b16 %v6195_v26  ;;  %vm11690_vm5 = vmmov %vm11682_vm3 }
 0x2fd   : > { %v4657_v28 = vpop.f32.mrf.mxu1  ;;  %v6272_v34 = vor.u32 %v6271_v44, %v6267_v38 }
 0x2fe   : > { %v10674_v45 = vadd.f32 %v4657_v28, %v4429_v0  ;;  %v4898_v61 = vpop.f32.mrf.mxu2  ;;  %v10684_v0 = vpop.f32.mrf.mxu0 }
 0x2ff   : > { %5398 = vmatmul.bf16.gmra.mxu0 %v8035_v21  ;;  %v10687_v2 = vadd.f32 %v4898_v61, %v10479_v1  ;;  %v11676_v1 = vld [vmem:[#allocation29_spill] sm:$0xff]  ;;  %v10698_v21 = vld [vmem:[%s11153_s6] ss:$0 sm:$0xff]  ;;  %v5062_v61 = vrot.slane %v5060_v56, 3  ;;  %v6277_v39 = vsel %vm11680_vm10, %v6272_v34, %v10703_v53  ;;  %v4972_v56 = vsel %vm11669_vm8, %v4955_v33, 0 }
 0x300   : > { %5675 = vmatmul.bf16.gmra.mxu1 %v5572_v13  ;;  %5186 = vmatmul.bf16.vlgmr.msra.gmra.mxu3 %v5058_v52  ;;  %vm11677_vm7 = vnez %v11676_v1  ;;  %v6177_v13 = vld [vmem:[#allocation2 + $0x68] sm:$0xf]  ;;  %v5065_v52 = vrot.slane %v5063_v41, 4  ;;  %v5022_v7 = vunpack.c.l.b16 %v4972_v56  ;;  %v8080_v56 = vld [vmem:[#allocation8 + $0x1e0] sm:$0xff] }
 0x301   : > { %11675 = vst [vmem:[#allocation50_spill] sm:$0xff] %v10687_v2  ;;  %v5727_v28 = vsel %vm11677_vm7, %v5710_v24, 0  ;;  %v4956_v24 = vld [vmem:[#allocation2 + $0x68] sm:$0xf]  ;;  %v5579_v2 = vrot.slane %v5577_v31, 1  ;;  %v6194_v44 = vsel %vm11615_vm6, %v6177_v13, 0  ;;  %vm11681_vm6 = vmmov %vm11672_vm0  ;;  %6111 = vmatpush.bf16.msrb.mxu3 %v8080_v56  ;;  %vm11689_vm0 = vnez %v11432_v15 }
 0x302   : > { %v4108_v30 = vpop.f32.mrf.mxu3  ;;  %v5777_v22 = vunpack.c.l.b16 %v5727_v28  ;;  %v5829_v17 = vsel %vm11681_vm6, %v10668_v62, %v10705_v35  ;;  %v10726_v63 = vor.u32 %v5065_v52, %v5062_v61  ;;  %v6244_v16 = vunpack.c.l.b16 %v6194_v44  ;;  %v5713_v52 = vld [vmem:[#allocation2 + $0x80] sm:$0xf]  ;;  %vm11691_vm11 = vmmov %vm11681_vm6 }
 0x303   : > { %v4109_v20 = vadd.f32 %v10698_v21, %v4108_v30  ;;  %v4973_v30 = vsel %vm11671_vm1, %v4956_v24, 0  ;;  %v5580_v19 = vsel %vm11682_vm3, %v5575_v46, %v5579_v2  ;;  %v5712_v46 = vld [vmem:[#allocation2 + $0x7c] sm:$0xf]  ;;  %vm11688_vm1 = vnez %v11425_v11 }
 0x304   : > { %v5790_v28 = vpack.c.b16 %v5778_v5, %v5777_v22  ;;  %v5023_v34 = vunpack.c.l.b16 %v4973_v30  ;;  %v5067_v62 = vsel %vm11683_vm13, %v10670_v49, %v10726_v63  ;;  %v10736_v5 = vpack.c.b16 %v6245_v60, %v6244_v16  ;;  %v8341_v30 = vld [vmem:[%s8849_s23 + $0x8] sm:$0xff]  }
 0x305   : > { %v10689_v23 = vpop.f32.mrf.mxu1  ;;  %v4164_v31 = vadd.f32 %v8183_v32, %v4109_v20  ;;  %v6278_v20 = vshrl.u32 %v10680_v3, 16 }
 0x306   : > { %v4900_v4 = vpop.f32.mrf.mxu2  ;;  %v4434_v58 = vpop.f32.mrf.mxu0  ;;  %v5834_v22 = vshll.u32 %v5790_v28, 16  ;;  %v5036_v33 = vpack.c.b16 %v5023_v34, %v5022_v7  ;;  %v6179_v7 = vld [vmem:[#allocation2 + $0x70] sm:$0xf]  ;;  %v6180_v34 = vld [vmem:[#allocation2 + $0x74] sm:$0xf] }
 0x307   : > { %v10709_v38 = vadd.f32 %v4900_v4, %v10494_v18  ;;  %v5831_v4 = vshrl.u32 %v5790_v28, 16  ;;  %v4180_v32 = vmax.f32 %v4164_v31, 0.0  ;;  %v4958_v28 = vld [vmem:[#allocation2 + $0x70] sm:$0xf]  ;;  %v6197_v1 = vsel %vm11689_vm0, %v6180_v34, 0 }
 0x308   : > { %v5836_v26 = vrot.slane %v5834_v22, 4  ;;  %v5069_v3 = vshrl.u32 %v5036_v33, 16  ;;  %v4975_v22 = vsel %vm11679_vm14, %v4958_v28, 0  ;;  %v6247_v15 = vunpack.c.l.b16 %v6197_v1  ;;  %v4959_v1 = vld [vmem:[#allocation2 + $0x74] sm:$0xf] }
 0x309   : > { %v5833_v49 = vrot.slane %v5831_v4, 3 }
 0x30a   : > { %v4110_v41 = vpop.f32.mrf.mxu3 }
 0x30b   : > { %v4111_v27 = vadd.f32 %v10698_v21, %v4110_v41  ;;  %5949 = vmatmul.bf16.gmra.mxu2 %v5829_v17  ;;  %v6282_v41 = vshll.u32 %v10736_v5, 16  ;;  %v5072_v17 = vshll.u32 %v5036_v33, 16  ;;  %v10751_v60 = vor.u32 %v5836_v26, %v5833_v49 }
 0x30d   : > { %v4662_v51 = vpop.f32.mrf.mxu1  ;;  %v4165_v13 = vadd.f32 %v8184_v10, %v4111_v27  ;;  %v4957_v10 = vld [vmem:[#allocation2 + $0x6c] sm:$0xf]  ;;  %v6280_v27 = vor.u32 %v6278_v20, %v10703_v53  ;;  %v5074_v53 = vrot.slane %v5072_v17, 4 }
 0x30e   : > { %v10721_v18 = vadd.f32 %v4662_v51, %v4434_v58  ;;  %v4903_v8 = vpop.f32.mrf.mxu2  ;;  %v11684_v58 = vld [vmem:[#allocation32_spill] sm:$0xff] }
 0x30f   : > { %6398 = vmatmul.bf16.vlgmr.msrb.gmra.mxu0 %v6277_v39  ;;  %v4181_v61 = vmax.f32 %v4165_v13, 0.0  ;;  %v10734_v2 = vadd.f32 %v4903_v8, %v10515_v40  ;;  %vm11685_vm12 = vnez %v11684_v58  ;;  %v11686_v39 = vld [vmem:[#allocation33_spill] sm:$0xff]  ;;  %v4974_v13 = vsel %vm11677_vm7, %v4957_v10, 0  ;;  %vm11692_vm7 = vmmov %vm11681_vm6 }
 0x310   : > { %5680 = vmatmul.bf16.gmra.mxu1 %v5580_v19  ;;  %5191 = vmatmul.bf16.gmra.mxu3 %v5067_v62  ;;  %v5729_v51 = vsel %vm11685_vm12, %v5712_v46, 0  ;;  %vm11687_vm8 = vnez %v11686_v39  ;;  %v8187_v8 = vunpack.c.l.bf16 %v8341_v30  ;;  %v8188_v46 = vunpack.c.h.bf16 %v8341_v30 }
 0x311   : > { %v8216_v24 = vpack.c.bf16 %v4181_v61, %v4180_v32  ;;  %v5730_v40 = vsel %vm11687_vm8, %v5713_v52, 0  ;;  %v5779_v31 = vunpack.c.l.b16 %v5729_v51  ;;  %v6284_v32 = vrot.slane %v6282_v41, 1 }
 0x312   : > { %v4113_v44 = vpop.f32.mrf.mxu3  ;;  %v5780_v19 = vunpack.c.l.b16 %v5730_v40  ;;  %v5071_v61 = vrot.slane %v5069_v3, 3  ;;  %v6196_v52 = vsel %vm11688_vm1, %v6179_v7, 0  ;;  %v5024_v42 = vunpack.c.l.b16 %v4974_v13 }
 0x313   : > { %8217 = vst [vmem:[%s10745_s11] sm:$0xff] %v8216_v24   ;;  %v4114_v62 = vadd.f32 %v10698_v21, %v4113_v44  ;;  %v6285_v24 = vsel %vm11690_vm5, %v6280_v27, %v6284_v32  ;;  %v5025_v44 = vunpack.c.l.b16 %v4975_v22  ;;  %v6246_v51 = vunpack.c.l.b16 %v6196_v52 }
 0x314   : > { %v5791_v33 = vpack.c.b16 %v5780_v19, %v5779_v31  ;;  %v10770_v11 = vor.u32 %v5074_v53, %v5071_v61  ;;  %v5714_v31 = vld [vmem:[#allocation2 + $0x84] sm:$0xf]  ;;  %v5715_v19 = vld [vmem:[#allocation2 + $0x88] sm:$0xf]  ;;  %v6182_v61 = vld [vmem:[#allocation2 + $0x7c] sm:$0xf]  ;;  %vm11706_vm1 = vnez %v11458_v47 }
 0x315   : > { %v4166_v49 = vadd.f32 %v8187_v8, %v4114_v62  ;;  %v10778_v27 = vpack.c.b16 %v6247_v15, %v6246_v51  ;;  %v6181_v8 = vld [vmem:[#allocation2 + $0x78] sm:$0xf]  ;;  %v11693_v53 = vld [vmem:[#allocation36_spill] sm:$0xff] }
 0x316   : > { %v4905_v16 = vpop.f32.mrf.mxu2  ;;  %v5840_v10 = vshrl.u32 %v5791_v33, 16  ;;  %v5843_v56 = vshll.u32 %v5791_v33, 16  ;;  %v5076_v41 = vsel %vm11692_vm7, %v10726_v63, %v10770_v11  ;;  %vm11694_vm14 = vnez %v11693_v53  ;;  %v4960_v33 = vld [vmem:[#allocation2 + $0x78] sm:$0xf] }
 0x317   : > { %v10757_v4 = vadd.f32 %v4905_v16, %v10528_v29  ;;  %v5838_v29 = vsel %vm11691_vm11, %v10705_v35, %v10751_v60  ;;  %v5037_v35 = vpack.c.b16 %v5025_v44, %v5024_v42  ;;  %v4182_v3 = vmax.f32 %v4166_v49, 0.0  ;;  %v11697_v49 = vld [vmem:[#allocation28_spill] sm:$0xff] }
 0x318   : > { %v6286_v16 = vshrl.u32 %v10736_v5, 16  ;;  %v5842_v34 = vrot.slane %v5840_v10, 3  ;;  %v5845_v13 = vrot.slane %v5843_v56, 4  ;;  %v6198_v42 = vsel %vm11531_vm9, %v6181_v8, 0  ;;  %vm11699_vm9 = vmmov %vm11682_vm3 }
 0x319   : > { %v5078_v62 = vshrl.u32 %v5037_v35, 16  ;;  %v5081_v22 = vshll.u32 %v5037_v35, 16  ;;  %vm11698_vm6 = vnez %v11697_v49  ;;  %vm11700_vm3 = vmmov %vm11692_vm7  ;;  %v5716_v49 = vld [vmem:[#allocation2 + $0x8c] sm:$0xf] }
 0x31a   : > { %v4115_v20 = vpop.f32.mrf.mxu3  ;;  %v6288_v5 = vor.u32 %v6286_v16, %v6284_v32  ;;  %v10790_v44 = vor.u32 %v5845_v13, %v5842_v34  ;;  %v4977_v32 = vsel %vm11687_vm8, %v4960_v33, 0  ;;  %vm11701_vm13 = vmmov %vm11700_vm3 }
 0x31b   : > { %v4116_v26 = vadd.f32 %v10698_v21, %v4115_v20  ;;  %5954 = vmatmul.bf16.gmra.mxu2 %v5838_v29  ;;  %v8342_v20 = vld [vmem:[%s8849_s23 + $0x10] sm:$0xff]   ;;  %v6290_v29 = vshll.u32 %v10778_v27, 16  ;;  %v5080_v10 = vrot.slane %v5078_v62, 3  ;;  %v5083_v56 = vrot.slane %v5081_v22, 4  ;;  %vm11709_vm11 = vmmov %vm11700_vm3 }
 0x31c   : > { %v5027_v34 = vunpack.c.l.b16 %v4977_v32  ;;  %v5847_v39 = vsel %vm11700_vm3, %v10751_v60, %v10790_v44  ;;  %v6184_v32 = vld [vmem:[#allocation2 + $0x84] sm:$0xf]  ;;  %vm11710_vm7 = vmmov %vm11700_vm3 }
 0x31d   : > { %v4167_v40 = vadd.f32 %v8188_v46, %v4116_v26  ;;  %v11695_v46 = vld [vmem:[#allocation37_spill] sm:$0xff]  ;;  %v6199_v26 = vsel %vm11698_vm6, %v6182_v61, 0  ;;  %v10806_v8 = vor.u32 %v5083_v56, %v5080_v10  ;;  %v6183_v10 = vld [vmem:[#allocation2 + $0x80] sm:$0xf] }
 0x31e   : > { %v4908_v30 = vpop.f32.mrf.mxu2  ;;  %vm11696_vm10 = vnez %v11695_v46 }
 0x31f   : > { %6403 = vmatmul.bf16.gmra.mxu0 %v6285_v24  ;;  %v4183_v17 = vmax.f32 %v4167_v40, 0.0  ;;  %v10776_v28 = vadd.f32 %v4908_v30, %v10551_v37  ;;  %v5731_v37 = vsel %vm11694_vm14, %v5714_v31, 0  ;;  %v5732_v52 = vsel %vm11696_vm10, %v5715_v19, 0  ;;  %v8079_v24 = vld [vmem:[#allocation8 + $0x1d8] sm:$0xff] }
 0x320   : > { %5196 = vmatmul.bf16.gmra.mxu3 %v5076_v41  ;;  %v5781_v51 = vunpack.c.l.b16 %v5731_v37  ;;  %v5782_v15 = vunpack.c.l.b16 %v5732_v52  ;;  %v4976_v30 = vsel %vm11685_vm12, %v4959_v1, 0  ;;  %v8191_v41 = vunpack.c.l.bf16 %v8342_v20 }
 0x321   : > { %v8221_v7 = vpack.c.bf16 %v4183_v17, %v4182_v3  ;;  %6112 = vmatpush.bf16.msrb.mxu3 %v8079_v24  ;;  %v6292_v3 = vrot.slane %v6290_v29, 1  ;;  %v6248_v17 = vunpack.c.l.b16 %v6198_v42  ;;  %v6249_v31 = vunpack.c.l.b16 %v6199_v26  ;;  %v10814_v24 = vpop.f32.mrf.mxu0  ;;  %v5717_v26 = vld [vmem:[#allocation2 + $0x90] sm:$0xf] }
 0x322   : > { %v4118_v63 = vpop.f32.mrf.mxu3  ;;  %v8192_v19 = vunpack.c.h.bf16 %v8342_v20  ;;  %v5792_v16 = vpack.c.b16 %v5782_v15, %v5781_v51  ;;  %v5085_v33 = vsel %vm11701_vm13, %v10770_v11, %v10806_v8  ;;  %v6294_v29 = vshrl.u32 %v10778_v27, 16  ;;  %vm11717_vm13 = vmmov %vm11700_vm3 }
 0x323   : > { %8348 = vst [vmem:[%s10745_s11 + $0x8] sm:$0xff] %v8221_v7   ;;  %v4119_v57 = vadd.f32 %v10698_v21, %v4118_v63  ;;  %v5026_v7 = vunpack.c.l.b16 %v4976_v30  ;;  %v6293_v13 = vsel %vm11699_vm9, %v6288_v5, %v6292_v3  ;;  %v10809_v62 = vpack.c.b16 %v6249_v31, %v6248_v17  ;;  %v4961_v17 = vld [vmem:[#allocation2 + $0x7c] sm:$0xf]  ;;  %v8078_v31 = vld [vmem:[#allocation8 + $0x1d0] sm:$0xff]  ;;  %vm11716_vm9 = vmmov %vm11690_vm5 }
 0x324   : > { %v5849_v61 = vshrl.u32 %v5792_v16, 16  ;;  %v5852_v37 = vshll.u32 %v5792_v16, 16  ;;  %v6296_v16 = vor.u32 %v6294_v29, %v6292_v3  ;;  %v4978_v3 = vsel %vm11694_vm14, %v4961_v17, 0 }
 0x325   : > { %v4168_v63 = vadd.f32 %v8191_v41, %v4119_v57  ;;  %v5038_v52 = vpack.c.b16 %v5027_v34, %v5026_v7  ;;  %v6298_v42 = vshll.u32 %v10809_v62, 16  ;;  %v11702_v41 = vld [vmem:[#allocation40_spill] sm:$0xff]  ;;  %v11704_v57 = vld [vmem:[#allocation42_spill] sm:$0xff]  ;;  %v6200_v34 = vsel %vm11706_vm1, %v6183_v10, 0  ;;  %6113 = vmatpush.bf16.msrb.mxu3 %v8078_v31  ;;  %vm11722_vm1 = vmmov %vm11700_vm3 }
 0x326   : > { %v4910_v40 = vpop.f32.mrf.mxu2  ;;  %v5851_v15 = vrot.slane %v5849_v61, 3  ;;  %vm11703_vm12 = vnez %v11702_v41  ;;  %vm11705_vm8 = vnez %v11704_v57 }
 0x327   : > { %v10800_v35 = vadd.f32 %v4910_v40, %v10566_v43  ;;  %v4184_v60 = vmax.f32 %v4168_v63, 0.0  ;;  %v5854_v40 = vrot.slane %v5852_v37, 4  ;;  %v5087_v11 = vshrl.u32 %v5038_v52, 16 }
 0x328   : > { %v5090_v30 = vshll.u32 %v5038_v52, 16  ;;  %v5734_v27 = vsel %vm11705_vm8, %v5717_v26, 0  ;;  %v6300_v7 = vrot.slane %v6298_v42, 1 }
 0x329   : > { %v5089_v63 = vrot.slane %v5087_v11, 3  ;;  %v10842_v29 = vpop.f32.mrf.mxu0 }
 0x32a   : > { %v4120_v58 = vpop.f32.mrf.mxu3  ;;  %v5092_v37 = vrot.slane %v5090_v30, 4  ;;  %v6301_v42 = vsel %vm11690_vm5, %v6296_v16, %v6300_v7 }
 0x32b   : > { %v4121_v43 = vadd.f32 %v10698_v21, %v4120_v58  ;;  %5959 = vmatmul.bf16.gmra.mxu2 %v5847_v39  ;;  %v4650_v58 = vadd.f32 %v10608_v48, %v10584_v12  ;;  %v10831_v39 = vor.u32 %v5854_v40, %v5851_v15  ;;  %v6250_v48 = vunpack.c.l.b16 %v6200_v34 }
 0x32c   : > { %v5028_v40 = vunpack.c.l.b16 %v4978_v3  ;;  %v6302_v34 = vshrl.u32 %v10809_v62, 16  ;;  %v6186_v3 = vld [vmem:[#allocation2 + $0x8c] sm:$0xf] }
 0x32d   : > { %v4169_v22 = vadd.f32 %v8192_v19, %v4121_v43  ;;  %v8343_v19 = vld [vmem:[%s8849_s23 + $0x18] sm:$0xff]   ;;  %v5856_v53 = vsel %vm11709_vm11, %v10790_v44, %v10831_v39  ;;  %v8077_v62 = vld [vmem:[#allocation8 + $0x1c8] sm:$0xff] }
 0x32e   : > { %v4913_v1 = vpop.f32.mrf.mxu2  ;;  %v11707_v43 = vld [vmem:[#allocation31_spill] sm:$0xff]  ;;  %v8195_v47 = vunpack.c.l.bf16 %v8343_v19  ;;  %6114 = vmatpush.bf16.msrb.mxu3 %v8077_v62 }
 0x32f   : > { %6408 = vmatmul.bf16.gmra.mxu0 %v6293_v13  ;;  %v4185_v20 = vmax.f32 %v4169_v22, 0.0  ;;  %v10817_v5 = vadd.f32 %v4913_v1, %v10591_v36  ;;  %v5733_v36 = vsel %vm11703_vm12, %v5716_v49, 0  ;;  %v4962_v13 = vld [vmem:[#allocation2 + $0x80] sm:$0xf]  ;;  %vm11708_vm0 = vnez %v11707_v43  ;;  %v6185_v43 = vld [vmem:[#allocation2 + $0x88] sm:$0xf] }
 0x330   : > { %5201 = vmatmul.bf16.gmra.mxu3 %v5085_v33  ;;  %v6201_v22 = vsel %vm11708_vm0, %v6184_v32, 0  ;;  %v5783_v52 = vunpack.c.l.b16 %v5733_v36  ;;  %v5784_v1 = vunpack.c.l.b16 %v5734_v27  ;;  %v4979_v12 = vsel %vm11696_vm10, %v4962_v13, 0 }
 0x331   : > { %v8226_v51 = vpack.c.bf16 %v4185_v20, %v4184_v60  ;;  %v6251_v20 = vunpack.c.l.b16 %v6201_v22  ;;  %v8196_v49 = vunpack.c.h.bf16 %v8343_v19  ;;  %v5029_v11 = vunpack.c.l.b16 %v4979_v12  ;;  %v4963_v22 = vld [vmem:[#allocation2 + $0x84] sm:$0xf] }
 0x332   : > { %v4123_v56 = vpop.f32.mrf.mxu3  ;;  %v5793_v15 = vpack.c.b16 %v5784_v1, %v5783_v52  ;;  %v8344_v12 = vld [vmem:[%s8849_s23 + $0x20] sm:$0xff]   ;;  %vm11713_vm10 = vnez %v11629_v59 }
 0x333   : > { %8349 = vst [vmem:[%s10745_s11 + $0x10] sm:$0xff] %v8226_v51   ;;  %v4124_v33 = vadd.f32 %v10698_v21, %v4123_v56  ;;  %v10848_v51 = vor.u32 %v5092_v37, %v5089_v63  ;;  %v10851_v56 = vpack.c.b16 %v6251_v20, %v6250_v48  ;;  %v5039_v17 = vpack.c.b16 %v5029_v11, %v5028_v40 }
 0x334   : > { %v5858_v44 = vshrl.u32 %v5793_v15, 16  ;;  %v5861_v27 = vshll.u32 %v5793_v15, 16  ;;  %v6304_v48 = vor.u32 %v6302_v34, %v6300_v7  ;;  %v4980_v40 = vsel %vm11703_vm12, %v4963_v22, 0  ;;  %vm11718_vm12 = vmmov %vm11690_vm5 }
 0x335   : > { %v4170_v10 = vadd.f32 %v8195_v47, %v4124_v33  ;;  %v5094_v36 = vsel %vm11710_vm7, %v10806_v8, %v10848_v51  ;;  %v6306_v13 = vshll.u32 %v10851_v56, 16  ;;  %v5096_v52 = vshrl.u32 %v5039_v17, 16  ;;  %v10861_v47 = vpop.f32.mrf.mxu0 }
 0x336   : > { %v4915_v61 = vpop.f32.mrf.mxu2  ;;  %v5863_v37 = vrot.slane %v5861_v27, 4  ;;  %v5099_v1 = vshll.u32 %v5039_v17, 16  ;;  %v5030_v17 = vunpack.c.l.b16 %v4980_v40  ;;  %v4965_v40 = vld [vmem:[#allocation2 + $0x8c] sm:$0xf] }
 0x337   : > { %v10838_v60 = vadd.f32 %v4915_v61, %v4650_v58  ;;  %v4186_v31 = vmax.f32 %v4170_v10, 0.0  ;;  %v5718_v58 = vld [vmem:[#allocation2 + $0x94] sm:$0xf]  ;;  %v5860_v61 = vrot.slane %v5858_v44, 3  ;;  %v6308_v20 = vrot.slane %v6306_v13, 1 }
 0x338   : > { %v5101_v7 = vrot.slane %v5099_v1, 4  ;;  %v8200_v44 = vunpack.c.h.bf16 %v8344_v12 }
 0x339   : > { %v10875_v10 = vor.u32 %v5863_v37, %v5860_v61 }
 0x33a   : > { %v4125_v26 = vpop.f32.mrf.mxu3 }
 0x33b   : > { %v4126_v46 = vadd.f32 %v10698_v21, %v4125_v26  ;;  %5964 = vmatmul.bf16.gmra.mxu2 %v5856_v53  ;;  %v6202_v53 = vsel %vm11713_vm10, %v6185_v43, 0  ;;  %v11714_v26 = vld [vmem:[#allocation35_spill] sm:$0xff] }
 0x33c   : > { %vm11715_vm6 = vnez %v11714_v26  ;;  %v6252_v41 = vunpack.c.l.b16 %v6202_v53 }
 0x33d   : > { %v4171_v30 = vadd.f32 %v8196_v49, %v4126_v46  ;;  %v4655_v49 = vadd.f32 %v10644_v6, %v10635_v9  ;;  %v6203_v15 = vsel %vm11715_vm6, %v6186_v3, 0  ;;  %v5098_v46 = vrot.slane %v5096_v52, 3  ;;  %v10889_v43 = vpop.f32.mrf.mxu0 }
 0x33e   : > { %v4918_v32 = vpop.f32.mrf.mxu2  ;;  %v6309_v6 = vsel %vm11716_vm9, %v6304_v48, %v6308_v20  ;;  %v6253_v27 = vunpack.c.l.b16 %v6203_v15  ;;  %v6310_v48 = vshrl.u32 %v10851_v56, 16 }
 0x33f   : > { %6413 = vmatmul.bf16.gmra.mxu0 %v6301_v42  ;;  %v4187_v19 = vmax.f32 %v4171_v30, 0.0  ;;  %v10857_v16 = vadd.f32 %v4918_v32, %v10631_v50  ;;  %v11711_v50 = vld [vmem:[#allocation43_spill] sm:$0xff]  ;;  %v4964_v42 = vld [vmem:[#allocation2 + $0x88] sm:$0xf]  ;;  %v8199_v32 = vunpack.c.l.bf16 %v8344_v12  ;;  %v10886_v34 = vor.u32 %v5101_v7, %v5098_v46  ;;  %v8076_v46 = vld [vmem:[#allocation8 + $0x1c0] sm:$0xff] }
 0x340   : > { %5206 = vmatmul.bf16.gmra.mxu3 %v5094_v36  ;;  %vm11712_vm14 = vnez %v11711_v50  ;;  %v4981_v59 = vsel %vm11705_vm8, %v4964_v42, 0  ;;  %v8345_v7 = vld [vmem:[%s8849_s23 + $0x28] sm:$0xff]   ;;  %vm11719_vm8 = vmmov %vm11700_vm3 }
 0x341   : > { %v8231_v63 = vpack.c.bf16 %v4187_v19, %v4186_v31  ;;  %v5735_v33 = vsel %vm11712_vm14, %v5718_v58, 0  ;;  %v5865_v19 = vsel %vm11700_vm3, %v10831_v39, %v10875_v10  ;;  %v5031_v58 = vunpack.c.l.b16 %v4981_v59  ;;  %6115 = vmatpush.bf16.msrb.mxu3 %v8076_v46 }
 0x342   : > { %v4128_v8 = vpop.f32.mrf.mxu3  ;;  %v5785_v30 = vunpack.c.l.b16 %v5735_v33  ;;  %v5103_v37 = vsel %vm11717_vm13, %v10848_v51, %v10886_v34  ;;  %v4982_v56 = vsel %vm11712_vm14, %v4965_v40, 0  ;;  %v8204_v50 = vunpack.c.h.bf16 %v8345_v7  ;;  %v8346_v40 = vld [vmem:[%s8849_s23 + $0x30] sm:$0xff]  }
 0x343   : > { %8350 = vst [vmem:[%s10745_s11 + $0x18] sm:$0xff] %v8231_v63   ;;  %v4129_v36 = vadd.f32 %v10698_v21, %v4128_v8  ;;  %v10891_v8 = vpack.c.b16 %v6253_v27, %v6252_v41  ;;  %v5040_v1 = vpack.c.b16 %v5031_v58, %v5030_v17 }
 0x344   : > { %v5794_v13 = vpack.c.b16 %v5785_v30, %v5785_v30  ;;  %v6188_v30 = vld [vmem:[#allocation2 + $0x94] sm:$0xf] }
 0x345   : > { %v4172_v63 = vadd.f32 %v8199_v32, %v4129_v36  ;;  %v6314_v42 = vshll.u32 %v10891_v8, 16  ;;  %v5105_v51 = vshrl.u32 %v5040_v1, 16  ;;  %v5108_v15 = vshll.u32 %v5040_v1, 16  ;;  %v10909_v17 = vpop.f32.mrf.mxu0 }
 0x346   : > { %v4920_v11 = vpop.f32.mrf.mxu2  ;;  %v5867_v39 = vshrl.u32 %v5794_v13, 16  ;;  %v5870_v52 = vshll.u32 %v5794_v13, 16  ;;  %v6312_v32 = vor.u32 %v6310_v48, %v6308_v20  ;;  %v5032_v20 = vunpack.c.l.b16 %v4982_v56 }
 0x347   : > { %v10878_v9 = vadd.f32 %v4920_v11, %v4655_v49  ;;  %v4188_v3 = vmax.f32 %v4172_v63, 0.0  ;;  %v6187_v11 = vld [vmem:[#allocation2 + $0x90] sm:$0xf]  ;;  %v6316_v36 = vrot.slane %v6314_v42, 1  ;;  %v5110_v41 = vrot.slane %v5108_v15, 4 }
 0x348   : > { %v5869_v53 = vrot.slane %v5867_v39, 3  ;;  %v5872_v26 = vrot.slane %v5870_v52, 4  ;;  %v6204_v27 = vsel %vm11637_vm15, %v6187_v11, 0  ;;  %vm11720_vm15 = vmmov %vm11700_vm3 }
 0x34a   : > { %v4130_v31 = vpop.f32.mrf.mxu3 }
 0x34b   : > { %v4131_v57 = vadd.f32 %v10698_v21, %v4130_v31  ;;  %5969 = vmatmul.bf16.gmra.mxu2 %v5865_v19  ;;  %v8203_v31 = vunpack.c.l.bf16 %v8345_v7 }
 0x34d   : > { %v4173_v22 = vadd.f32 %v8200_v44, %v4131_v57  ;;  %v5107_v44 = vrot.slane %v5105_v51, 3  ;;  %v6254_v57 = vunpack.c.l.b16 %v6204_v27  ;;  %v10927_v48 = vpop.f32.mrf.mxu0 }
 0x34e   : > { %v4923_v61 = vpop.f32.mrf.mxu2 }
 0x34f   : > { %6418 = vmatmul.bf16.gmra.mxu0 %v6309_v6  ;;  %v4189_v33 = vmax.f32 %v4173_v22, 0.0  ;;  %v10897_v62 = vadd.f32 %v4923_v61, %v10674_v45  ;;  %v4660_v45 = vadd.f32 %v10689_v23, %v10684_v0  ;;  %v5873_v6 = vor.u32 %v5872_v26, %v5869_v53 }
 0x350   : > { %5211 = vmatmul.bf16.gmra.mxu3 %v5103_v37  ;;  %v6205_v0 = vsel %vm11639_vm4, %v6188_v30, 0  ;;  %v6317_v23 = vsel %vm11718_vm12, %v6312_v32, %v6316_v36  ;;  %v5111_v54 = vor.u32 %v5110_v41, %v5107_v44  ;;  %v6318_v26 = vshrl.u32 %v10891_v8, 16  ;;  %vm11721_vm4 = vmmov %vm11690_vm5 }
 0x351   : > { %v8236_v12 = vpack.c.bf16 %v4189_v33, %v4188_v3  ;;  %v5874_v63 = vsel %vm11719_vm8, %v10875_v10, %v5873_v6  ;;  %v6255_v22 = vunpack.c.l.b16 %v6205_v0  ;;  %v5041_v3 = vpack.c.b16 %v5032_v20, %v5032_v20  ;;  %vm11725_vm0 = vmmov %vm11721_vm4 }
 0x352   : > { %v5112_v55 = vsel %vm11720_vm15, %v10886_v34, %v5111_v54  ;;  %v6320_v46 = vor.u32 %v6318_v26, %v6316_v36  ;;  %v8207_v32 = vunpack.c.l.bf16 %v8346_v40  ;;  %v8208_v8 = vunpack.c.h.bf16 %v8346_v40  ;;  %v8098_v26 = vld [vmem:[#allocation9 + $0x30] sm:$0xff] }
 0x353   : > { %v4133_v49 = vpop.f32.mrf.mxu3  ;;  %8351 = vst [vmem:[%s10745_s11 + $0x20] sm:$0xff] %v8236_v12   ;;  %v10922_v1 = vpack.c.b16 %v6255_v22, %v6254_v57  ;;  %v5114_v34 = vshrl.u32 %v5041_v3, 16  ;;  %v5117_v15 = vshll.u32 %v5041_v3, 16  ;;  %v8099_v22 = vld [vmem:[#allocation9 + $0x38] sm:$0xff] }
 0x354   : > { %v4134_v19 = vadd.f32 %v10698_v21, %v4133_v49  ;;  %v4664_v49 = vpop.f32.mrf.mxu1  ;;  %6583 = vmatpush.bf16.msrb.mxu1 %v8099_v22 }
 0x355   : > { %v6322_v51 = vshll.u32 %v10922_v1, 16  ;;  %v4665_v11 = vadd.f32 %v4664_v49, %v10814_v24  ;;  %v5116_v30 = vrot.slane %v5114_v34, 3  ;;  %v10941_v24 = vpop.f32.mrf.mxu0 }
 0x356   : > { %v4925_v59 = vpop.f32.mrf.mxu2  ;;  %v4174_v61 = vadd.f32 %v8203_v31, %v4134_v19 }
 0x357   : > { %v10912_v13 = vadd.f32 %v4925_v59, %v4660_v45  ;;  %v10934_v7 = vrot.slane %v6322_v51, 1  ;;  %v5119_v45 = vrot.slane %v5117_v15, 4 }
 0x358   : > { %v4190_v33 = vmax.f32 %v4174_v61, 0.0  ;;  %6584 = vmatpush.bf16.msrb.mxu1 %v8098_v26 }
 0x359   : > { %v6325_v6 = vsel %vm11721_vm4, %v6320_v46, %v10934_v7  ;;  %v5120_v41 = vor.u32 %v5119_v45, %v5116_v30 }
 0x35b   : > { %v4135_v58 = vpop.f32.mrf.mxu3  ;;  %5974 = vmatmul.bf16.gmra.mxu2 %v5874_v63  ;;  %v5121_v19 = vsel %vm11722_vm1, %v5111_v54, %v5120_v41  ;;  %v8060_v54 = vld [vmem:[#allocation2 + $0x58] sm:$0xff] }
 0x35c   : > { %v4136_v37 = vadd.f32 %v10698_v21, %v4135_v58  ;;  %v8347_v58 = vld [vmem:[%s8849_s23 + $0x38] sm:$0xff]  }
 0x35d   : > { %v8211_v63 = vunpack.c.l.bf16 %v8347_v58  ;;  %v8212_v61 = vunpack.c.h.bf16 %v8347_v58 }
 0x35e   : > { %v4175_v39 = vadd.f32 %v8204_v50, %v4136_v37  ;;  %v4928_v52 = vpop.f32.mrf.mxu2 }
 0x35f   : > { %6423 = vmatmul.bf16.gmra.mxu0 %v6317_v23  ;;  %v10925_v12 = vadd.f32 %v4928_v52, %v10721_v18 }
 0x360   : > { %v4191_v10 = vmax.f32 %v4175_v39, 0.0  ;;  %5216 = vmatmul.bf16.gmra.mxu3 %v5112_v55 }
 0x362   : > { %v8241_v42 = vpack.c.bf16 %v4191_v10, %v4190_v33 }
 0x363   : > { %v4138_v53 = vpop.f32.mrf.mxu3 }
 0x364   : > { %8352 = vst [vmem:[%s10745_s11 + $0x28] sm:$0xff] %v8241_v42   ;;  %v4139_v56 = vadd.f32 %v10698_v21, %v4138_v53  ;;  %v10953_v53 = vpop.f32.mrf.mxu0 }
 0x366   : > { %v4930_v18 = vpop.f32.mrf.mxu2  ;;  %v4176_v36 = vadd.f32 %v8207_v32, %v4139_v56  ;;  %v8062_v32 = vld [vmem:[#allocation2 + $0x68] sm:$0xff] }
 0x367   : > { %v10937_v59 = vadd.f32 %v4930_v18, %v4665_v11  ;;  %v11723_v11 = vld [vmem:[#allocation50_spill] sm:$0xff] }
 0x368   : > { %v4192_v0 = vmax.f32 %v4176_v36, 0.0 }
 0x36b   : > { %v4140_v44 = vpop.f32.mrf.mxu3 }
 0x36c   : > { %v4141_v27 = vadd.f32 %v10698_v21, %v4140_v44  ;;  %v10958_v15 = vpop.f32.mrf.mxu0 }
 0x36e   : > { %v4177_v31 = vadd.f32 %v8208_v8, %v4141_v27  ;;  %v8063_v27 = vld [vmem:[#allocation2 + $0x70] sm:$0xff] }
 0x36f   : > { %6428 = vmatmul.bf16.gmra.mxu0 %v6325_v6  ;;  %v8096_v6 = vld [vmem:[#allocation9 + $0x20] sm:$0xff] }
 0x370   : > { %v4193_v23 = vmax.f32 %v4177_v31, 0.0  ;;  %5221 = vmatmul.bf16.gmra.mxu3 %v5121_v19 }
 0x372   : > { %v8246_v50 = vpack.c.bf16 %v4193_v23, %v4192_v0  ;;  %v8095_v0 = vld [vmem:[#allocation9 + $0x18] sm:$0xff] }
 0x373   : > { %v4143_v20 = vpop.f32.mrf.mxu3 }
 0x374   : > { %8353 = vst [vmem:[%s10745_s11 + $0x30] sm:$0xff] %v8246_v50   ;;  %v4144_v57 = vadd.f32 %v10698_v21, %v4143_v20  ;;  %v10963_v18 = vpop.f32.mrf.mxu0  ;;  %v8064_v50 = vld [vmem:[#allocation2 + $0x78] sm:$0xff] }
 0x376   : > { %v4178_v39 = vadd.f32 %v8211_v63, %v4144_v57  ;;  %v8094_v63 = vld [vmem:[#allocation9 + $0x10] sm:$0xff] }
 0x378   : > { %v4194_v3 = vmax.f32 %v4178_v39, 0.0 }
 0x37b   : > { %v4145_v37 = vpop.f32.mrf.mxu3 }
 0x37c   : > { %v4146_v52 = vadd.f32 %v10698_v21, %v4145_v37  ;;  %v8061_v21 = vld [vmem:[#allocation2 + $0x60] sm:$0xff] }
 0x37e   : > { %v4179_v55 = vadd.f32 %v8212_v61, %v4146_v52  ;;  %v8065_v61 = vld [vmem:[#allocation2 + $0x80] sm:$0xff] }
 0x380   : > { %v4195_v33 = vmax.f32 %v4179_v55, 0.0  ;;  %6116 = vmatmul.bf16.vlgmr.msrb.gmra.mxu3 %v8060_v54  ;;  %v6326_v54 = vshrl.u32 %v10922_v1, 16  ;;  %v5646_v1 = vpop.f32.mrf.mxu1 }
 0x382   : > { %v8251_v10 = vpack.c.bf16 %v4195_v33, %v4194_v3 }
 0x383   : > { %v5187_v42 = vpop.f32.mrf.mxu3 }
 0x384   : > { %8354 = vst [vmem:[%s10745_s11 + $0x38] sm:$0xff] %v8251_v10   ;;  %v10951_v49 = vadd.f32 %v5187_v42, %v10640_v25  ;;  %v8097_v25 = vld [vmem:[#allocation9 + $0x28] sm:$0xff] }
 0x385   : > { %6585 = vmatpush.bf16.msrb.mxu1 %v8097_v25  ;;  %v8093_v10 = vld [vmem:[#allocation9 + $0x8] sm:$0xff]  ;;  %v5940_v25 = vpop.f32.mrf.mxu2 }
 0x389   : > { %6586 = vmatpush.bf16.msrb.mxu1 %v8096_v6  ;;  %v8092_v6 = vld [vmem:[#allocation9] sm:$0xff] }
 0x38b   : > { %v5189_v51 = vpop.f32.mrf.mxu3 }
 0x38c   : > { %v10956_v34 = vadd.f32 %v5189_v51, %v10662_v14  ;;  %v10968_v14 = vpop.f32.mrf.mxu0 }
 0x38d   : > { %6587 = vmatpush.bf16.msrb.mxu1 %v8095_v0 }
 0x390   : > { %6121 = vmatmul.bf16.gmra.mxu3 %v8061_v21 }
 0x391   : > { %6588 = vmatpush.bf16.msrb.mxu1 %v8094_v63 }
 0x393   : > { %v5192_v40 = vpop.f32.mrf.mxu3 }
 0x394   : > { %v10961_v46 = vadd.f32 %v5192_v40, %v11723_v11  ;;  %v10976_v36 = vpop.f32.mrf.mxu0  ;;  %v8066_v11 = vld [vmem:[#allocation2 + $0x88] sm:$0xff] }
 0x395   : > { %6589 = vmatpush.bf16.msrb.mxu1 %v8093_v10 }
 0x399   : > { %6590 = vmatpush.bf16.msrb.mxu1 %v8092_v6 }
 0x39b   : > { %v5194_v30 = vpop.f32.mrf.mxu3 }
 0x39c   : > { %v10966_v45 = vadd.f32 %v5194_v30, %v10709_v38  ;;  %v10981_v19 = vpop.f32.mrf.mxu0 }
 0x3a0   : > { %6126 = vmatmul.bf16.gmra.mxu3 %v8062_v32 }
 0x3a3   : > { %v5197_v56 = vpop.f32.mrf.mxu3 }
 0x3a4   : > { %v10971_v8 = vadd.f32 %v5197_v56, %v10734_v2 }
 0x3ab   : > { %v5199_v44 = vpop.f32.mrf.mxu3 }
 0x3ac   : > { %v10974_v41 = vadd.f32 %v5199_v44, %v10757_v4  ;;  %v10986_v4 = vpop.f32.mrf.mxu0 }
 0x3b0   : > { %6131 = vmatmul.bf16.gmra.mxu3 %v8063_v27 }
 0x3b3   : > { %v5202_v38 = vpop.f32.mrf.mxu3 }
 0x3b4   : > { %v10979_v31 = vadd.f32 %v5202_v38, %v10776_v28  ;;  %v10991_v57 = vpop.f32.mrf.mxu0  ;;  %v5942_v38 = vpop.f32.mrf.mxu2 }
 0x3bb   : > { %v5204_v23 = vpop.f32.mrf.mxu3 }
 0x3bc   : > { %v10984_v2 = vadd.f32 %v5204_v23, %v10800_v35  ;;  %v6189_v35 = vld [vmem:[#allocation2 + $0x98] sm:$0x1]  ;;  %v11002_v3 = vpop.f32.mrf.mxu0  ;;  %v5945_v63 = vpop.f32.mrf.mxu2 }
 0x3bd   : > { %v6206_v39 = vsel %vm11647_vm2, %v6189_v35, 0 }
 0x3be   : > { %v6256_v55 = vunpack.c.l.b16 %v6206_v39 }
 0x3c0   : > { %6136 = vmatmul.bf16.gmra.mxu3 %v8064_v50  ;;  %v6265_v33 = vpack.c.b16 %v6256_v55, %v6256_v55 }
 0x3c2   : > { %v6330_v42 = vshll.u32 %v6265_v33, 16 }
 0x3c3   : > { %v5207_v20 = vpop.f32.mrf.mxu3 }
 0x3c4   : > { %v10989_v58 = vadd.f32 %v5207_v20, %v10817_v5  ;;  %v6332_v26 = vrot.slane %v6330_v42, 1  ;;  %v5947_v39 = vpop.f32.mrf.mxu2 }
 0x3cb   : > { %v5209_v28 = vpop.f32.mrf.mxu3 }
 0x3cc   : > { %v10994_v22 = vadd.f32 %v5209_v28, %v10838_v60  ;;  %v6328_v60 = vor.u32 %v6326_v54, %v10934_v7  ;;  %v5648_v7 = vpop.f32.mrf.mxu1 }
 0x3ce   : > { %v6333_v21 = vsel %vm11725_vm0, %v6328_v60, %v6332_v26 }
 0x3cf   : > { %6433 = vmatmul.bf16.gmra.mxu0 %v6333_v21 }
 0x3d0   : > { %6141 = vmatmul.bf16.gmra.mxu3 %v8065_v61  ;;  %v5404_v61 = vadd.f32 %v10842_v29, %v10951_v49  ;;  %v11030_v29 = vld [vmem:[%s11151_s4] ss:$0 sm:$0xff]  ;;  %v5950_v49 = vpop.f32.mrf.mxu2 }
 0x3d2   : > { %v5686_v37 = vadd.f32 %v5646_v1, %v5404_v61 }
 0x3d3   : > { %v5212_v52 = vpop.f32.mrf.mxu3 }
 0x3d4   : > { %v11000_v5 = vadd.f32 %v5212_v52, %v10857_v16  ;;  %v11009_v16 = vpop.f32.mrf.mxu0  ;;  %v5651_v0 = vpop.f32.mrf.mxu1  ;;  %v5405_v52 = vadd.f32 %v10861_v47, %v10956_v34  ;;  %v5980_v54 = vadd.f32 %v5940_v25, %v5686_v37 }
 0x3d6   : > { %v5687_v10 = vadd.f32 %v5648_v7, %v5405_v52  ;;  %v5407_v7 = vadd.f32 %v10909_v17, %v10966_v45 }
 0x3db   : > { %v5214_v51 = vpop.f32.mrf.mxu3 }
 0x3dc   : > { %v11007_v40 = vadd.f32 %v5214_v51, %v10878_v9  ;;  %v6399_v56 = vpop.f32.mrf.mxu0  ;;  %v8067_v9 = vld [vmem:[#allocation2 + $0x90] sm:$0xff]  ;;  %v5653_v28 = vpop.f32.mrf.mxu1  ;;  %v5406_v51 = vadd.f32 %v10889_v43, %v10961_v46 }
 0x3dd   : > { %v5689_v43 = vadd.f32 %v5653_v28, %v5407_v7 }
 0x3de   : > { %v5688_v25 = vadd.f32 %v5651_v0, %v5406_v51  ;;  %v5408_v0 = vadd.f32 %v10927_v48, %v10971_v8 }
 0x3e0   : > { %6146 = vmatmul.bf16.gmra.mxu3 %v8066_v11 }
 0x3e3   : > { %v5217_v30 = vpop.f32.mrf.mxu3 }
 0x3e4   : > { %v11012_v32 = vadd.f32 %v5217_v30, %v10897_v62  ;;  %v6401_v23 = vpop.f32.mrf.mxu0  ;;  %v5656_v33 = vpop.f32.mrf.mxu1 }
 0x3eb   : > { %v5219_v44 = vpop.f32.mrf.mxu3 }
 0x3ec   : > { %v11015_v27 = vadd.f32 %v5219_v44, %v10912_v13  ;;  %v6404_v13 = vpop.f32.mrf.mxu0  ;;  %v5658_v1 = vpop.f32.mrf.mxu1 }
 0x3f0   : > { %6151 = vmatmul.bf16.gmra.mxu3 %v8067_v9 }
 0x3f3   : > { %v5222_v50 = vpop.f32.mrf.mxu3 }
 0x3f4   : > { %v11018_v20 = vadd.f32 %v5222_v50, %v10925_v12  ;;  %v6406_v60 = vpop.f32.mrf.mxu0  ;;  %v5952_v50 = vpop.f32.mrf.mxu2 }
 0x3f5   : > { %v5661_v46 = vpop.f32.mrf.mxu1 }
 0x3fb   : > { %v5224_v62 = vpop.f32.mrf.mxu3 }
 0x3fc   : > { %v11023_v35 = vadd.f32 %v5224_v62, %v10937_v59  ;;  %v5981_v59 = vadd.f32 %v5942_v38, %v5687_v10  ;;  %v6409_v30 = vpop.f32.mrf.mxu0  ;;  %v5982_v38 = vadd.f32 %v5945_v63, %v5688_v25  ;;  %v5690_v63 = vadd.f32 %v5656_v33, %v5408_v0 }
 0x3fd   : > { %v5409_v10 = vadd.f32 %v10941_v24, %v10974_v41  ;;  %v5410_v33 = vadd.f32 %v10953_v53, %v10979_v31 }
 0x3ff   : > { %v5691_v48 = vadd.f32 %v5658_v1, %v5409_v10 }
 0x403   : > { %v6117_v55 = vpop.f32.mrf.mxu3 }
 0x404   : > { %v6157_v12 = vadd.f32 %v6117_v55, %v5980_v54  ;;  %v6411_v37 = vpop.f32.mrf.mxu0  ;;  %v5955_v54 = vpop.f32.mrf.mxu2 }
 0x406   : > { %v6439_v42 = vadd.f32 %v6399_v56, %v6157_v12 }
 0x408   : > { %v6459_v47 = vadd.f32 %v11030_v29, %v6439_v42 }
 0x40a   : > { %v6475_v56 = vmax.f32 %v6459_v47, 0.0 }
 0x40b   : > { %v6119_v26 = vpop.f32.mrf.mxu3 }
 0x40c   : > { %v6158_v21 = vadd.f32 %v6119_v26, %v5981_v59  ;;  %v5984_v59 = vadd.f32 %v5950_v49, %v5690_v63  ;;  %v6414_v51 = vpop.f32.mrf.mxu0  ;;  %v5957_v8 = vpop.f32.mrf.mxu2 }
 0x40e   : > { %v6440_v34 = vadd.f32 %v6401_v23, %v6158_v21  ;;  %v5983_v23 = vadd.f32 %v5947_v39, %v5689_v43  ;;  %v5663_v39 = vpop.f32.mrf.mxu1 }
 0x410   : > { %v6460_v11 = vadd.f32 %v11030_v29, %v6440_v34 }
 0x412   : > { %v6476_v6 = vmax.f32 %v6460_v11, 0.0 }
 0x413   : > { %v6122_v44 = vpop.f32.mrf.mxu3 }
 0x414   : > { %v6491_v9 = vpack.c.bf16 %v6476_v6, %v6475_v56  ;;  %v6159_v62 = vadd.f32 %v6122_v44, %v5982_v38  ;;  %v6416_v7 = vpop.f32.mrf.mxu0  ;;  %v5692_v56 = vadd.f32 %v5661_v46, %v5410_v33  ;;  %v5411_v6 = vadd.f32 %v10958_v15, %v10984_v2 }
 0x415   : > { %v5412_v46 = vadd.f32 %v10963_v18, %v10989_v58 }
 0x416   : > { %6591 = vmatmul.bf16.vlgmr.msrb.gmra.mxu1 %v6491_v9  ;;  %v6441_v61 = vadd.f32 %v6404_v13, %v6159_v62  ;;  %v5666_v25 = vpop.f32.mrf.mxu1  ;;  %v5986_v38 = vadd.f32 %v5955_v54, %v5692_v56  ;;  %v5693_v53 = vadd.f32 %v5663_v39, %v5411_v6  ;;  %v5413_v54 = vadd.f32 %v10968_v14, %v10994_v22 }
 0x418   : > { %v6461_v17 = vadd.f32 %v11030_v29, %v6441_v61 }
 0x41a   : > { %v6477_v28 = vmax.f32 %v6461_v17, 0.0  ;;  %v5694_v17 = vadd.f32 %v5666_v25, %v5412_v46 }
 0x41b   : > { %v6124_v52 = vpop.f32.mrf.mxu3 }
 0x41c   : > { %v6160_v55 = vadd.f32 %v6124_v52, %v5983_v23  ;;  %v6419_v43 = vpop.f32.mrf.mxu0  ;;  %v5987_v23 = vadd.f32 %v5957_v8, %v5693_v53 }
 0x41e   : > { %v6442_v45 = vadd.f32 %v6406_v60, %v6160_v55  ;;  %v5985_v60 = vadd.f32 %v5952_v50, %v5691_v48  ;;  %v5668_v31 = vpop.f32.mrf.mxu1  ;;  %v5414_v48 = vadd.f32 %v10976_v36, %v11000_v5 }
 0x41f   : > { %v5695_v18 = vadd.f32 %v5668_v31, %v5413_v54 }
 0x420   : > { %v6462_v12 = vadd.f32 %v11030_v29, %v6442_v45 }
 0x422   : > { %v6478_v42 = vmax.f32 %v6462_v12, 0.0 }
 0x423   : > { %v6127_v13 = vpop.f32.mrf.mxu3 }
 0x424   : > { %v6492_v26 = vpack.c.bf16 %v6478_v42, %v6477_v28  ;;  %v6161_v21 = vadd.f32 %v6127_v13, %v5984_v59  ;;  %v6421_v10 = vpop.f32.mrf.mxu0 }
 0x426   : > { %6596 = vmatmul.bf16.gmra.mxu1 %v6492_v26  ;;  %v6443_v47 = vadd.f32 %v6409_v30, %v6161_v21  ;;  %v5960_v30 = vpop.f32.mrf.mxu2  ;;  %v5671_v45 = vpop.f32.mrf.mxu1 }
 0x427   : > { %v5988_v42 = vadd.f32 %v5960_v30, %v5694_v17 }
 0x428   : > { %v6463_v24 = vadd.f32 %v11030_v29, %v6443_v47 }
 0x42a   : > { %v6479_v1 = vmax.f32 %v6463_v24, 0.0 }
 0x42b   : > { %v6129_v34 = vpop.f32.mrf.mxu3 }
 0x42c   : > { %v6162_v11 = vadd.f32 %v6129_v34, %v5985_v60  ;;  %v6424_v47 = vpop.f32.mrf.mxu0  ;;  %v5696_v34 = vadd.f32 %v5671_v45, %v5414_v48 }
 0x42e   : > { %v6444_v41 = vadd.f32 %v6411_v37, %v6162_v11  ;;  %v5962_v0 = vpop.f32.mrf.mxu2  ;;  %v5673_v21 = vpop.f32.mrf.mxu1  ;;  %v5415_v11 = vadd.f32 %v10981_v19, %v11007_v40 }
 0x42f   : > { %v5989_v26 = vadd.f32 %v5962_v0, %v5695_v18 }
 0x430   : > { %v6464_v49 = vadd.f32 %v11030_v29, %v6444_v41  ;;  %v5697_v36 = vadd.f32 %v5673_v21, %v5415_v11 }
 0x432   : > { %v6480_v44 = vmax.f32 %v6464_v49, 0.0 }
 0x433   : > { %v6132_v9 = vpop.f32.mrf.mxu3 }
 0x434   : > { %v6493_v50 = vpack.c.bf16 %v6480_v44, %v6479_v1  ;;  %v6163_v62 = vadd.f32 %v6132_v9, %v5986_v38  ;;  %v6426_v5 = vpop.f32.mrf.mxu0  ;;  %v5416_v38 = vadd.f32 %v10986_v4, %v11012_v32 }
 0x436   : > { %6601 = vmatmul.bf16.gmra.mxu1 %v6493_v50  ;;  %v6445_v61 = vadd.f32 %v6414_v51, %v6163_v62  ;;  %v5965_v58 = vpop.f32.mrf.mxu2  ;;  %v5676_v56 = vpop.f32.mrf.mxu1 }
 0x437   : > { %v5698_v31 = vadd.f32 %v5676_v56, %v5416_v38 }
 0x438   : > { %v6465_v15 = vadd.f32 %v11030_v29, %v6445_v61  ;;  %v5417_v61 = vadd.f32 %v10991_v57, %v11015_v27 }
 0x43a   : > { %v6481_v12 = vmax.f32 %v6465_v15, 0.0 }
 0x43b   : > { %v6134_v37 = vpop.f32.mrf.mxu3 }
 0x43c   : > { %v6164_v52 = vadd.f32 %v6134_v37, %v5987_v23 }
 0x43e   : > { %v6446_v2 = vadd.f32 %v6416_v7, %v6164_v52  ;;  %v5967_v33 = vpop.f32.mrf.mxu2  ;;  %v5990_v7 = vadd.f32 %v5965_v58, %v5696_v34  ;;  %v5678_v62 = vpop.f32.mrf.mxu1 }
 0x43f   : > { %v5991_v44 = vadd.f32 %v5967_v33, %v5697_v36  ;;  %v5699_v4 = vadd.f32 %v5678_v62, %v5417_v61 }
 0x440   : > { %v6466_v55 = vadd.f32 %v11030_v29, %v6446_v2 }
 0x442   : > { %v6482_v63 = vmax.f32 %v6466_v55, 0.0 }
 0x443   : > { %v6137_v28 = vpop.f32.mrf.mxu3 }
 0x444   : > { %v6494_v13 = vpack.c.bf16 %v6482_v63, %v6481_v12  ;;  %v6165_v39 = vadd.f32 %v6137_v28, %v5988_v42  ;;  %v5418_v12 = vadd.f32 %v11002_v3, %v11018_v20 }
 0x446   : > { %6606 = vmatmul.bf16.gmra.mxu1 %v6494_v13  ;;  %v6447_v59 = vadd.f32 %v6419_v43, %v6165_v39  ;;  %v5970_v30 = vpop.f32.mrf.mxu2  ;;  %v6429_v43 = vpop.f32.mrf.mxu0  ;;  %v5419_v13 = vadd.f32 %v11009_v16, %v11023_v35 }
 0x447   : > { %v5992_v52 = vadd.f32 %v5970_v30, %v5698_v31  ;;  %v5681_v32 = vpop.f32.mrf.mxu1 }
 0x448   : > { %v6467_v14 = vadd.f32 %v11030_v29, %v6447_v59  ;;  %v5700_v42 = vadd.f32 %v5681_v32, %v5418_v12 }
 0x44a   : > { %v6483_v25 = vmax.f32 %v6467_v14, 0.0 }
 0x44b   : > { %v6139_v51 = vpop.f32.mrf.mxu3 }
 0x44c   : > { %v6166_v8 = vadd.f32 %v6139_v51, %v5989_v26 }
 0x44e   : > { %v6448_v22 = vadd.f32 %v6421_v10, %v6166_v8  ;;  %v5972_v15 = vpop.f32.mrf.mxu2  ;;  %v6431_v45 = vpop.f32.mrf.mxu0 }
 0x44f   : > { %v5993_v17 = vadd.f32 %v5972_v15, %v5699_v4  ;;  %v5683_v21 = vpop.f32.mrf.mxu1 }
 0x450   : > { %v6468_v60 = vadd.f32 %v11030_v29, %v6448_v22  ;;  %v5701_v3 = vadd.f32 %v5683_v21, %v5419_v13 }
 0x452   : > { %v6484_v24 = vmax.f32 %v6468_v60, 0.0 }
 0x453   : > { %v6142_v41 = vpop.f32.mrf.mxu3 }
 0x454   : > { %v6495_v49 = vpack.c.bf16 %v6484_v24, %v6483_v25  ;;  %v6167_v6 = vadd.f32 %v6142_v41, %v5990_v7  ;;  %v11079_v41 = vld [vmem:[%s11153_s6] ss:$0 sm:$0xff] }
 0x455   : > { %v8355_v7 = vld [vmem:[%s8849_s23 + $0x40] sm:$0xff]  }
 0x456   : > { %6611 = vmatmul.bf16.gmra.mxu1 %v6495_v49  ;;  %v6449_v1 = vadd.f32 %v6424_v47, %v6167_v6  ;;  %v5975_v10 = vpop.f32.mrf.mxu2  ;;  %v6434_v58 = vpop.f32.mrf.mxu0  ;;  %v8255_v49 = vunpack.c.l.bf16 %v8355_v7  ;;  %v8256_v6 = vunpack.c.h.bf16 %v8355_v7 }
 0x457   : > { %v5994_v26 = vadd.f32 %v5975_v10, %v5700_v42 }
 0x458   : > { %v6469_v19 = vadd.f32 %v11030_v29, %v6449_v1 }
 0x45a   : > { %v6485_v23 = vmax.f32 %v6469_v19, 0.0 }
 0x45b   : > { %v6144_v9 = vpop.f32.mrf.mxu3 }
 0x45c   : > { %v6168_v50 = vadd.f32 %v6144_v9, %v5991_v44 }
 0x45e   : > { %v6450_v40 = vadd.f32 %v6426_v5, %v6168_v50  ;;  %v5977_v20 = vpop.f32.mrf.mxu2  ;;  %v6436_v60 = vpop.f32.mrf.mxu0  ;;  %v8356_v50 = vld [vmem:[%s8849_s23 + $0x48] sm:$0xff]  }
 0x45f   : > { %v5995_v47 = vadd.f32 %v5977_v20, %v5701_v3  ;;  %v8259_v19 = vunpack.c.l.bf16 %v8356_v50  ;;  %v8260_v62 = vunpack.c.h.bf16 %v8356_v50 }
 0x460   : > { %v6470_v53 = vadd.f32 %v11030_v29, %v6450_v40 }
 0x462   : > { %v6486_v37 = vmax.f32 %v6470_v53, 0.0 }
 0x463   : > { %v6147_v46 = vpop.f32.mrf.mxu3 }
 0x464   : > { %v6496_v0 = vpack.c.bf16 %v6486_v37, %v6485_v23  ;;  %v6169_v2 = vadd.f32 %v6147_v46, %v5992_v52 }
 0x466   : > { %6616 = vmatmul.bf16.gmra.mxu1 %v6496_v0  ;;  %v6451_v55 = vadd.f32 %v6429_v43, %v6169_v2  ;;  %v8357_v0 = vld [vmem:[%s8849_s23 + $0x50] sm:$0xff]  }
 0x467   : > { %v8263_v15 = vunpack.c.l.bf16 %v8357_v0  ;;  %v8264_v4 = vunpack.c.h.bf16 %v8357_v0 }
 0x468   : > { %v6471_v57 = vadd.f32 %v11030_v29, %v6451_v55 }
 0x46a   : > { %v6487_v39 = vmax.f32 %v6471_v57, 0.0 }
 0x46b   : > { %v6149_v54 = vpop.f32.mrf.mxu3 }
 0x46c   : > { %v6170_v63 = vadd.f32 %v6149_v54, %v5993_v17 }
 0x46e   : > { %v6452_v27 = vadd.f32 %v6431_v45, %v6170_v63 }
 0x470   : > { %v6472_v28 = vadd.f32 %v11030_v29, %v6452_v27  ;;  %v8358_v27 = vld [vmem:[%s8849_s23 + $0x58] sm:$0xff]  }
 0x471   : > { %v8267_v10 = vunpack.c.l.bf16 %v8358_v27  ;;  %v8268_v42 = vunpack.c.h.bf16 %v8358_v27 }
 0x472   : > { %v6488_v18 = vmax.f32 %v6472_v28, 0.0 }
 0x473   : > { %v6152_v59 = vpop.f32.mrf.mxu3 }
 0x474   : > { %v6497_v51 = vpack.c.bf16 %v6488_v18, %v6487_v39  ;;  %v6171_v48 = vadd.f32 %v6152_v59, %v5994_v26 }
 0x476   : > { %6621 = vmatmul.bf16.gmra.mxu1 %v6497_v51  ;;  %v6453_v8 = vadd.f32 %v6434_v58, %v6171_v48  ;;  %v8359_v48 = vld [vmem:[%s8849_s23 + $0x60] sm:$0xff]  }
 0x477   : > { %v8271_v3 = vunpack.c.l.bf16 %v8359_v48 }
 0x478   : > { %v6473_v34 = vadd.f32 %v11030_v29, %v6453_v8  ;;  %v8272_v8 = vunpack.c.h.bf16 %v8359_v48 }
 0x47a   : > { %v6489_v33 = vmax.f32 %v6473_v34, 0.0 }
 0x47b   : > { %v6154_v14 = vpop.f32.mrf.mxu3 }
 0x47c   : > { %v6172_v22 = vadd.f32 %v6154_v14, %v5995_v47 }
 0x47e   : > { %v6454_v16 = vadd.f32 %v6436_v60, %v6172_v22 }
 0x480   : > { %v6474_v35 = vadd.f32 %v11030_v29, %v6454_v16 }
 0x482   : > { %v6490_v11 = vmax.f32 %v6474_v35, 0.0 }
 0x484   : > { %v6498_v25 = vpack.c.bf16 %v6490_v11, %v6489_v33  ;;  %v8360_v11 = vld [vmem:[%s8849_s23 + $0x68] sm:$0xff]  }
 0x485   : > { %v8276_v7 = vunpack.c.h.bf16 %v8360_v11 }
 0x486   : > { %6626 = vmatmul.bf16.gmra.mxu1 %v6498_v25  ;;  %v8275_v25 = vunpack.c.l.bf16 %v8360_v11 }
 0x493   : > { %v6592_v24 = vpop.f32.mrf.mxu1 }
 0x494   : > { %v6593_v56 = vadd.f32 %v11079_v41, %v6592_v24 }
 0x496   : > { %v6648_v5 = vadd.f32 %v8255_v49, %v6593_v56 }
 0x498   : > { %v6664_v44 = vmax.f32 %v6648_v5, 0.0 }
 0x49b   : > { %v6594_v36 = vpop.f32.mrf.mxu1 }
 0x49c   : > { %v6595_v29 = vadd.f32 %v11079_v41, %v6594_v36 }
 0x49e   : > { %v6649_v1 = vadd.f32 %v8256_v6, %v6595_v29 }
 0x4a0   : > { %v6665_v30 = vmax.f32 %v6649_v1, 0.0 }
 0x4a2   : > { %v8288_v9 = vpack.c.bf16 %v6665_v30, %v6664_v44  ;;  %v8361_v30 = vld [vmem:[%s8849_s23 + $0x70] sm:$0xff]  }
 0x4a3   : > { %v6597_v38 = vpop.f32.mrf.mxu1  ;;  %v8280_v50 = vunpack.c.h.bf16 %v8361_v30 }
 0x4a4   : > { %8363 = vst [vmem:[%s10745_s11 + $0x40] sm:$0xff] %v8288_v9   ;;  %v6598_v40 = vadd.f32 %v11079_v41, %v6597_v38  ;;  %v8279_v9 = vunpack.c.l.bf16 %v8361_v30 }
 0x4a6   : > { %v6650_v31 = vadd.f32 %v8259_v19, %v6598_v40 }
 0x4a8   : > { %v6666_v23 = vmax.f32 %v6650_v31, 0.0 }
 0x4ab   : > { %v6599_v53 = vpop.f32.mrf.mxu1 }
 0x4ac   : > { %v6600_v43 = vadd.f32 %v11079_v41, %v6599_v53 }
 0x4ae   : > { %v6651_v61 = vadd.f32 %v8260_v62, %v6600_v43 }
 0x4b0   : > { %v6667_v37 = vmax.f32 %v6651_v61, 0.0 }
 0x4b2   : > { %v8293_v46 = vpack.c.bf16 %v6667_v37, %v6666_v23  ;;  %v8362_v37 = vld [vmem:[%s8849_s23 + $0x78] sm:$0xff]   ;;  %s8611_s23 = sshra.s32 %s6729_s29, 4  ;;  %s8612_s23 = int_to_ptr.hbm [resolvable:$true] %s8611_s23 }
 0x4b3   : > { %v6602_v52 = vpop.f32.mrf.mxu1  ;;  %v8284_v0 = vunpack.c.h.bf16 %v8362_v37  ;;  %s8613_s9 = scalar_lea.hbm %s8612_s23, 128  ;;  %p8618_p11 = scmp.lt.s32.totalorder %s8612_s23, %s11154_s7 }
 0x4b4   : > { %8364 = vst [vmem:[%s10745_s11 + $0x48] sm:$0xff] %v8293_v46   ;;  %v6603_v2 = vadd.f32 %v11079_v41, %v6602_v52  ;;  %v8283_v46 = vunpack.c.l.bf16 %v8362_v37  ;;  %p8614_p1 = scmp.ne.s32.totalorder %s8612_s23, %s8613_s9  ;;  %p8619_p9 = scmp.lt.s32.totalorder %s8617_s20, %s8613_s9 }
 0x4b6   : > { %v6652_v55 = vadd.f32 %v8263_v15, %v6603_v2  ;;  %p8615_p4 = pnand %p8614_p1, %p8813_p3  ;;  %p8620_p2 = por %p8619_p9, %p8618_p11 }
 0x4b8   : > { %v6668_v54 = vmax.f32 %v6652_v55, 0.0  ;;  %p8616_p8 = pneg %p8615_p4 }
 0x4ba   : > { %p8621_p10 = pnand %p8620_p2, %p8616_p8 }
 0x4bb   : > { %v6604_v32 = vpop.f32.mrf.mxu1 }
 0x4bc   : > { %v6605_v17 = vadd.f32 %v11079_v41, %v6604_v32 }
 0x4be   : > { %v6653_v45 = vadd.f32 %v8264_v4, %v6605_v17 }
 0x4c0   : > { %v6669_v12 = vmax.f32 %v6653_v45, 0.0 }
 0x4c2   : > { %v8298_v63 = vpack.c.bf16 %v6669_v12, %v6668_v54 }
 0x4c3   : > { %v6607_v57 = vpop.f32.mrf.mxu1 }
 0x4c4   : > { %8365 = vst [vmem:[%s10745_s11 + $0x50] sm:$0xff] %v8298_v63   ;;  %v6608_v28 = vadd.f32 %v11079_v41, %v6607_v57 }
 0x4c6   : > { %v6654_v39 = vadd.f32 %v8267_v10, %v6608_v28 }
 0x4c8   : > { %v6670_v59 = vmax.f32 %v6654_v39, 0.0 }
 0x4cb   : > { %v6609_v13 = vpop.f32.mrf.mxu1 }
 0x4cc   : > { %v6610_v18 = vadd.f32 %v11079_v41, %v6609_v13 }
 0x4ce   : > { %v6655_v58 = vadd.f32 %v8268_v42, %v6610_v18 }
 0x4d0   : > { %v6671_v26 = vmax.f32 %v6655_v58, 0.0 }
 0x4d2   : > { %v8303_v51 = vpack.c.bf16 %v6671_v26, %v6670_v59 }
 0x4d3   : > { %v6612_v21 = vpop.f32.mrf.mxu1 }
 0x4d4   : > { %8366 = vst [vmem:[%s10745_s11 + $0x58] sm:$0xff] %v8303_v51   ;;  %v6613_v20 = vadd.f32 %v11079_v41, %v6612_v21 }
 0x4d6   : > { %v6656_v14 = vadd.f32 %v8271_v3, %v6613_v20 }
 0x4d8   : > { %v6672_v34 = vmax.f32 %v6656_v14, 0.0 }
 0x4db   : > { %v6614_v47 = vpop.f32.mrf.mxu1 }
 0x4dc   : > { %v6615_v22 = vadd.f32 %v11079_v41, %v6614_v47 }
 0x4de   : > { %v6657_v60 = vadd.f32 %v8272_v8, %v6615_v22 }
 0x4e0   : > { %v6673_v16 = vmax.f32 %v6657_v60, 0.0 }
 0x4e2   : > { %v8308_v35 = vpack.c.bf16 %v6673_v16, %v6672_v34 }
 0x4e3   : > { %v6617_v33 = vpop.f32.mrf.mxu1 }
 0x4e4   : > { %8367 = vst [vmem:[%s10745_s11 + $0x60] sm:$0xff] %v8308_v35   ;;  %v6618_v24 = vadd.f32 %v11079_v41, %v6617_v33 }
 0x4e6   : > { %v6658_v56 = vadd.f32 %v8275_v25, %v6618_v24 }
 0x4e8   : > { %v6674_v5 = vmax.f32 %v6658_v56, 0.0 }
 0x4eb   : > { %v6619_v49 = vpop.f32.mrf.mxu1 }
 0x4ec   : > { %v6620_v6 = vadd.f32 %v11079_v41, %v6619_v49 }
 0x4ee   : > { %v6659_v36 = vadd.f32 %v8276_v7, %v6620_v6 }
 0x4f0   : > { %v6675_v29 = vmax.f32 %v6659_v36, 0.0 }
 0x4f2   : > { %v8313_v1 = vpack.c.bf16 %v6675_v29, %v6674_v5 }
 0x4f3   : > { %v6622_v44 = vpop.f32.mrf.mxu1 }
 0x4f4   : > { %8368 = vst [vmem:[%s10745_s11 + $0x68] sm:$0xff] %v8313_v1   ;;  %v6623_v38 = vadd.f32 %v11079_v41, %v6622_v44 }
 0x4f6   : > { %v6660_v40 = vadd.f32 %v8279_v9, %v6623_v38 }
 0x4f8   : > { %v6676_v31 = vmax.f32 %v6660_v40, 0.0 }
 0x4fb   : > { %v6624_v19 = vpop.f32.mrf.mxu1 }
 0x4fc   : > { %v6625_v62 = vadd.f32 %v11079_v41, %v6624_v19 }
 0x4fe   : > { %v6661_v53 = vadd.f32 %v8280_v50, %v6625_v62 }
 0x500   : > { %v6677_v43 = vmax.f32 %v6661_v53, 0.0 }
 0x502   : > { %v8318_v61 = vpack.c.bf16 %v6677_v43, %v6676_v31 }
 0x503   : > { %v6627_v23 = vpop.f32.mrf.mxu1 }
 0x504   : > { %8369 = vst [vmem:[%s10745_s11 + $0x70] sm:$0xff] %v8318_v61   ;;  %v6628_v52 = vadd.f32 %v11079_v41, %v6627_v23 }
 0x506   : > { %v6662_v2 = vadd.f32 %v8283_v46, %v6628_v52 }
 0x508   : > { %v6678_v55 = vmax.f32 %v6662_v2, 0.0 }
 0x50b   : > { %v6629_v15 = vpop.f32.mrf.mxu1 }
 0x50c   : > { %v6630_v4 = vadd.f32 %v11079_v41, %v6629_v15 }
 0x50e   : > { %v6663_v32 = vadd.f32 %v8284_v0, %v6630_v4 }
 0x510   : > { %v6679_v17 = vmax.f32 %v6663_v32, 0.0 }
 0x512   : > { %v8323_v45 = vpack.c.bf16 %v6679_v17, %v6678_v55 }
 0x514   : > { %8370 = vst [vmem:[%s10745_s11 + $0x78] sm:$0xff] %v8323_v45  }
 0x515   : > { %8624 = shalt.err (!%p8621_p10)
}
 0x516   : > { %s8680_s15 = smov 64   ;;  %s8681_s11 = smov 4  }
 0x517   : > { %8401 = dma.vmem_to_hbm [thread:$0]  (%p8813_p3), %s6727_s22, 2048, %s6729_s29, %s6714_s28, %s8680_s15, %s8680_s15, %s8681_s11  }
 0x518 PF: > { %s6743_s19 = sand.u32 1, %s8659_s24   ;;  %p11726_p12 = scmp.ge.s32.totalorder %s8671_s27, 2 }
 0x519   : > { %s6744_s10 = scalar_lea.sflag [#allocation5], %s6743_s19 }
 0x51a   : > { %p8418_p13 = pnand %p11726_p12, %p8757_p6 }
 0x51c   : > { %p8419_p0 = pneg %p8418_p13 }
 0x51e   : > { %8654 = dma.done.wait (%p8419_p0), %s6744_s10, 2048  }
 0x51f   : > { %8656 = vsyncadd (%p8419_p0), %s6744_s10, 4294965248  ;;  %p22_p5 = scmp.ge.s32.totalorder %s8795_s13, 4   ;;  %s11727_s24 = smov %s8663_s25 }
 0x520   : > { %s11728_s25 = smov %s8667_s26  ;;  %s11729_s26 = smov %s8809_s17 }
 0x521   : > { %s11730_s27 = smov %s8795_s13  ;;  %24 = sbr.rel (!%p22_p5) target bundleno = 9 (0x9), region = 115 }
 0x526   :  { %6750 = vsyncpa [#allocation4], 1 }
 0x527   :  { %6752 = vsyncpa [#allocation4 + $0x1], 1 }
 0x528   :  { %6753 = vsyncpa [#allocation7], 1 }
 0x529   :  { %6754 = vsyncpa [#allocation10], 1 }
 0x52a   :  { %6755 = vsyncpa [#allocation5], 1 }
 0x52b   :  { %6757 = vsyncpa [#allocation5 + $0x1], 1 }

</bundles_post_ra>
